<compile_context>
chip_gen: v6e
topology: v6e:2x2x1
jax: 0.10.0
libtpu: 0.0.40
codegen_flags: <defaults>
</compile_context>

<pallas_src>
import functools

import jax
import jax.numpy as jnp
from jax.experimental import pallas as pl
from jax.experimental.pallas import tpu as pltpu


def _round_up(x, m):
    return ((x + m - 1) // m) * m


# ---------------------------------------------------------------------------
# Fused Pallas kernel: full LightningMLP forward for one (batch, row-tile)
# ---------------------------------------------------------------------------
def _lightning_mlp_kernel(x_ref, rd_ref, seg_ref, wstk_ref, wrd_ref, beta_ref,
                          wx_ref, whead_ref, bh_ref, out_ref):
    f32, bf16 = jnp.float32, jnp.bfloat16

    def leaky(v):  # LeakyReLU(0.2); slope < 1 so max(v, 0.2v) is exact
        return jnp.maximum(v, 0.2 * v)

    beta = beta_ref[...]            # (8, Hp) f32: rows 0..4 = fc_2/3/4, mod_5, fc_6 betas

    # f = act(fc_1(x) + fc_m_a(m) + b_1); fc_m_a row-gather (+ b_1) precomputed in seg_ref
    f = jnp.dot(x_ref[...].astype(bf16), wx_ref[...], preferred_element_type=f32)
    f = leaky(f + seg_ref[...].astype(f32))

    def mod_layer(h, k):
        # ModLinear(bias=False, mod_bias=True, output_mode=True):
        #   y = (x*alpha) @ W^T + beta == x @ (alpha-row-scaled W^T) + beta
        # alpha is already folded into wstk_ref[k]; only beta is added here.
        return jnp.dot(h.astype(bf16), wstk_ref[k], preferred_element_type=f32) + beta[k:k + 1, :]

    f = leaky(mod_layer(f, 0))      # fc_2
    f = leaky(mod_layer(f, 1))      # fc_3
    f = leaky(mod_layer(f, 2))      # fc_4

    # sigma head (columns 0..out_s-1 of the combined 128-wide head slab)
    head = jnp.dot(f.astype(bf16), whead_ref[0], preferred_element_type=f32)

    # f = act(mod_5(fc_5(f) + fc_viewdir(raydir), z))
    # mod_5's alpha column-scales W5^T / Wvd^T (folded); only beta_5 remains.
    f5 = jnp.dot(f.astype(bf16), wstk_ref[3], preferred_element_type=f32)
    f5 = f5 + jnp.dot(rd_ref[...].astype(bf16), wrd_ref[...], preferred_element_type=f32)
    f = leaky(f5 + beta[3:4, :])

    f = leaky(mod_layer(f, 4))      # fc_6

    # color head (columns out_s..out_s+out_c-1), combined with sigma into one bf16 store
    head = head + jnp.dot(f.astype(bf16), whead_ref[1], preferred_element_type=f32)
    out_ref[...] = (head + bh_ref[0:1, :]).astype(out_ref.dtype)


# ---------------------------------------------------------------------------
# Forward wrapper
# ---------------------------------------------------------------------------
@functools.partial(jax.jit, static_argnums=(5, 6, 7))
def _forward_impl(arrays, x, raydir, z, seg_ids, out_s, out_c, tile_rows):
    f32, bf16 = jnp.float32, jnp.bfloat16
    N, H, W, M, Cin = x.shape
    vd = raydir.shape[-1]
    Vp, Hp = arrays["w_rd"].shape

    S = H * W * M
    tm = min(tile_rows, _round_up(S, 16))
    S_pad = _round_up(S, tm)
    grid = (N, S_pad // tm)

    # ---- tiny per-batch style projections (XLA) ----
    z32 = z.astype(f32)
    alpha = jnp.einsum("ns,khs->nkh", z32, arrays["w_alpha"]) + arrays["b_alpha"][None]
    beta = jnp.einsum("ns,khs->nkh", z32, arrays["w_beta"]) + arrays["b_beta"][None]
    beta_b = jnp.zeros((N, 8, Hp), f32).at[:, :5, :].set(beta)

    # ---- fold per-batch alpha into the (already transposed, padded) weights (exact) ----
    #   fc_2/3/4/6 : alpha scales the input  dim -> scale rows of W^T
    #   mod_5      : alpha scales the output of fc_5/fc_viewdir -> scale cols of W5^T/Wvd^T
    row_scale = alpha.at[:, 3, :].set(1.0)
    col_scale = jnp.ones_like(alpha).at[:, 3, :].set(alpha[:, 3, :])
    wstk_b = (row_scale[:, :, :, None] * arrays["w_stack"][None]
              * col_scale[:, :, None, :]).astype(bf16)                      # (N, 5, Hp, Hp)
    wrd_b = (arrays["w_rd"][None] * alpha[:, 3, None, :]).astype(bf16)      # (N, Vp, Hp)

    # ---- per-point streams (no padded f32->bf16 slab copies in the wrapper) ----
    def pad_rows(a):
        if S_pad == S:
            return a
        return jnp.pad(a, ((0, 0), (0, S_pad - S)) + ((0, 0),) * (a.ndim - 2))

    x_p = pad_rows(x.reshape(N, S, Cin))                                    # f32, unpadded lanes
    rd = jnp.broadcast_to(raydir, (N, H, W, M, vd)).reshape(N, S, vd)
    rd_p = pad_rows(jnp.pad(rd, ((0, 0), (0, 0), (0, Vp - vd))))            # f32, 8 lanes
    seg_p = pad_rows(jnp.take(arrays["seg_table"], seg_ids.reshape(N, S), axis=0))  # bf16

    flops = 2 * N * S_pad * Hp * (Cin + Vp + 5 * Hp + 2 * 128)
    bytes_accessed = int(x_p.size * 4 + rd_p.size * 4 + seg_p.size * 2
                         + N * S_pad * 128 * 2
                         + wstk_b.size * 2 + wrd_b.size * 2 + beta_b.size * 4
                         + Cin * Hp * 2 + 2 * Hp * 128 * 2 + 8 * 128 * 4)

    def row_spec(lanes):
        return pl.BlockSpec((None, tm, lanes), lambda b, i: (b, i, 0))

    out = pl.pallas_call(
        _lightning_mlp_kernel,
        out_shape=jax.ShapeDtypeStruct((N, S_pad, 128), bf16),
        grid_spec=pltpu.PrefetchScalarGridSpec(
            num_scalar_prefetch=0,
            grid=grid,
            in_specs=[
                row_spec(Cin),                                                 # x (f32)
                row_spec(Vp),                                                  # raydir (f32)
                row_spec(Hp),                                                  # seg addend (bf16)
                pl.BlockSpec((None, 5, Hp, Hp), lambda b, i: (b, 0, 0, 0)),    # alpha-folded stack
                pl.BlockSpec((None, Vp, Hp), lambda b, i: (b, 0, 0)),          # alpha5-folded Wvd^T
                pl.BlockSpec((None, 8, Hp), lambda b, i: (b, 0, 0)),           # per-batch betas
                pl.BlockSpec((Cin, Hp), lambda b, i: (0, 0)),                  # fc_1 W^T
                pl.BlockSpec((2, Hp, 128), lambda b, i: (0, 0, 0)),            # combined heads
                pl.BlockSpec((8, 128), lambda b, i: (0, 0)),                   # combined head bias
            ],
            out_specs=row_spec(128),
        ),
        compiler_params=pltpu.CompilerParams(
            dimension_semantics=("parallel", "parallel"),
            vmem_limit_bytes=32 * 1024 * 1024),
        cost_estimate=pl.CostEstimate(flops=flops, transcendentals=0,
                                      bytes_accessed=bytes_accessed),
    )(x_p, rd_p, seg_p, wstk_b, wrd_b, beta_b,
      arrays["w_x"], arrays["w_head"], arrays["b_head"])

    sigma = out[:, :S, :out_s].astype(f32).reshape(N, H, W, M, out_s)
    c = out[:, :S, out_s:out_s + out_c].astype(f32).reshape(N, H, W, M, out_c)
    return sigma, c


def lightning_mlp_forward(params, x, raydir, z, m, tile_rows=1024):
    """m: either int segmentation ids (N,H,W,M) or a one-hot (N,H,W,M,mask_dim) tensor."""
    assert tile_rows % 16 == 0
    meta = params["meta"]
    if m.ndim == 5:
        seg_ids = jnp.argmax(m, axis=-1).astype(jnp.int32)     # one-hot -> ids (exact for one-hot)
    else:
        seg_ids = m.astype(jnp.int32)
    return _forward_impl(params["arrays"], x, raydir, z, seg_ids,
                         meta["out_s"], meta["out_c"], tile_rows)


# ---------------------------------------------------------------------------
# Parameter construction (deterministic, synthetic) + one-time packing
# ---------------------------------------------------------------------------
def _pack_params(raw, *, in_channels, style_dim, viewdir_dim, mask_dim,
                 out_s, out_c, hidden):
    Hp = _round_up(hidden, 128)
    Vp = max(8, _round_up(viewdir_dim, 8))
    assert out_s + out_c <= 128

    def padT(w, rows, cols):  # (out, in) torch Linear weight -> padded W^T
        p = jnp.zeros((rows, cols), jnp.float32)
        return p.at[:w.shape[1], :w.shape[0]].set(w.T)

    b1_pad = jnp.zeros((Hp,), jnp.float32).at[:hidden].set(raw["b1"])
    w_x = padT(raw["W1"], in_channels, Hp).astype(jnp.bfloat16)                 # (Cin, Hp)
    seg_table = (padT(raw["Wm"], mask_dim, Hp) + b1_pad[None, :]).astype(jnp.bfloat16)
    w_rd = padT(raw["Wvd"], Vp, Hp)                                             # f32 (scaled per call)
    w_stack = jnp.stack([padT(raw["fc2"]["W"], Hp, Hp),
                         padT(raw["fc3"]["W"], Hp, Hp),
                         padT(raw["fc4"]["W"], Hp, Hp),
                         padT(raw["W5"], Hp, Hp),
                         padT(raw["fc6"]["W"], Hp, Hp)])                        # (5, Hp, Hp) f32

    wc_T = jnp.zeros((Hp, 128), jnp.float32).at[:hidden, out_s:out_s + out_c].set(raw["Wc"].T)
    w_head = jnp.stack([padT(raw["Wsig"], Hp, 128), wc_T]).astype(jnp.bfloat16)
    b_head = (jnp.zeros((8, 128), jnp.float32)
              .at[0, :out_s].set(raw["bsig"])
              .at[0, out_s:out_s + out_c].set(raw["bc"]))

    def pad_vec(v):
        return jnp.zeros((Hp,), jnp.float32).at[:hidden].set(v)

    def pad_style(w):  # (hidden, style) -> (Hp, style)
        return jnp.zeros((Hp, style_dim), jnp.float32).at[:hidden, :].set(w)

    mods = [raw["fc2"], raw["fc3"], raw["fc4"], raw["mod5"], raw["fc6"]]
    w_alpha = jnp.stack([pad_style(l["wA"]) for l in mods])     # (5, Hp, style)
    b_alpha = jnp.stack([pad_vec(l["bA"]) for l in mods])       # (5, Hp)
    w_beta = jnp.stack([pad_style(l["wB"]) for l in mods])
    b_beta = jnp.stack([pad_vec(l["bB"]) for l in mods])

    arrays = dict(w_x=w_x, seg_table=seg_table, w_rd=w_rd, w_stack=w_stack,
                  w_head=w_head, b_head=b_head,
                  w_alpha=w_alpha, b_alpha=b_alpha, w_beta=w_beta, b_beta=b_beta)
    meta = dict(hidden=hidden, out_s=out_s, out_c=out_c)
    return arrays, meta


def init_params(key, *, in_channels, style_dim, viewdir_dim, mask_dim=680,
                out_channels_s=1, out_channels_c=3, hidden_channels=256):
    hidden = hidden_channels
    keys = iter(jax.random.split(key, 32))

    def lin_w(out_f, in_f):
        return jax.random.normal(next(keys), (out_f, in_f), jnp.float32) / jnp.sqrt(in_f)

    def style_pair():
        return (jax.random.normal(next(keys), (hidden, style_dim), jnp.float32)
                / jnp.sqrt(style_dim))

    def mod_layer():
        return {"W": lin_w(hidden, hidden),
                "wA": style_pair(), "bA": jnp.ones((hidden,), jnp.float32),
                "wB": style_pair(), "bB": jnp.zeros((hidden,), jnp.float32)}

    raw = {
        "W1": lin_w(hidden, in_channels),
        "b1": 0.05 * jax.random.normal(next(keys), (hidden,), jnp.float32),
        "Wm": lin_w(hidden, mask_dim),
        "Wvd": lin_w(hidden, viewdir_dim),
        "fc2": mod_layer(),
        "fc3": mod_layer(),
        "fc4": mod_layer(),
        "W5": lin_w(hidden, hidden),
        "mod5": {"wA": style_pair(), "bA": jnp.ones((hidden,), jnp.float32),
                 "wB": style_pair(), "bB": jnp.zeros((hidden,), jnp.float32)},
        "fc6": mod_layer(),
        "Wsig": lin_w(out_channels_s, hidden),
        "bsig": 0.05 * jax.random.normal(next(keys), (out_channels_s,), jnp.float32),
        "Wc": lin_w(out_channels_c, hidden),
        "bc": 0.05 * jax.random.normal(next(keys), (out_channels_c,), jnp.float32),
    }
    arrays, meta = _pack_params(raw, in_channels=in_channels, style_dim=style_dim,
                                viewdir_dim=viewdir_dim, mask_dim=mask_dim,
                                out_s=out_channels_s, out_c=out_channels_c,
                                hidden=hidden)
    return {"raw": raw, "arrays": arrays, "meta": meta}


# ---------------------------------------------------------------------------
# Plain-JAX f32 reference (mirrors the PyTorch module) -- used for self-check
# ---------------------------------------------------------------------------
def reference_forward(raw, x, raydir, z, m):
    leaky = lambda v: jnp.where(v >= 0, v, 0.2 * v)
    bcast = lambda v: v[:, None, None, None, :]

    def style_vec(w, b):
        return z @ w.T + b

    def mod_linear(f, layer):
        alpha = bcast(style_vec(layer["wA"], layer["bA"]))
        beta = bcast(style_vec(layer["wB"], layer["bB"]))
        return (f * alpha) @ layer["W"].T + beta

    f = x @ raw["W1"].T + raw["b1"]
    f = f + m @ raw["Wm"].T
    f = leaky(f)
    f = leaky(mod_linear(f, raw["fc2"]))
    f = leaky(mod_linear(f, raw["fc3"]))
    f = leaky(mod_linear(f, raw["fc4"]))
    sigma = f @ raw["Wsig"].T + raw["bsig"]
    f5 = f @ raw["W5"].T
    f5 = f5 + raydir @ raw["Wvd"].T
    alpha5 = bcast(style_vec(raw["mod5"]["wA"], raw["mod5"]["bA"]))
    beta5 = bcast(style_vec(raw["mod5"]["wB"], raw["mod5"]["bB"]))
    f = leaky(f5 * alpha5 + beta5)
    f = leaky(mod_linear(f, raw["fc6"]))
    c = f @ raw["Wc"].T + raw["bc"]
    return sigma, c


if __name__ == "__main__":
    key = jax.random.PRNGKey(0)
    k_par, kx, kr, kz, km = jax.random.split(key, 5)

    N, H, W, M = 2, 8, 8, 4
    in_channels, style_dim, viewdir_dim = 32, 16, 3
    mask_dim, hidden = 680, 256

    params = init_params(k_par, in_channels=in_channels, style_dim=style_dim,
                         viewdir_dim=viewdir_dim, mask_dim=mask_dim,
                         out_channels_s=1, out_channels_c=3,
                         hidden_channels=hidden)

    x = jax.random.normal(kx, (N, H, W, M, in_channels), jnp.float32)
    raydir = jax.random.normal(kr, (N, H, W, 1, viewdir_dim), jnp.float32)
    raydir = raydir / (jnp.linalg.norm(raydir, axis=-1, keepdims=True) + 1e-6)
    z = jax.random.normal(kz, (N, style_dim), jnp.float32)
    seg_ids = jax.random.randint(km, (N, H, W, M), 0, mask_dim, dtype=jnp.int32)

    # Preferred (index) segmentation path
    sigma, c = lightning_mlp_forward(params, x, raydir, z, seg_ids)
    sigma, c = jax.block_until_ready((sigma, c))
    assert sigma.shape == (N, H, W, M, 1) and c.shape == (N, H, W, M, 3)

    # One-hot module-interface path must agree exactly with the id path
    seg_onehot = jax.nn.one_hot(seg_ids, mask_dim, dtype=jnp.float32)
    sigma2, c2 = lightning_mlp_forward(params, x, raydir, z, seg_onehot)
    assert bool(jnp.all(sigma2 == sigma)) and bool(jnp.all(c2 == c))

    # Loose numerical self-check against the f32 reference (kernel uses bf16 MXU operands).
    sig_ref, c_ref = reference_forward(params["raw"], x, raydir, z, seg_onehot)
    max_abs = lambda a: float(jnp.max(jnp.abs(a)))
    tol = 0.05 * max(max_abs(sig_ref), max_abs(c_ref)) + 0.05
    err = max(max_abs(sigma - sig_ref), max_abs(c - c_ref))
    assert err < tol, f"numerical mismatch: err={err} tol={tol}"

    print("KERNEL_OK")
</pallas_src>

<mosaic_0001>
module attributes {stable_mosaic.version = 11 : i64} {
  func.func @_lightning_mlp_kernel(%arg0: i32, %arg1: i32, %arg2: memref<1x256x32xf32, #tpu.memory_space<vmem>>, %arg3: memref<1x256x8xf32, #tpu.memory_space<vmem>>, %arg4: memref<1x256x256xbf16, #tpu.memory_space<vmem>>, %arg5: memref<1x5x256x256xbf16, #tpu.memory_space<vmem>>, %arg6: memref<1x8x256xbf16, #tpu.memory_space<vmem>>, %arg7: memref<1x8x256xf32, #tpu.memory_space<vmem>>, %arg8: memref<32x256xbf16, #tpu.memory_space<vmem>>, %arg9: memref<2x256x128xbf16, #tpu.memory_space<vmem>>, %arg10: memref<8x128xf32, #tpu.memory_space<vmem>>, %arg11: memref<1x256x128xbf16, #tpu.memory_space<vmem>>) attributes {dimension_semantics = [#tpu.dimension_semantics<parallel>, #tpu.dimension_semantics<parallel>], iteration_bounds = array<i64: 2, 1>, scalar_prefetch = 0 : i64, scratch_operands = 0 : i64, tpu.core_type = #tpu.core_type<tc>, window_params = [{transform_indices = @transform_0, window_bounds = array<i64: 1, 256, 32>}, {transform_indices = @transform_1, window_bounds = array<i64: 1, 256, 8>}, {transform_indices = @transform_2, window_bounds = array<i64: 1, 256, 256>}, {transform_indices = @transform_3, window_bounds = array<i64: 1, 5, 256, 256>}, {transform_indices = @transform_4, window_bounds = array<i64: 1, 8, 256>}, {transform_indices = @transform_5, window_bounds = array<i64: 1, 8, 256>}, {pipeline_mode = #tpu.pipeline_mode<synchronous>, transform_indices = @transform_6, window_bounds = array<i64: 32, 256>}, {pipeline_mode = #tpu.pipeline_mode<synchronous>, transform_indices = @transform_7, window_bounds = array<i64: 2, 256, 128>}, {pipeline_mode = #tpu.pipeline_mode<synchronous>, transform_indices = @transform_8, window_bounds = array<i64: 8, 128>}, {transform_indices = @transform_9, window_bounds = array<i64: 1, 256, 128>}]} {
    %c0 = arith.constant 0 : index
    %c0_0 = arith.constant 0 : index
    %c0_1 = arith.constant 0 : index
    %0 = vector.load %arg7[%c0, %c0_0, %c0_1] : memref<1x8x256xf32, #tpu.memory_space<vmem>>, vector<1x8x256xf32>
    %1 = vector.shape_cast %0 : vector<1x8x256xf32> to vector<8x256xf32>
    %c0_2 = arith.constant 0 : index
    %c0_3 = arith.constant 0 : index
    %c0_4 = arith.constant 0 : index
    %2 = vector.load %arg2[%c0_2, %c0_3, %c0_4] : memref<1x256x32xf32, #tpu.memory_space<vmem>>, vector<1x256x32xf32>
    %3 = vector.shape_cast %2 : vector<1x256x32xf32> to vector<256x32xf32>
    %4 = arith.truncf %3 : vector<256x32xf32> to vector<256x32xbf16>
    %c0_5 = arith.constant 0 : index
    %c0_6 = arith.constant 0 : index
    %5 = vector.load %arg8[%c0_5, %c0_6] : memref<32x256xbf16, #tpu.memory_space<vmem>>, vector<32x256xbf16>
    %cst = arith.constant dense<0.000000e+00> : vector<256x256xf32>
    %6 = tpu.matmul %4, %5, %cst {dimension_numbers = #tpu.dot_dimension_numbers<[1], [0], [0], [1], [0, 0, 1, 1], [], []>} : vector<256x32xbf16>, vector<32x256xbf16>, vector<256x256xf32> -> vector<256x256xf32>
    %c0_7 = arith.constant 0 : index
    %c0_8 = arith.constant 0 : index
    %c0_9 = arith.constant 0 : index
    %7 = vector.load %arg4[%c0_7, %c0_8, %c0_9] : memref<1x256x256xbf16, #tpu.memory_space<vmem>>, vector<1x256x256xbf16>
    %8 = vector.shape_cast %7 : vector<1x256x256xbf16> to vector<256x256xbf16>
    %9 = arith.extf %8 : vector<256x256xbf16> to vector<256x256xf32>
    %10 = arith.addf %6, %9 : vector<256x256xf32>
    %cst_10 = arith.constant 2.000000e-01 : f32
    %11 = vector.broadcast %cst_10 : f32 to vector<256x256xf32>
    %12 = arith.mulf %11, %10 : vector<256x256xf32>
    %13 = arith.maximumf %10, %12 : vector<256x256xf32>
    %14 = arith.truncf %13 : vector<256x256xf32> to vector<256x256xbf16>
    %c0_11 = arith.constant 0 : index
    %c0_12 = arith.constant 0 : index
    %c0_13 = arith.constant 0 : index
    %c0_14 = arith.constant 0 : index
    %15 = vector.load %arg5[%c0_11, %c0_12, %c0_13, %c0_14] : memref<1x5x256x256xbf16, #tpu.memory_space<vmem>>, vector<1x1x256x256xbf16>
    %16 = vector.shape_cast %15 : vector<1x1x256x256xbf16> to vector<256x256xbf16>
    %cst_15 = arith.constant dense<0.000000e+00> : vector<256x256xf32>
    %17 = tpu.matmul %14, %16, %cst_15 {dimension_numbers = #tpu.dot_dimension_numbers<[1], [0], [0], [1], [0, 0, 1, 1], [], []>} : vector<256x256xbf16>, vector<256x256xbf16>, vector<256x256xf32> -> vector<256x256xf32>
    %18 = vector.extract_strided_slice %1 {offsets = [0, 0], sizes = [1, 256], strides = [1, 1]} : vector<8x256xf32> to vector<1x256xf32>
    %19 = vector.broadcast %18 : vector<1x256xf32> to vector<256x256xf32>
    %20 = arith.addf %17, %19 : vector<256x256xf32>
    %cst_16 = arith.constant 2.000000e-01 : f32
    %21 = vector.broadcast %cst_16 : f32 to vector<256x256xf32>
    %22 = arith.mulf %21, %20 : vector<256x256xf32>
    %23 = arith.maximumf %20, %22 : vector<256x256xf32>
    %24 = arith.truncf %23 : vector<256x256xf32> to vector<256x256xbf16>
    %c0_17 = arith.constant 0 : index
    %c1 = arith.constant 1 : index
    %c0_18 = arith.constant 0 : index
    %c0_19 = arith.constant 0 : index
    %25 = vector.load %arg5[%c0_17, %c1, %c0_18, %c0_19] : memref<1x5x256x256xbf16, #tpu.memory_space<vmem>>, vector<1x1x256x256xbf16>
    %26 = vector.shape_cast %25 : vector<1x1x256x256xbf16> to vector<256x256xbf16>
    %cst_20 = arith.constant dense<0.000000e+00> : vector<256x256xf32>
    %27 = tpu.matmul %24, %26, %cst_20 {dimension_numbers = #tpu.dot_dimension_numbers<[1], [0], [0], [1], [0, 0, 1, 1], [], []>} : vector<256x256xbf16>, vector<256x256xbf16>, vector<256x256xf32> -> vector<256x256xf32>
    %28 = vector.extract_strided_slice %1 {offsets = [1, 0], sizes = [1, 256], strides = [1, 1]} : vector<8x256xf32> to vector<1x256xf32>
    %29 = vector.broadcast %28 : vector<1x256xf32> to vector<256x256xf32>
    %30 = arith.addf %27, %29 : vector<256x256xf32>
    %cst_21 = arith.constant 2.000000e-01 : f32
    %31 = vector.broadcast %cst_21 : f32 to vector<256x256xf32>
    %32 = arith.mulf %31, %30 : vector<256x256xf32>
    %33 = arith.maximumf %30, %32 : vector<256x256xf32>
    %34 = arith.truncf %33 : vector<256x256xf32> to vector<256x256xbf16>
    %c0_22 = arith.constant 0 : index
    %c2 = arith.constant 2 : index
    %c0_23 = arith.constant 0 : index
    %c0_24 = arith.constant 0 : index
    %35 = vector.load %arg5[%c0_22, %c2, %c0_23, %c0_24] : memref<1x5x256x256xbf16, #tpu.memory_space<vmem>>, vector<1x1x256x256xbf16>
    %36 = vector.shape_cast %35 : vector<1x1x256x256xbf16> to vector<256x256xbf16>
    %cst_25 = arith.constant dense<0.000000e+00> : vector<256x256xf32>
    %37 = tpu.matmul %34, %36, %cst_25 {dimension_numbers = #tpu.dot_dimension_numbers<[1], [0], [0], [1], [0, 0, 1, 1], [], []>} : vector<256x256xbf16>, vector<256x256xbf16>, vector<256x256xf32> -> vector<256x256xf32>
    %38 = vector.extract_strided_slice %1 {offsets = [2, 0], sizes = [1, 256], strides = [1, 1]} : vector<8x256xf32> to vector<1x256xf32>
    %39 = vector.broadcast %38 : vector<1x256xf32> to vector<256x256xf32>
    %40 = arith.addf %37, %39 : vector<256x256xf32>
    %cst_26 = arith.constant 2.000000e-01 : f32
    %41 = vector.broadcast %cst_26 : f32 to vector<256x256xf32>
    %42 = arith.mulf %41, %40 : vector<256x256xf32>
    %43 = arith.maximumf %40, %42 : vector<256x256xf32>
    %44 = arith.truncf %43 : vector<256x256xf32> to vector<256x256xbf16>
    %c0_27 = arith.constant 0 : index
    %c0_28 = arith.constant 0 : index
    %c0_29 = arith.constant 0 : index
    %45 = vector.load %arg9[%c0_27, %c0_28, %c0_29] : memref<2x256x128xbf16, #tpu.memory_space<vmem>>, vector<1x256x128xbf16>
    %46 = vector.shape_cast %45 : vector<1x256x128xbf16> to vector<256x128xbf16>
    %cst_30 = arith.constant dense<0.000000e+00> : vector<256x128xf32>
    %47 = tpu.matmul %44, %46, %cst_30 {dimension_numbers = #tpu.dot_dimension_numbers<[1], [0], [0], [1], [0, 0, 1, 1], [], []>} : vector<256x256xbf16>, vector<256x128xbf16>, vector<256x128xf32> -> vector<256x128xf32>
    %48 = arith.truncf %43 : vector<256x256xf32> to vector<256x256xbf16>
    %c0_31 = arith.constant 0 : index
    %c3 = arith.constant 3 : index
    %c0_32 = arith.constant 0 : index
    %c0_33 = arith.constant 0 : index
    %49 = vector.load %arg5[%c0_31, %c3, %c0_32, %c0_33] : memref<1x5x256x256xbf16, #tpu.memory_space<vmem>>, vector<1x1x256x256xbf16>
    %50 = vector.shape_cast %49 : vector<1x1x256x256xbf16> to vector<256x256xbf16>
    %cst_34 = arith.constant dense<0.000000e+00> : vector<256x256xf32>
    %51 = tpu.matmul %48, %50, %cst_34 {dimension_numbers = #tpu.dot_dimension_numbers<[1], [0], [0], [1], [0, 0, 1, 1], [], []>} : vector<256x256xbf16>, vector<256x256xbf16>, vector<256x256xf32> -> vector<256x256xf32>
    %c0_35 = arith.constant 0 : index
    %c0_36 = arith.constant 0 : index
    %c0_37 = arith.constant 0 : index
    %52 = vector.load %arg3[%c0_35, %c0_36, %c0_37] : memref<1x256x8xf32, #tpu.memory_space<vmem>>, vector<1x256x8xf32>
    %53 = vector.shape_cast %52 : vector<1x256x8xf32> to vector<256x8xf32>
    %54 = arith.truncf %53 : vector<256x8xf32> to vector<256x8xbf16>
    %c0_38 = arith.constant 0 : index
    %c0_39 = arith.constant 0 : index
    %c0_40 = arith.constant 0 : index
    %55 = vector.load %arg6[%c0_38, %c0_39, %c0_40] : memref<1x8x256xbf16, #tpu.memory_space<vmem>>, vector<1x8x256xbf16>
    %56 = vector.shape_cast %55 : vector<1x8x256xbf16> to vector<8x256xbf16>
    %cst_41 = arith.constant dense<0.000000e+00> : vector<256x256xf32>
    %57 = tpu.matmul %54, %56, %cst_41 {dimension_numbers = #tpu.dot_dimension_numbers<[1], [0], [0], [1], [0, 0, 1, 1], [], []>} : vector<256x8xbf16>, vector<8x256xbf16>, vector<256x256xf32> -> vector<256x256xf32>
    %58 = arith.addf %51, %57 : vector<256x256xf32>
    %59 = vector.extract_strided_slice %1 {offsets = [3, 0], sizes = [1, 256], strides = [1, 1]} : vector<8x256xf32> to vector<1x256xf32>
    %60 = vector.broadcast %59 : vector<1x256xf32> to vector<256x256xf32>
    %61 = arith.addf %58, %60 : vector<256x256xf32>
    %cst_42 = arith.constant 2.000000e-01 : f32
    %62 = vector.broadcast %cst_42 : f32 to vector<256x256xf32>
    %63 = arith.mulf %62, %61 : vector<256x256xf32>
    %64 = arith.maximumf %61, %63 : vector<256x256xf32>
    %65 = arith.truncf %64 : vector<256x256xf32> to vector<256x256xbf16>
    %c0_43 = arith.constant 0 : index
    %c4 = arith.constant 4 : index
    %c0_44 = arith.constant 0 : index
    %c0_45 = arith.constant 0 : index
    %66 = vector.load %arg5[%c0_43, %c4, %c0_44, %c0_45] : memref<1x5x256x256xbf16, #tpu.memory_space<vmem>>, vector<1x1x256x256xbf16>
    %67 = vector.shape_cast %66 : vector<1x1x256x256xbf16> to vector<256x256xbf16>
    %cst_46 = arith.constant dense<0.000000e+00> : vector<256x256xf32>
    %68 = tpu.matmul %65, %67, %cst_46 {dimension_numbers = #tpu.dot_dimension_numbers<[1], [0], [0], [1], [0, 0, 1, 1], [], []>} : vector<256x256xbf16>, vector<256x256xbf16>, vector<256x256xf32> -> vector<256x256xf32>
    %69 = vector.extract_strided_slice %1 {offsets = [4, 0], sizes = [1, 256], strides = [1, 1]} : vector<8x256xf32> to vector<1x256xf32>
    %70 = vector.broadcast %69 : vector<1x256xf32> to vector<256x256xf32>
    %71 = arith.addf %68, %70 : vector<256x256xf32>
    %cst_47 = arith.constant 2.000000e-01 : f32
    %72 = vector.broadcast %cst_47 : f32 to vector<256x256xf32>
    %73 = arith.mulf %72, %71 : vector<256x256xf32>
    %74 = arith.maximumf %71, %73 : vector<256x256xf32>
    %75 = arith.truncf %74 : vector<256x256xf32> to vector<256x256xbf16>
    %c1_48 = arith.constant 1 : index
    %c0_49 = arith.constant 0 : index
    %c0_50 = arith.constant 0 : index
    %76 = vector.load %arg9[%c1_48, %c0_49, %c0_50] : memref<2x256x128xbf16, #tpu.memory_space<vmem>>, vector<1x256x128xbf16>
    %77 = vector.shape_cast %76 : vector<1x256x128xbf16> to vector<256x128xbf16>
    %cst_51 = arith.constant dense<0.000000e+00> : vector<256x128xf32>
    %78 = tpu.matmul %75, %77, %cst_51 {dimension_numbers = #tpu.dot_dimension_numbers<[1], [0], [0], [1], [0, 0, 1, 1], [], []>} : vector<256x256xbf16>, vector<256x128xbf16>, vector<256x128xf32> -> vector<256x128xf32>
    %79 = arith.addf %47, %78 : vector<256x128xf32>
    %c0_52 = arith.constant 0 : index
    %c0_53 = arith.constant 0 : index
    %80 = vector.load %arg10[%c0_52, %c0_53] : memref<8x128xf32, #tpu.memory_space<vmem>>, vector<1x128xf32>
    %81 = vector.broadcast %80 : vector<1x128xf32> to vector<256x128xf32>
    %82 = arith.addf %79, %81 : vector<256x128xf32>
    %83 = arith.truncf %82 : vector<256x128xf32> to vector<256x128xbf16>
    %c0_54 = arith.constant 0 : index
    %c0_55 = arith.constant 0 : index
    %c0_56 = arith.constant 0 : index
    %84 = vector.load %arg11[%c0_54, %c0_55, %c0_56] : memref<1x256x128xbf16, #tpu.memory_space<vmem>>, vector<1x256x128xbf16>
    %85 = vector.shape_cast %84 : vector<1x256x128xbf16> to vector<256x128xbf16>
    %86 = vector.shape_cast %83 : vector<256x128xbf16> to vector<1x256x128xbf16>
    tpu.vector_store %arg11[%c0_54, %c0_55, %c0_56], %86 {strides = array<i32>} : memref<1x256x128xbf16, #tpu.memory_space<vmem>>, vector<1x256x128xbf16>,
    return
  }
  func.func @transform_0(%arg0: i32, %arg1: i32) -> (i32, i32, i32) {
    %c0_i32 = arith.constant 0 : i32
    %c0_i32_0 = arith.constant 0 : i32
    return %arg0, %arg1, %c0_i32 : i32, i32, i32
  }
  func.func @transform_1(%arg0: i32, %arg1: i32) -> (i32, i32, i32) {
    %c0_i32 = arith.constant 0 : i32
    %c0_i32_0 = arith.constant 0 : i32
    return %arg0, %arg1, %c0_i32 : i32, i32, i32
  }
  func.func @transform_2(%arg0: i32, %arg1: i32) -> (i32, i32, i32) {
    %c0_i32 = arith.constant 0 : i32
    %c0_i32_0 = arith.constant 0 : i32
    return %arg0, %arg1, %c0_i32 : i32, i32, i32
  }
  func.func @transform_3(%arg0: i32, %arg1: i32) -> (i32, i32, i32, i32) {
    %c0_i32 = arith.constant 0 : i32
    %c0_i32_0 = arith.constant 0 : i32
    %c0_i32_1 = arith.constant 0 : i32
    %c0_i32_2 = arith.constant 0 : i32
    return %arg0, %c0_i32, %c0_i32_0, %c0_i32_1 : i32, i32, i32, i32
  }
  func.func @transform_4(%arg0: i32, %arg1: i32) -> (i32, i32, i32) {
    %c0_i32 = arith.constant 0 : i32
    %c0_i32_0 = arith.constant 0 : i32
    %c0_i32_1 = arith.constant 0 : i32
    return %arg0, %c0_i32, %c0_i32_0 : i32, i32, i32
  }
  func.func @transform_5(%arg0: i32, %arg1: i32) -> (i32, i32, i32) {
    %c0_i32 = arith.constant 0 : i32
    %c0_i32_0 = arith.constant 0 : i32
    %c0_i32_1 = arith.constant 0 : i32
    return %arg0, %c0_i32, %c0_i32_0 : i32, i32, i32
  }
  func.func @transform_6(%arg0: i32, %arg1: i32) -> (i32, i32) {
    %c0_i32 = arith.constant 0 : i32
    %c0_i32_0 = arith.constant 0 : i32
    %c0_i32_1 = arith.constant 0 : i32
    return %c0_i32, %c0_i32_0 : i32, i32
  }
  func.func @transform_7(%arg0: i32, %arg1: i32) -> (i32, i32, i32) {
    %c0_i32 = arith.constant 0 : i32
    %c0_i32_0 = arith.constant 0 : i32
    %c0_i32_1 = arith.constant 0 : i32
    %c0_i32_2 = arith.constant 0 : i32
    return %c0_i32, %c0_i32_0, %c0_i32_1 : i32, i32, i32
  }
  func.func @transform_8(%arg0: i32, %arg1: i32) -> (i32, i32) {
    %c0_i32 = arith.constant 0 : i32
    %c0_i32_0 = arith.constant 0 : i32
    %c0_i32_1 = arith.constant 0 : i32
    return %c0_i32, %c0_i32_0 : i32, i32
  }
  func.func @transform_9(%arg0: i32, %arg1: i32) -> (i32, i32, i32) {
    %c0_i32 = arith.constant 0 : i32
    %c0_i32_0 = arith.constant 0 : i32
    return %arg0, %arg1, %c0_i32 : i32, i32, i32
  }
}

</mosaic_0001>

<bundles_post_ra>
// kernel: _forward_impl.1
= control target key start
LH: loop header
LB: loop body
LE: loop exit
PB: predicated region body
PF: predicated region fallthrough
CT: control target
= control target key end

     0   :  { %s6342_s30 = smov 0   ;;  %s6344_s10 = smov 0   ;;  %s7748_s0 = inlined_call_operand.vmem [shape: f32[2,256,32], index: 0, kind: input, shape index: {}]   ;;  %s7749_s1 = inlined_call_operand.vmem [shape: f32[2,256,8], index: 1, kind: input, shape index: {}]   ;;  %s7750_s2 = inlined_call_operand.vmem [shape: bf16[2,256,256], index: 2, kind: input, shape index: {}]   ;;  %s7751_s3 = inlined_call_operand.vmem [shape: bf16[2,5,256,256], index: 3, kind: input, shape index: {}]   ;;  %s7752_s4 = inlined_call_operand.vmem [shape: bf16[2,8,256], index: 4, kind: input, shape index: {}]   ;;  %s7753_s5 = inlined_call_operand.vmem [shape: f32[2,8,256], index: 5, kind: input, shape index: {}]   ;;  %s7754_s6 = inlined_call_operand.vmem [shape: bf16[32,256], index: 6, kind: input, shape index: {}]   ;;  %s7755_s7 = inlined_call_operand.vmem [shape: bf16[2,256,128], index: 7, kind: input, shape index: {}]   ;;  %s7756_s8 = inlined_call_operand.vmem [shape: f32[8,128], index: 8, kind: input, shape index: {}]   ;;  %s7757_s9 = inlined_call_operand.vmem [shape: bf16[2,256,128], index: 9, kind: output, shape index: {}]  }
   0x1   :  { %s6346_s11 = smov 0  }
   0x2 LB: > { %s31_s12 = sadd.s32 1, %s6285_s10  ;;  %p5158_p0 = scmp.ge.s32.totalorder %s6289_s11, 1  ;;  %s6289_s11 = sphi %s6346_s11, %s19_s11   ;;  %s6285_s10 = sphi %s6344_s10, %s7834_s10   ;;  %s6281_s30 = sphi %s6342_s30, %s7833_s30  }
   0x3   : > { %p33_p1 = scmp.ge.s32.totalorder %s31_s12, 2  ;;  %p373_p2 = scmp.lt.s32.totalorder %s6289_s11, 3 }
   0x5   : > { %s7836_s12 = smov (%p33_p1, %s31_s12), 0  ;;  %p374_p3 = pnand %p5158_p0, %p373_p2 }
   0x7   : > { %377 = sbr.rel (%p374_p3) target bundleno = 1600 (0x640), region = 56 }
   0xc   : > { %v5985_v0 = vld [vmem:[%s7754_s6 + $0x14] ss:$8 sps:$4 sm:$0xff]   ;;  %p452_p4 = scmp.lt.s32.totalorder %s6281_s30, 1  ;;  %v1112_v1 = vlaneseq  ;;  %v5987_v2 = vld [vmem:[%s7754_s6 + $0x10] ss:$8 sps:$4 sm:$0xff]   ;;  %v6291_v3 = vmov 0  }
   0xd   : > { %759 = vmatprep.mubr.bf16.mxu0 %v6291_v3  ;;  %839 = vmatprep.mubr.bf16.mxu1 %v6291_v3  ;;  %v5988_v4 = vld [vmem:[%s7754_s6 + $0x4] ss:$8 sps:$4 sm:$0xff]   ;;  %v5990_v5 = vld [vmem:[%s7754_s6] ss:$8 sps:$4 sm:$0xff]   ;;  %vm678_vm0 = vcmask 261120   ;;  %vm2909_vm1 = vcmask 1043456  }
   0xe   : > { %739 = vmatprep.subr.bf16.mxu0 %v5985_v0  ;;  %s7838_s30 = smov (!%p452_p4, %s6281_s30), 1  ;;  %v6376_v6 = vshrl.u32 %v1112_v1, 7  ;;  %5955 = vmatprep.subr.bf16.mxu1 %v5985_v0  ;;  %vm2860_vm2 = vcmask 64512  }
   0xf   : > { %740 = vmatpush1.bf16.msra.mxu0 %v5987_v2  ;;  %5957 = vmatpush1.bf16.msra.mxu1 %v5987_v2  ;;  %s6379_s21 = sshll.u32 %s7838_s30, 8  ;;  %s5602_s25 = sshll.u32 %s7838_s30, 4 }
  0x10   : > { %741 = vmatprep.subr.bf16.mxu0 %v5988_v4  ;;  %5956 = vmatprep.subr.bf16.mxu1 %v5988_v4  ;;  %s6385_s24 = scalar_lea.vmem %s7748_s0, %s6379_s21  ;;  %v1668_v7 = vsub.s32 1, %v6376_v6  ;;  %v2222_v10 = vsub.s32 2, %v6376_v6  ;;  %v3464_v11 = vsub.s32 3, %v6376_v6  ;;  %s6396_s28 = scalar_lea.vmem %s7753_s5, %s5602_s25  ;;  %v3729_v13 = vsub.s32 4, %v6376_v6 }
  0x11   : > { %v510_v8 = vld [vmem:[%s6385_s24] sm:$0xff]  ;;  %v511_v9 = vld [vmem:[%s6385_s24 + $0x8] sm:$0xff]  ;;  %s5959_s29 = smul.u32 1280, %s7838_s30  ;;  %v512_v24 = vld [vmem:[%s6385_s24 + $0x10] sm:$0xff]  ;;  %s6519_s18 = scalar_lea.vmem %s7750_s2, %s6379_s21 }
  0x12   : > { %v542_v12 = vpack.c.bf16 %v511_v9, %v510_v8  ;;  %v508_v14 = vld [vmem:[%s6396_s28] sm:$0xff]  ;;  %v509_v15 = vld [vmem:[%s6396_s28 + $0x8] sm:$0xff]  ;;  %v513_v25 = vld [vmem:[%s6385_s24 + $0x18] sm:$0xff]  ;;  %s5601_s19 = sshll.u32 %s7838_s30, 3  ;;  %s6854_s26 = scalar_lea.vmem %s7749_s1, %s6379_s21 }
  0x13   : > { %742 = vmatpush1.bf16.msra.mxu0 %v5990_v5  ;;  %5958 = vmatpush1.bf16.msra.mxu1 %v5990_v5  ;;  %v6401_v16 = vrot.slane %v508_v14, %v1668_v7  ;;  %v6403_v17 = vrot.slane %v509_v15, %v1668_v7  ;;  %v6406_v18 = vrot.slane %v508_v14, %v2222_v10  ;;  %v526_v26 = vld [vmem:[%s6385_s24 + $0x80] sm:$0xff]  ;;  %v527_v27 = vld [vmem:[%s6385_s24 + $0x88] sm:$0xff]  ;;  %s6427_s15 = scalar_lea.vmem %s7751_s3, %s5959_s29  ;;  %v528_v30 = vld [vmem:[%s6385_s24 + $0x90] sm:$0xff]  ;;  %s491_s23 = scalar_lea.vmem %s7752_s4, %s5601_s19 }
  0x14   : > { %v6408_v19 = vrot.slane %v509_v15, %v2222_v10  ;;  %v6410_v20 = vrot.slane %v508_v14, %v3464_v11  ;;  %v6412_v21 = vrot.slane %v509_v15, %v3464_v11  ;;  %v6415_v22 = vrot.slane %v508_v14, %v3729_v13  ;;  %v529_v31 = vld [vmem:[%s6385_s24 + $0x98] sm:$0xff]  ;;  %v514_v32 = vld [vmem:[%s6385_s24 + $0x20] sm:$0xff]  ;;  %v515_v35 = vld [vmem:[%s6385_s24 + $0x28] sm:$0xff]  ;;  %s5603_s25 = sshll.u32 %s7838_s30, 7 }
  0x15   : > { %v6417_v23 = vrot.slane %v509_v15, %v3729_v13  ;;  %v550_v28 = vpack.c.bf16 %v527_v27, %v526_v26  ;;  %v543_v29 = vpack.c.bf16 %v513_v25, %v512_v24  ;;  %v5991_v33 = vld [vmem:[%s6427_s15 + $0x70] ss:$8 sps:$4 sm:$0xff]   ;;  %v5993_v34 = vld [vmem:[%s6427_s15 + $0x74] ss:$8 sps:$4 sm:$0xff]   ;;  %v551_v36 = vpack.c.bf16 %v529_v31, %v528_v30  ;;  %v5996_v37 = vld [vmem:[%s6427_s15 + $0x64] ss:$8 sps:$4 sm:$0xff]   ;;  %s7620_s27 = scalar_lea.vmem %s7757_s9, %s5603_s25 }
  0x16   : > { %5176 = vmatmul.mubr.msk.bf16.vlgmr.msra.gmra.mxu0 %vm678_vm0, %v542_v12  ;;  %7783 = vst [vmem:[#allocation2_spill] sm:$0xff] %v6415_v22  ;;  %1280 = vmatprep.subr.bf16.mxu1 %v5993_v34  ;;  %v5994_v38 = vld [vmem:[%s6427_s15 + $0x60] ss:$8 sps:$4 sm:$0xff]   ;;  %v544_v39 = vpack.c.bf16 %v515_v35, %v514_v32  ;;  %v5999_v40 = vld [vmem:[%s6427_s15 + $0x54] ss:$8 sps:$4 sm:$0xff]  }
  0x17   : > { %7784 = vst [vmem:[#allocation3_spill] sm:$0xff] %v6417_v23  ;;  %769 = vmatprep.mubr.bf16.mxu0 %v6291_v3  ;;  %5184 = vmatmul.mubr.msk.bf16.vlgmr.msra.gmra.mxu1 %vm678_vm0, %v550_v28  ;;  %v530_v41 = vld [vmem:[%s6385_s24 + $0xa0] sm:$0xff]  ;;  %v531_v42 = vld [vmem:[%s6385_s24 + $0xa8] sm:$0xff]  ;;  %v5997_v43 = vld [vmem:[%s6427_s15 + $0x50] ss:$8 sps:$4 sm:$0xff]  }
  0x18   : > { %849 = vmatprep.mubr.bf16.mxu1 %v6291_v3  ;;  %1281 = vmatpush1.bf16.msra.mxu1 %v5991_v33  ;;  %v6002_v44 = vld [vmem:[%s6427_s15 + $0x44] ss:$8 sps:$4 sm:$0xff]   ;;  %v516_v45 = vld [vmem:[%s6385_s24 + $0x30] sm:$0xff]  ;;  %v517_v46 = vld [vmem:[%s6385_s24 + $0x38] sm:$0xff]  ;;  %v552_v47 = vpack.c.bf16 %v531_v42, %v530_v41 }
  0x19   : > { %1282 = vmatprep.subr.bf16.mxu1 %v5996_v37  ;;  %v6000_v48 = vld [vmem:[%s6427_s15 + $0x40] ss:$8 sps:$4 sm:$0xff]   ;;  %v545_v49 = vpack.c.bf16 %v517_v46, %v516_v45  ;;  %v6005_v50 = vld [vmem:[%s6427_s15 + $0x34] ss:$8 sps:$4 sm:$0xff]   ;;  %v6003_v53 = vld [vmem:[%s6427_s15 + $0x30] ss:$8 sps:$4 sm:$0xff]  }
  0x1a   : > { %v532_v51 = vld [vmem:[%s6385_s24 + $0xb0] sm:$0xff]  ;;  %v533_v52 = vld [vmem:[%s6385_s24 + $0xb8] sm:$0xff]  ;;  %v518_v54 = vld [vmem:[%s6385_s24 + $0x40] sm:$0xff] }
  0x1b   : > { %v519_v55 = vld [vmem:[%s6385_s24 + $0x48] sm:$0xff]  ;;  %v553_v57 = vpack.c.bf16 %v533_v52, %v532_v51  ;;  %v6011_v59 = vld [vmem:[%s6427_s15 + $0x14] ss:$8 sps:$4 sm:$0xff]   ;;  %v534_v61 = vld [vmem:[%s6385_s24 + $0xc0] sm:$0xff] }
  0x1c   : > { %1283 = vmatpush1.bf16.msra.mxu1 %v5994_v38  ;;  %v6008_v56 = vld [vmem:[%s6427_s15 + $0x24] ss:$8 sps:$4 sm:$0xff]   ;;  %v6006_v58 = vld [vmem:[%s6427_s15 + $0x20] ss:$8 sps:$4 sm:$0xff]   ;;  %v546_v60 = vpack.c.bf16 %v519_v55, %v518_v54  ;;  %v6009_v63 = vld [vmem:[%s6427_s15 + $0x10] ss:$8 sps:$4 sm:$0xff]  }
  0x1d   : > { %1284 = vmatprep.subr.bf16.mxu1 %v5999_v40  ;;  %v535_v62 = vld [vmem:[%s6385_s24 + $0xc8] sm:$0xff]  ;;  %v520_v1 = vld [vmem:[%s6385_s24 + $0x50] sm:$0xff]  ;;  %v521_v2 = vld [vmem:[%s6385_s24 + $0x58] sm:$0xff] }
  0x1e   : > { %5177 = vmatmul.mubr.msk.bf16.gmra.mxu0 %vm678_vm0, %v543_v29  ;;  %v6014_v0 = vld [vmem:[%s6427_s15 + $0x4] ss:$8 sps:$4 sm:$0xff]   ;;  %v554_v4 = vpack.c.bf16 %v535_v62, %v534_v61  ;;  %v6012_v5 = vld [vmem:[%s6427_s15] ss:$8 sps:$4 sm:$0xff]   ;;  %v6017_v7 = vld [vmem:[%s6427_s15 + $0xf4] ss:$8 sps:$4 sm:$0xff]   ;;  %v547_v8 = vpack.c.bf16 %v521_v2, %v520_v1 }
  0x1f   : > { %779 = vmatprep.mubr.bf16.mxu0 %v6291_v3  ;;  %5185 = vmatmul.mubr.msk.bf16.gmra.mxu1 %vm678_vm0, %v551_v36  ;;  %v536_v9 = vld [vmem:[%s6385_s24 + $0xd0] sm:$0xff]  ;;  %v537_v10 = vld [vmem:[%s6385_s24 + $0xd8] sm:$0xff]  ;;  %v6020_v12 = vld [vmem:[%s6427_s15 + $0xe4] ss:$8 sps:$4 sm:$0xff]  }
  0x20   : > { %859 = vmatprep.mubr.bf16.mxu1 %v6291_v3  ;;  %1285 = vmatpush1.bf16.msra.mxu1 %v5997_v43  ;;  %v6015_v11 = vld [vmem:[%s6427_s15 + $0xf0] ss:$8 sps:$4 sm:$0xff]   ;;  %v522_v13 = vld [vmem:[%s6385_s24 + $0x60] sm:$0xff]  ;;  %v523_v14 = vld [vmem:[%s6385_s24 + $0x68] sm:$0xff]  ;;  %v555_v15 = vpack.c.bf16 %v537_v10, %v536_v9 }
  0x21   : > { %1286 = vmatprep.subr.bf16.mxu1 %v6002_v44  ;;  %v6018_v24 = vld [vmem:[%s6427_s15 + $0xe0] ss:$8 sps:$4 sm:$0xff]   ;;  %v6023_v25 = vld [vmem:[%s6427_s15 + $0xd4] ss:$8 sps:$4 sm:$0xff]   ;;  %v548_v26 = vpack.c.bf16 %v523_v14, %v522_v13  ;;  %v6021_v29 = vld [vmem:[%s6427_s15 + $0xd0] ss:$8 sps:$4 sm:$0xff]  }
  0x22   : > { %v538_v27 = vld [vmem:[%s6385_s24 + $0xe0] sm:$0xff]  ;;  %v539_v28 = vld [vmem:[%s6385_s24 + $0xe8] sm:$0xff]  ;;  %v524_v31 = vld [vmem:[%s6385_s24 + $0x70] sm:$0xff] }
  0x23   : > { %v6026_v30 = vld [vmem:[%s6427_s15 + $0xc4] ss:$8 sps:$4 sm:$0xff]   ;;  %v525_v32 = vld [vmem:[%s6385_s24 + $0x78] sm:$0xff]  ;;  %v556_v33 = vpack.c.bf16 %v539_v28, %v538_v27  ;;  %v6024_v34 = vld [vmem:[%s6427_s15 + $0xc0] ss:$8 sps:$4 sm:$0xff]  }
  0x24   : > { %1287 = vmatpush1.bf16.msra.mxu1 %v6000_v48  ;;  %v6029_v35 = vld [vmem:[%s6427_s15 + $0xb4] ss:$8 sps:$4 sm:$0xff]   ;;  %v549_v36 = vpack.c.bf16 %v525_v32, %v524_v31  ;;  %v6032_v41 = vld [vmem:[%s6427_s15 + $0xa4] ss:$8 sps:$4 sm:$0xff]   ;;  %v6030_v42 = vld [vmem:[%s6427_s15 + $0xa0] ss:$8 sps:$4 sm:$0xff]  }
  0x25   : > { %1288 = vmatprep.subr.bf16.mxu1 %v6005_v50  ;;  %v540_v37 = vld [vmem:[%s6385_s24 + $0xf0] sm:$0xff]  ;;  %v541_v38 = vld [vmem:[%s6385_s24 + $0xf8] sm:$0xff]  ;;  %v6038_v45 = vld [vmem:[%s6427_s15 + $0x84] ss:$8 sps:$4 sm:$0xff]  }
  0x26   : > { %5178 = vmatmul.mubr.msk.bf16.gmra.mxu0 %vm678_vm0, %v544_v39  ;;  %v6027_v39 = vld [vmem:[%s6427_s15 + $0xb0] ss:$8 sps:$4 sm:$0xff]   ;;  %v557_v40 = vpack.c.bf16 %v541_v38, %v540_v37  ;;  %v6035_v43 = vld [vmem:[%s6427_s15 + $0x94] ss:$8 sps:$4 sm:$0xff]   ;;  %v6036_v46 = vld [vmem:[%s6427_s15 + $0x80] ss:$8 sps:$4 sm:$0xff]  }
  0x27   : > { %789 = vmatprep.mubr.bf16.mxu0 %v6291_v3  ;;  %5186 = vmatmul.mubr.msk.bf16.gmra.mxu1 %vm678_vm0, %v552_v47  ;;  %v6033_v44 = vld [vmem:[%s6427_s15 + $0x90] ss:$8 sps:$4 sm:$0xff]   ;;  %v562_v47 = vld [vmem:[%s6519_s18] sm:$0xff]  ;;  %v563_v48 = vld [vmem:[%s6519_s18 + $0x8] sm:$0xff] }
  0x28   : > { %869 = vmatprep.mubr.bf16.mxu1 %v6291_v3  ;;  %1289 = vmatpush1.bf16.msra.mxu1 %v6003_v53  ;;  %v594_v50 = vunpack.c.l.bf16 %v562_v47  ;;  %v596_v52 = vunpack.c.l.bf16 %v563_v48  ;;  %v597_v55 = vunpack.c.h.bf16 %v563_v48  ;;  %v565_v62 = vld [vmem:[%s6519_s18 + $0x18] sm:$0xff]  ;;  %v6044_v14 = vld [vmem:[%s6427_s15 + $0x164] ss:$8 sps:$4 sm:$0xff]  }
  0x29   : > { %1290 = vmatprep.subr.bf16.mxu1 %v6008_v56  ;;  %v6039_v9 = vld [vmem:[%s6427_s15 + $0x170] ss:$8 sps:$4 sm:$0xff]   ;;  %v6041_v10 = vld [vmem:[%s6427_s15 + $0x174] ss:$8 sps:$4 sm:$0xff]   ;;  %v601_v28 = vunpack.c.h.bf16 %v565_v62  ;;  %v566_v37 = vld [vmem:[%s6519_s18 + $0x20] sm:$0xff] }
  0x2a   : > { %1834 = vmatprep.subr.bf16.mxu0 %v6041_v10 }
  0x2b   : > { %1835 = vmatpush1.bf16.msra.mxu0 %v6039_v9  ;;  %v568_v9 = vld [vmem:[%s6519_s18 + $0x30] sm:$0xff] }
  0x2c   : > { %1291 = vmatpush1.bf16.msra.mxu1 %v6006_v58  ;;  %1836 = vmatprep.subr.bf16.mxu0 %v6044_v14  ;;  %v569_v14 = vld [vmem:[%s6519_s18 + $0x38] sm:$0xff] }
  0x2d   : > { %1292 = vmatprep.subr.bf16.mxu1 %v6011_v59  ;;  %v564_v59 = vld [vmem:[%s6519_s18 + $0x10] sm:$0xff] }
  0x2e   : > { %5179 = vmatmul.mubr.msk.bf16.gmra.mxu0 %vm678_vm0, %v545_v49  ;;  %v595_v49 = vunpack.c.h.bf16 %v562_v47  ;;  %v599_v2 = vunpack.c.h.bf16 %v564_v59  ;;  %v6045_v47 = vld [vmem:[%s6427_s15 + $0x150] ss:$8 sps:$4 sm:$0xff]  }
  0x2f   : > { %799 = vmatprep.mubr.bf16.mxu0 %v6291_v3  ;;  %5187 = vmatmul.mubr.msk.bf16.gmra.mxu1 %vm678_vm0, %v553_v57 }
  0x30   : > { %879 = vmatprep.mubr.bf16.mxu1 %v6291_v3  ;;  %1293 = vmatpush1.bf16.msra.mxu1 %v6009_v63 }
  0x31   : > { %1294 = vmatprep.subr.bf16.mxu1 %v6014_v0 }
  0x34   : > { %1295 = vmatpush1.bf16.msra.mxu1 %v6012_v5 }
  0x35   : > { %1296 = vmatprep.subr.bf16.mxu1 %v6017_v7  ;;  %v598_v7 = vunpack.c.l.bf16 %v564_v59 }
  0x36   : > { %5180 = vmatmul.mubr.msk.bf16.gmra.mxu0 %vm678_vm0, %v546_v60 }
  0x37   : > { %809 = vmatprep.mubr.bf16.mxu0 %v6291_v3  ;;  %5188 = vmatmul.mubr.msk.bf16.gmra.mxu1 %vm678_vm0, %v554_v4 }
  0x38   : > { %889 = vmatprep.mubr.bf16.mxu1 %v6291_v3  ;;  %1297 = vmatpush2.bf16.msra.mxu1 %v6015_v11 }
  0x39   : > { %1298 = vmatprep.subr.bf16.mxu1 %v6020_v12  ;;  %v600_v12 = vunpack.c.l.bf16 %v565_v62 }
  0x3c   : > { %1299 = vmatpush2.bf16.msra.mxu1 %v6018_v24 }
  0x3d   : > { %1300 = vmatprep.subr.bf16.mxu1 %v6023_v25 }
  0x3e   : > { %5181 = vmatmul.mubr.msk.bf16.gmra.mxu0 %vm678_vm0, %v547_v8 }
  0x3f   : > { %819 = vmatprep.mubr.bf16.mxu0 %v6291_v3  ;;  %5189 = vmatmul.mubr.msk.bf16.gmra.mxu1 %vm678_vm0, %v555_v15 }
  0x40   : > { %899 = vmatprep.mubr.bf16.mxu1 %v6291_v3  ;;  %1301 = vmatpush2.bf16.msra.mxu1 %v6021_v29 }
  0x41   : > { %1302 = vmatprep.subr.bf16.mxu1 %v6026_v30  ;;  %v6042_v30 = vld [vmem:[%s6427_s15 + $0x160] ss:$8 sps:$4 sm:$0xff]  }
  0x42   : > { %1837 = vmatpush1.bf16.msra.mxu0 %v6042_v30  ;;  %v606_v30 = vunpack.c.l.bf16 %v568_v9 }
  0x44   : > { %1303 = vmatpush2.bf16.msra.mxu1 %v6024_v34  ;;  %v6047_v34 = vld [vmem:[%s6427_s15 + $0x154] ss:$8 sps:$4 sm:$0xff]  }
  0x45   : > { %1304 = vmatprep.subr.bf16.mxu1 %v6029_v35  ;;  %1838 = vmatprep.subr.bf16.mxu0 %v6047_v34 }
  0x46   : > { %5182 = vmatmul.mubr.msk.bf16.gmra.mxu0 %vm678_vm0, %v548_v26 }
  0x47   : > { %829 = vmatprep.mubr.bf16.mxu0 %v6291_v3  ;;  %5190 = vmatmul.mubr.msk.bf16.gmra.mxu1 %vm678_vm0, %v556_v33 }
  0x48   : > { %909 = vmatprep.mubr.bf16.mxu1 %v6291_v3  ;;  %1305 = vmatpush2.bf16.msra.mxu1 %v6027_v39 }
  0x49   : > { %1306 = vmatprep.subr.bf16.mxu1 %v6032_v41  ;;  %v567_v41 = vld [vmem:[%s6519_s18 + $0x28] sm:$0xff]  ;;  %1839 = vmatpush1.bf16.msra.mxu0 %v6045_v47 }
  0x4c   : > { %1307 = vmatpush2.bf16.msra.mxu1 %v6030_v42 }
  0x4d   : > { %1308 = vmatprep.subr.bf16.mxu1 %v6035_v43 }
  0x4e   : > { %5183 = vmatmul.mubr.msk.bf16.gmra.mxu0 %vm678_vm0, %v549_v36 }
  0x4f   : > { %5191 = vmatmul.mubr.msk.bf16.gmra.mxu1 %vm678_vm0, %v557_v40 }
  0x50   : > { %1309 = vmatpush2.bf16.msra.mxu1 %v6033_v44 }
  0x51   : > { %1310 = vmatprep.subr.bf16.mxu1 %v6038_v45  ;;  %v603_v45 = vunpack.c.h.bf16 %v566_v37 }
  0x54   : > { %1311 = vmatpush2.bf16.msra.mxu1 %v6036_v46 }
  0xd6   : > { %v761_v51 = vpop.f32.mrf.mxu0 }
  0xd7   : > { %v762_v56 = vadd.f32 %v761_v51, %v594_v50  ;;  %v6524_v60 = vpop.f32.mrf.mxu1  ;;  %v6050_v51 = vld [vmem:[%s6427_s15 + $0x144] ss:$8 sps:$4 sm:$0xff]  }
  0xd8   : > { %v763_v53 = vpop.f32.mrf.mxu0  ;;  %1840 = vmatprep.subr.bf16.mxu0 %v6050_v51 }
  0xd9   : > { %v764_v54 = vadd.f32 %v763_v53, %v595_v49  ;;  %v6527_v4 = vpop.f32.mrf.mxu1  ;;  %v920_v5 = vmul.f32 0.2, %v762_v56  ;;  %v602_v49 = vunpack.c.l.bf16 %v566_v37  ;;  %v604_v53 = vunpack.c.l.bf16 %v567_v41 }
  0xda   : > { %v765_v57 = vpop.f32.mrf.mxu0 }
  0xdb   : > { %v766_v58 = vadd.f32 %v765_v57, %v596_v52  ;;  %v921_v63 = vmul.f32 0.2, %v764_v54  ;;  %v6531_v13 = vpop.f32.mrf.mxu1  ;;  %v984_v31 = vmax.f32 %v762_v56, %v920_v5  ;;  %v6053_v5 = vld [vmem:[%s6427_s15 + $0x134] ss:$8 sps:$4 sm:$0xff]  }
  0xdc   : > { %v767_v61 = vpop.f32.mrf.mxu0 }
  0xdd   : > { %v922_v0 = vmul.f32 0.2, %v766_v58  ;;  %v768_v1 = vadd.f32 %v767_v61, %v597_v55  ;;  %v985_v25 = vmax.f32 %v764_v54, %v921_v63  ;;  %v6534_v29 = vpop.f32.mrf.mxu1  ;;  %v605_v61 = vunpack.c.h.bf16 %v567_v41  ;;  %v6048_v63 = vld [vmem:[%s6427_s15 + $0x140] ss:$8 sps:$4 sm:$0xff]  }
  0xde   : > { %v771_v8 = vpop.f32.mrf.mxu0  ;;  %1841 = vmatpush1.bf16.msra.mxu0 %v6048_v63  ;;  %v6057_v63 = vld [vmem:[%s6427_s15 + $0x110] ss:$8 sps:$4 sm:$0xff]  }
  0xdf   : > { %v923_v11 = vmul.f32 0.2, %v768_v1  ;;  %v986_v15 = vmax.f32 %v766_v58, %v922_v0  ;;  %v772_v32 = vadd.f32 %v771_v8, %v598_v7  ;;  %v6539_v38 = vpop.f32.mrf.mxu1  ;;  %1842 = vmatprep.subr.bf16.mxu0 %v6053_v5 }
  0xe0   : > { %v773_v24 = vpop.f32.mrf.mxu0 }
  0xe1   : > { %v987_v26 = vmax.f32 %v768_v1, %v923_v11  ;;  %v774_v27 = vadd.f32 %v773_v24, %v599_v2  ;;  %v1048_v39 = vpack.c.bf16 %v986_v15, %v984_v31  ;;  %v6542_v46 = vpop.f32.mrf.mxu1  ;;  %v924_v48 = vmul.f32 0.2, %v772_v32 }
  0xe2   : > { %v775_v33 = vpop.f32.mrf.mxu0 }
  0xe3   : > { %v776_v35 = vadd.f32 %v775_v33, %v600_v12  ;;  %v1049_v36 = vpack.c.bf16 %v987_v26, %v985_v25  ;;  %v925_v42 = vmul.f32 0.2, %v774_v27  ;;  %v6546_v54 = vpop.f32.mrf.mxu1  ;;  %v988_v0 = vmax.f32 %v772_v32, %v924_v48  ;;  %v6056_v33 = vld [vmem:[%s6427_s15 + $0x124] ss:$8 sps:$4 sm:$0xff]  }
  0xe4   : > { %v777_v40 = vpop.f32.mrf.mxu0  ;;  %v607_v26 = vunpack.c.h.bf16 %v568_v9 }
  0xe5   : > { %v926_v43 = vmul.f32 0.2, %v776_v35  ;;  %v778_v44 = vadd.f32 %v777_v40, %v601_v28  ;;  %1312 = vmatprep.mubr.bf16.mxu1 %v1049_v36  ;;  %v989_v57 = vmax.f32 %v774_v27, %v925_v42  ;;  %v6548_v62 = vpop.f32.mrf.mxu1  ;;  %v6051_v27 = vld [vmem:[%s6427_s15 + $0x130] ss:$8 sps:$4 sm:$0xff]   ;;  %v609_v42 = vunpack.c.h.bf16 %v569_v14 }
  0xe6   : > { %v781_v50 = vpop.f32.mrf.mxu0  ;;  %1313 = vmatmul.mubr.bf16.vlgmr.msra.gmra.mxu1 %v1048_v39  ;;  %1843 = vmatpush1.bf16.msra.mxu0 %v6051_v27 }
  0xe7   : > { %v927_v52 = vmul.f32 0.2, %v778_v44  ;;  %v990_v55 = vmax.f32 %v776_v35, %v926_v43  ;;  %v782_v1 = vadd.f32 %v781_v50, %v602_v49  ;;  %v6553_v10 = vpop.f32.mrf.mxu1  ;;  %v608_v35 = vunpack.c.l.bf16 %v569_v14  ;;  %v6054_v43 = vld [vmem:[%s6427_s15 + $0x120] ss:$8 sps:$4 sm:$0xff]   ;;  %1844 = vmatprep.subr.bf16.mxu0 %v6056_v33  ;;  %v6059_v49 = vld [vmem:[%s6427_s15 + $0x114] ss:$8 sps:$4 sm:$0xff]  }
  0xe8   : > { %v783_v56 = vpop.f32.mrf.mxu0  ;;  %v6065_v33 = vld [vmem:[%s6427_s15 + $0x1f4] ss:$8 sps:$4 sm:$0xff]  }
  0xe9   : > { %v991_v58 = vmax.f32 %v778_v44, %v927_v52  ;;  %v784_v59 = vadd.f32 %v783_v56, %v603_v45  ;;  %v1050_v12 = vpack.c.bf16 %v990_v55, %v988_v0  ;;  %v928_v28 = vmul.f32 0.2, %v782_v1  ;;  %v6557_v32 = vpop.f32.mrf.mxu1  ;;  %v570_v52 = vld [vmem:[%s6519_s18 + $0x40] sm:$0xff]  ;;  %v571_v56 = vld [vmem:[%s6519_s18 + $0x48] sm:$0xff] }
  0xea   : > { %v785_v2 = vpop.f32.mrf.mxu0  ;;  %1845 = vmatpush1.bf16.msra.mxu0 %v6054_v43  ;;  %v612_v9 = vunpack.c.l.bf16 %v571_v56 }
  0xeb   : > { %v786_v7 = vadd.f32 %v785_v2, %v604_v53  ;;  %v1051_v8 = vpack.c.bf16 %v991_v58, %v989_v57  ;;  %v929_v15 = vmul.f32 0.2, %v784_v59  ;;  %v992_v44 = vmax.f32 %v782_v1, %v928_v28  ;;  %v6561_v48 = vpop.f32.mrf.mxu1  ;;  %1846 = vmatprep.subr.bf16.mxu0 %v6059_v49 }
  0xec   : > { %v787_v11 = vpop.f32.mrf.mxu0  ;;  %v610_v1 = vunpack.c.l.bf16 %v570_v52 }
  0xed   : > { %v930_v24 = vmul.f32 0.2, %v786_v7  ;;  %v788_v25 = vadd.f32 %v787_v11, %v605_v61  ;;  %1322 = vmatprep.mubr.bf16.mxu1 %v1051_v8  ;;  %v993_v39 = vmax.f32 %v784_v59, %v929_v15  ;;  %v611_v61 = vunpack.c.h.bf16 %v570_v52  ;;  %v6567_v5 = vpop.f32.mrf.mxu1  ;;  %v6068_v52 = vld [vmem:[%s6427_s15 + $0x1e4] ss:$8 sps:$4 sm:$0xff]  }
  0xee   : > { %v791_v31 = vpop.f32.mrf.mxu0  ;;  %1323 = vmatmul.mubr.bf16.gmra.mxu1 %v1050_v12  ;;  %1847 = vmatpush1.bf16.msra.mxu0 %v6057_v63 }
  0xef   : > { %v931_v34 = vmul.f32 0.2, %v788_v25  ;;  %v994_v36 = vmax.f32 %v786_v7, %v930_v24  ;;  %v792_v45 = vadd.f32 %v791_v31, %v606_v30  ;;  %v6062_v7 = vld [vmem:[%s6427_s15 + $0x104] ss:$8 sps:$4 sm:$0xff]   ;;  %v6571_v31 = vpop.f32.mrf.mxu1 }
  0xf0   : > { %v793_v37 = vpop.f32.mrf.mxu0  ;;  %1848 = vmatprep.subr.bf16.mxu0 %v6062_v7 }
  0xf1   : > { %v995_v40 = vmax.f32 %v788_v25, %v931_v34  ;;  %v794_v41 = vadd.f32 %v793_v37, %v607_v26  ;;  %v1052_v55 = vpack.c.bf16 %v994_v36, %v992_v44  ;;  %v932_v0 = vmul.f32 0.2, %v792_v45  ;;  %v6060_v26 = vld [vmem:[%s6427_s15 + $0x100] ss:$8 sps:$4 sm:$0xff]   ;;  %v572_v36 = vld [vmem:[%s6519_s18 + $0x50] sm:$0xff] }
  0xf2   : > { %v795_v47 = vpop.f32.mrf.mxu0  ;;  %v613_v25 = vunpack.c.h.bf16 %v571_v56  ;;  %v615_v44 = vunpack.c.h.bf16 %v572_v36  ;;  %1849 = vmatpush1.bf16.msra.mxu0 %v6060_v26  ;;  %v614_v49 = vunpack.c.l.bf16 %v572_v36 }
  0xf3   : > { %v796_v50 = vadd.f32 %v795_v47, %v608_v35  ;;  %v1053_v51 = vpack.c.bf16 %v995_v40, %v993_v39  ;;  %v933_v57 = vmul.f32 0.2, %v794_v41  ;;  %v996_v27 = vmax.f32 %v792_v45, %v932_v0  ;;  %v573_v40 = vld [vmem:[%s6519_s18 + $0x58] sm:$0xff]  ;;  %1850 = vmatprep.subr.bf16.mxu0 %v6065_v33  ;;  %v6066_v0 = vld [vmem:[%s6427_s15 + $0x1e0] ss:$8 sps:$4 sm:$0xff]  }
  0xf4   : > { %v797_v53 = vpop.f32.mrf.mxu0  ;;  %v6063_v45 = vld [vmem:[%s6427_s15 + $0x1f0] ss:$8 sps:$4 sm:$0xff]   ;;  %v617_v63 = vunpack.c.h.bf16 %v573_v40 }
  0xf5   : > { %v934_v58 = vmul.f32 0.2, %v796_v50  ;;  %v798_v59 = vadd.f32 %v797_v53, %v609_v42  ;;  %1332 = vmatprep.mubr.bf16.mxu1 %v1053_v51  ;;  %v997_v14 = vmax.f32 %v794_v41, %v933_v57  ;;  %v6577_v51 = vpop.f32.mrf.mxu1 }
  0xf6   : > { %v801_v2 = vpop.f32.mrf.mxu0  ;;  %1333 = vmatmul.mubr.bf16.gmra.mxu1 %v1052_v55  ;;  %v616_v55 = vunpack.c.l.bf16 %v573_v40  ;;  %1851 = vmatpush2.bf16.msra.mxu0 %v6063_v45 }
  0xf7   : > { %v935_v8 = vmul.f32 0.2, %v798_v59  ;;  %v998_v11 = vmax.f32 %v796_v50, %v934_v58  ;;  %v802_v28 = vadd.f32 %v801_v2, %v610_v1  ;;  %1852 = vmatprep.subr.bf16.mxu0 %v6068_v52  ;;  %v6594_v52 = vld [vmem:[%s6519_s18 + $0x88] sm:$0xff] }
  0xf8   : > { %v803_v12 = vpop.f32.mrf.mxu0 }
  0xf9   : > { %v999_v15 = vmax.f32 %v798_v59, %v935_v8  ;;  %v804_v24 = vadd.f32 %v803_v12, %v611_v61  ;;  %v1054_v39 = vpack.c.bf16 %v998_v11, %v996_v27  ;;  %v936_v47 = vmul.f32 0.2, %v802_v28  ;;  %v6581_v8 = vpop.f32.mrf.mxu1 }
  0xfa   : > { %v805_v30 = vpop.f32.mrf.mxu0  ;;  %1853 = vmatpush2.bf16.msra.mxu0 %v6066_v0  ;;  %v576_v0 = vld [vmem:[%s6519_s18 + $0x70] sm:$0xff] }
  0xfb   : > { %v806_v34 = vadd.f32 %v805_v30, %v612_v9  ;;  %v1055_v35 = vpack.c.bf16 %v999_v15, %v997_v14  ;;  %v937_v41 = vmul.f32 0.2, %v804_v24  ;;  %v1000_v1 = vmax.f32 %v802_v28, %v936_v47  ;;  %v6071_v9 = vld [vmem:[%s6427_s15 + $0x1d4] ss:$8 sps:$4 sm:$0xff]   ;;  %v574_v14 = vld [vmem:[%s6519_s18 + $0x60] sm:$0xff] }
  0xfc   : > { %v807_v37 = vpop.f32.mrf.mxu0  ;;  %v619_v33 = vunpack.c.h.bf16 %v574_v14  ;;  %v6069_v28 = vld [vmem:[%s6427_s15 + $0x1d0] ss:$8 sps:$4 sm:$0xff]   ;;  %1854 = vmatprep.subr.bf16.mxu0 %v6071_v9 }
  0xfd   : > { %v938_v42 = vmul.f32 0.2, %v806_v34  ;;  %v808_v43 = vadd.f32 %v807_v37, %v613_v25  ;;  %1342 = vmatprep.mubr.bf16.mxu1 %v1055_v35  ;;  %v1001_v58 = vmax.f32 %v804_v24, %v937_v41  ;;  %v575_v25 = vld [vmem:[%s6519_s18 + $0x68] sm:$0xff]  ;;  %v618_v35 = vunpack.c.l.bf16 %v574_v14  ;;  %v6587_v37 = vpop.f32.mrf.mxu1 }
  0xfe   : > { %v811_v50 = vpop.f32.mrf.mxu0  ;;  %1343 = vmatmul.mubr.bf16.gmra.mxu1 %v1054_v39  ;;  %v6074_v39 = vld [vmem:[%s6427_s15 + $0x1c4] ss:$8 sps:$4 sm:$0xff]   ;;  %v620_v41 = vunpack.c.l.bf16 %v575_v25  ;;  %1855 = vmatpush2.bf16.msra.mxu0 %v6069_v28 }
  0xff   : > { %v939_v53 = vmul.f32 0.2, %v808_v43  ;;  %v1002_v56 = vmax.f32 %v806_v34, %v938_v42  ;;  %v812_v2 = vadd.f32 %v811_v50, %v614_v49  ;;  %v621_v49 = vunpack.c.h.bf16 %v575_v25  ;;  %v6591_v50 = vld [vmem:[%s6519_s18 + $0x80] sm:$0xff]  ;;  %1856 = vmatprep.subr.bf16.mxu0 %v6074_v39  ;;  %v6075_v25 = vld [vmem:[%s6427_s15 + $0x1b0] ss:$8 sps:$4 sm:$0xff]  }
 0x100   : > { %v813_v57 = vpop.f32.mrf.mxu0  ;;  %v627_v9 = vunpack.c.h.bf16 %v6591_v50 }
 0x101   : > { %v1003_v59 = vmax.f32 %v808_v43, %v939_v53  ;;  %v814_v61 = vadd.f32 %v813_v57, %v615_v44  ;;  %v1056_v24 = vpack.c.bf16 %v1002_v56, %v1000_v1  ;;  %v940_v34 = vmul.f32 0.2, %v812_v2  ;;  %v6072_v53 = vld [vmem:[%s6427_s15 + $0x1c0] ss:$8 sps:$4 sm:$0xff]  }
 0x102   : > { %v815_v7 = vpop.f32.mrf.mxu0  ;;  %1857 = vmatpush2.bf16.msra.mxu0 %v6072_v53  ;;  %v844_v39 = vadd.f32 %v6527_v4, %v627_v9 }
 0x103   : > { %v816_v11 = vadd.f32 %v815_v7, %v616_v55  ;;  %v1057_v12 = vpack.c.bf16 %v1003_v59, %v1001_v58  ;;  %v941_v26 = vmul.f32 0.2, %v814_v61  ;;  %v1004_v55 = vmax.f32 %v812_v2, %v940_v34  ;;  %v6597_v58 = vpop.f32.mrf.mxu1  ;;  %v6077_v59 = vld [vmem:[%s6427_s15 + $0x1b4] ss:$8 sps:$4 sm:$0xff]  }
 0x104   : > { %v817_v15 = vpop.f32.mrf.mxu0  ;;  %1858 = vmatprep.subr.bf16.mxu0 %v6077_v59 }
 0x105   : > { %v942_v27 = vmul.f32 0.2, %v816_v11  ;;  %v818_v30 = vadd.f32 %v817_v15, %v617_v63  ;;  %1352 = vmatprep.mubr.bf16.mxu1 %v1057_v12  ;;  %v1005_v44 = vmax.f32 %v814_v61, %v941_v26  ;;  %v629_v12 = vunpack.c.h.bf16 %v6594_v52 }
 0x106   : > { %v821_v36 = vpop.f32.mrf.mxu0  ;;  %1353 = vmatmul.mubr.bf16.gmra.mxu1 %v1056_v24  ;;  %v623_v24 = vunpack.c.h.bf16 %v576_v0  ;;  %1859 = vmatpush2.bf16.msra.mxu0 %v6075_v25 }
 0x107   : > { %v943_v40 = vmul.f32 0.2, %v818_v30  ;;  %v1006_v42 = vmax.f32 %v816_v11, %v942_v27  ;;  %v822_v56 = vadd.f32 %v821_v36, %v618_v35  ;;  %v577_v11 = vld [vmem:[%s6519_s18 + $0x78] sm:$0xff]  ;;  %v622_v27 = vunpack.c.l.bf16 %v576_v0 }
 0x108   : > { %v823_v43 = vpop.f32.mrf.mxu0  ;;  %v624_v34 = vunpack.c.l.bf16 %v577_v11  ;;  %v628_v0 = vunpack.c.l.bf16 %v6594_v52 }
 0x109   : > { %v1007_v45 = vmax.f32 %v818_v30, %v943_v40  ;;  %v824_v47 = vadd.f32 %v823_v43, %v619_v33  ;;  %v1058_v7 = vpack.c.bf16 %v1006_v42, %v1004_v55  ;;  %v944_v26 = vmul.f32 0.2, %v822_v56  ;;  %v6605_v33 = vpop.f32.mrf.mxu1 }
 0x10a   : > { %v825_v57 = vpop.f32.mrf.mxu0  ;;  %v848_v40 = vadd.f32 %v6534_v29, %v629_v12 }
 0x10b   : > { %v826_v61 = vadd.f32 %v825_v57, %v620_v41  ;;  %v1059_v63 = vpack.c.bf16 %v1007_v45, %v1005_v44  ;;  %v945_v14 = vmul.f32 0.2, %v824_v47  ;;  %v625_v44 = vunpack.c.h.bf16 %v577_v11  ;;  %v580_v45 = vld [vmem:[%s6519_s18 + $0x90] sm:$0xff]  ;;  %v581_v57 = vld [vmem:[%s6519_s18 + $0x98] sm:$0xff]  ;;  %v6611_v59 = vpop.f32.mrf.mxu1 }
 0x10c   : > { %v827_v1 = vpop.f32.mrf.mxu0  ;;  %v631_v9 = vunpack.c.h.bf16 %v580_v45 }
 0x10d   : > { %v946_v15 = vmul.f32 0.2, %v826_v61  ;;  %v828_v2 = vadd.f32 %v827_v1, %v621_v49  ;;  %1362 = vmatprep.mubr.bf16.mxu1 %v1059_v63  ;;  %v1009_v41 = vmax.f32 %v824_v47, %v945_v14  ;;  %v1008_v49 = vmax.f32 %v822_v56, %v944_v26 }
 0x10e   : > { %v831_v30 = vpop.f32.mrf.mxu0  ;;  %1363 = vmatmul.mubr.bf16.gmra.mxu1 %v1058_v7  ;;  %v626_v63 = vunpack.c.l.bf16 %v6591_v50  ;;  %v953_v1 = vmul.f32 0.2, %v844_v39  ;;  %v955_v47 = vmul.f32 0.2, %v848_v40  ;;  %v633_v56 = vunpack.c.h.bf16 %v581_v57 }
 0x10f   : > { %v947_v28 = vmul.f32 0.2, %v828_v2  ;;  %v1010_v35 = vmax.f32 %v826_v61, %v946_v15  ;;  %v832_v53 = vadd.f32 %v831_v30, %v622_v27  ;;  %v846_v26 = vadd.f32 %v6531_v13, %v628_v0 }
 0x110   : > { %v833_v36 = vpop.f32.mrf.mxu0  ;;  %v842_v50 = vadd.f32 %v6524_v60, %v626_v63  ;;  %v1019_v27 = vmax.f32 %v848_v40, %v955_v47 }
 0x111   : > { %v1011_v42 = vmax.f32 %v828_v2, %v947_v28  ;;  %v834_v43 = vadd.f32 %v833_v36, %v623_v24  ;;  %v1060_v7 = vpack.c.bf16 %v1010_v35, %v1008_v49  ;;  %v948_v15 = vmul.f32 0.2, %v832_v53  ;;  %v6615_v2 = vpop.f32.mrf.mxu1  ;;  %v582_v36 = vld [vmem:[%s6519_s18 + $0xa0] sm:$0xff] }
 0x112   : > { %v835_v55 = vpop.f32.mrf.mxu0  ;;  %v1017_v24 = vmax.f32 %v844_v39, %v953_v1  ;;  %v858_v35 = vadd.f32 %v6548_v62, %v633_v56  ;;  %v630_v49 = vunpack.c.l.bf16 %v580_v45  ;;  %v952_v63 = vmul.f32 0.2, %v842_v50 }
 0x113   : > { %v836_v61 = vadd.f32 %v835_v55, %v624_v34  ;;  %v1061_v4 = vpack.c.bf16 %v1011_v42, %v1009_v41  ;;  %v949_v11 = vmul.f32 0.2, %v834_v43  ;;  %v854_v34 = vadd.f32 %v6542_v46, %v631_v9  ;;  %v583_v42 = vld [vmem:[%s6519_s18 + $0xa8] sm:$0xff]  ;;  %v584_v9 = vld [vmem:[%s6519_s18 + $0xb0] sm:$0xff] }
 0x114   : > { %v837_v29 = vpop.f32.mrf.mxu0  ;;  %v1012_v41 = vmax.f32 %v832_v53, %v948_v15  ;;  %v632_v55 = vunpack.c.l.bf16 %v581_v57  ;;  %v954_v39 = vmul.f32 0.2, %v846_v26  ;;  %v959_v40 = vmul.f32 0.2, %v858_v35 }
 0x115   : > { %v950_v12 = vmul.f32 0.2, %v836_v61  ;;  %v838_v14 = vadd.f32 %v837_v29, %v625_v44  ;;  %1372 = vmatprep.mubr.bf16.mxu1 %v1061_v4  ;;  %v1013_v30 = vmax.f32 %v834_v43, %v949_v11  ;;  %v6623_v44 = vpop.f32.mrf.mxu1  ;;  %v635_v4 = vunpack.c.h.bf16 %v582_v36  ;;  %v585_v11 = vld [vmem:[%s6519_s18 + $0xb8] sm:$0xff] }
 0x116   : > { %1373 = vmatmul.mubr.bf16.gmra.mxu1 %v1060_v7  ;;  %v957_v13 = vmul.f32 0.2, %v854_v34  ;;  %v1065_v46 = vpack.c.bf16 %v1019_v27, %v1017_v24  ;;  %v637_v43 = vunpack.c.h.bf16 %v583_v42  ;;  %v1016_v53 = vmax.f32 %v842_v50, %v952_v63 }
 0x117   : > { %v951_v52 = vmul.f32 0.2, %v838_v14  ;;  %v1014_v25 = vmax.f32 %v836_v61, %v950_v12  ;;  %v6625_v62 = vpop.f32.mrf.mxu1  ;;  %v1018_v0 = vmax.f32 %v846_v26, %v954_v39  ;;  %v852_v45 = vadd.f32 %v6539_v38, %v630_v49  ;;  %v586_v49 = vld [vmem:[%s6519_s18 + $0xc0] sm:$0xff] }
 0x118   : > { %v856_v57 = vadd.f32 %v6546_v54, %v632_v55  ;;  %v1021_v1 = vmax.f32 %v854_v34, %v957_v13  ;;  %v1023_v29 = vmax.f32 %v858_v35, %v959_v40  ;;  %v864_v47 = vadd.f32 %v6557_v32, %v635_v4  ;;  %v6080_v34 = vld [vmem:[%s6427_s15 + $0x1a4] ss:$8 sps:$4 sm:$0xff]   ;;  %v6078_v55 = vld [vmem:[%s6427_s15 + $0x1a0] ss:$8 sps:$4 sm:$0xff]   ;;  %v6083_v40 = vld [vmem:[%s6427_s15 + $0x194] ss:$8 sps:$4 sm:$0xff]  }
 0x119   : > { %v1015_v28 = vmax.f32 %v838_v14, %v951_v52  ;;  %v1062_v61 = vpack.c.bf16 %v1014_v25, %v1012_v41  ;;  %v868_v7 = vadd.f32 %v6567_v5, %v637_v43  ;;  %v6633_v12 = vpop.f32.mrf.mxu1  ;;  %v634_v14 = vunpack.c.l.bf16 %v582_v36  ;;  %1860 = vmatprep.subr.bf16.mxu0 %v6080_v34 }
 0x11a   : > { %v636_v56 = vunpack.c.l.bf16 %v583_v42  ;;  %v956_v15 = vmul.f32 0.2, %v852_v45  ;;  %v958_v50 = vmul.f32 0.2, %v856_v57  ;;  %v1064_v52 = vpack.c.bf16 %v1018_v0, %v1016_v53  ;;  %1861 = vmatpush2.bf16.msra.mxu0 %v6078_v55  ;;  %v6081_v53 = vld [vmem:[%s6427_s15 + $0x190] ss:$8 sps:$4 sm:$0xff]  }
 0x11b   : > { %v1063_v60 = vpack.c.bf16 %v1015_v28, %v1013_v30  ;;  %v639_v24 = vunpack.c.h.bf16 %v584_v9  ;;  %v961_v38 = vmul.f32 0.2, %v864_v47  ;;  %v963_v54 = vmul.f32 0.2, %v868_v7  ;;  %v6635_v5 = vpop.f32.mrf.mxu1  ;;  %1862 = vmatprep.subr.bf16.mxu0 %v6083_v40  ;;  %v590_v55 = vld [vmem:[%s6519_s18 + $0xe0] sm:$0xff] }
 0x11c   : > { %v1067_v25 = vpack.c.bf16 %v1023_v29, %v1021_v1  ;;  %v641_v32 = vunpack.c.h.bf16 %v585_v11  ;;  %v1020_v26 = vmax.f32 %v852_v45, %v956_v15  ;;  %v1022_v27 = vmax.f32 %v856_v57, %v958_v50  ;;  %v6084_v15 = vld [vmem:[%s6427_s15 + $0x180] ss:$8 sps:$4 sm:$0xff]   ;;  %v589_v50 = vld [vmem:[%s6519_s18 + $0xd8] sm:$0xff] }
 0x11d   : > { %1382 = vmatprep.mubr.bf16.mxu1 %v1063_v60  ;;  %v862_v30 = vadd.f32 %v6553_v10, %v634_v14  ;;  %v866_v28 = vadd.f32 %v6561_v48, %v636_v56  ;;  %v1025_v35 = vmax.f32 %v864_v47, %v961_v38  ;;  %v1027_v36 = vmax.f32 %v868_v7, %v963_v54  ;;  %v587_v60 = vld [vmem:[%s6519_s18 + $0xc8] sm:$0xff]  ;;  %v6645_v63 = vpop.f32.mrf.mxu1  ;;  %v588_v56 = vld [vmem:[%s6519_s18 + $0xd0] sm:$0xff] }
 0x11e   : > { %1383 = vmatmul.mubr.bf16.gmra.mxu1 %v1062_v61  ;;  %v874_v41 = vadd.f32 %v6577_v51, %v639_v24  ;;  %v878_v42 = vadd.f32 %v6587_v37, %v641_v32  ;;  %v638_v39 = vunpack.c.l.bf16 %v584_v9  ;;  %v640_v61 = vunpack.c.l.bf16 %v585_v11  ;;  %1863 = vmatpush2.bf16.msra.mxu0 %v6081_v53  ;;  %v6086_v47 = vld [vmem:[%s6427_s15 + $0x184] ss:$8 sps:$4 sm:$0xff]  }
 0x11f   : > { %1392 = vmatprep.mubr.bf16.mxu1 %v1065_v46  ;;  %v960_v10 = vmul.f32 0.2, %v862_v30  ;;  %v962_v48 = vmul.f32 0.2, %v866_v28  ;;  %v1066_v4 = vpack.c.bf16 %v1022_v27, %v1020_v26  ;;  %v643_v13 = vunpack.c.h.bf16 %v586_v49  ;;  %v903_v0 = vpop.f32.mrf.mxu1  ;;  %1864 = vmatprep.subr.bf16.mxu0 %v6086_v47  ;;  %v592_v47 = vld [vmem:[%s6519_s18 + $0xf0] sm:$0xff] }
 0x120   : > { %v965_v46 = vmul.f32 0.2, %v874_v41  ;;  %v967_v51 = vmul.f32 0.2, %v878_v42  ;;  %v1069_v43 = vpack.c.bf16 %v1027_v36, %v1025_v35  ;;  %v645_v37 = vunpack.c.h.bf16 %v587_v60 }
 0x121   : > { %v1024_v45 = vmax.f32 %v862_v30, %v960_v10  ;;  %v1026_v57 = vmax.f32 %v866_v28, %v962_v48  ;;  %v872_v1 = vadd.f32 %v6571_v31, %v638_v39  ;;  %v876_v29 = vadd.f32 %v6581_v8, %v640_v61 }
 0x122   : > { %v1029_v7 = vmax.f32 %v874_v41, %v965_v46  ;;  %v1031_v9 = vmax.f32 %v878_v42, %v967_v51  ;;  %v884_v11 = vadd.f32 %v6605_v33, %v643_v13  ;;  %v888_v14 = vadd.f32 %v6615_v2, %v645_v37  ;;  %1865 = vmatpush2.bf16.msra.mxu0 %v6084_v15 }
 0x123   : > { %v642_v24 = vunpack.c.l.bf16 %v586_v49  ;;  %v644_v38 = vunpack.c.l.bf16 %v587_v60  ;;  %v964_v54 = vmul.f32 0.2, %v872_v1  ;;  %v966_v31 = vmul.f32 0.2, %v876_v29  ;;  %v591_v60 = vld [vmem:[%s6519_s18 + $0xe8] sm:$0xff] }
 0x124   : > { %v647_v8 = vunpack.c.h.bf16 %v588_v56  ;;  %v969_v32 = vmul.f32 0.2, %v884_v11  ;;  %v971_v26 = vmul.f32 0.2, %v888_v14  ;;  %v1071_v33 = vpack.c.bf16 %v1031_v9, %v1029_v7  ;;  %v593_v7 = vld [vmem:[%s6519_s18 + $0xf8] sm:$0xff] }
 0x125   : > { %v649_v27 = vunpack.c.h.bf16 %v589_v50  ;;  %v1028_v30 = vmax.f32 %v872_v1, %v964_v54  ;;  %v1030_v28 = vmax.f32 %v876_v29, %v966_v31  ;;  %v882_v34 = vadd.f32 %v6597_v58, %v642_v24 }
 0x126   : > { %1393 = vmatmul.mubr.bf16.gmra.mxu1 %v1064_v52  ;;  %v6657_v52 = vpop.f32.mrf.mxu1  ;;  %v886_v35 = vadd.f32 %v6611_v59, %v644_v38  ;;  %v1033_v36 = vmax.f32 %v884_v11, %v969_v32  ;;  %v1035_v41 = vmax.f32 %v888_v14, %v971_v26  ;;  %v894_v42 = vadd.f32 %v6625_v62, %v647_v8 }
 0x127   : > { %1402 = vmatprep.mubr.bf16.mxu1 %v1067_v25  ;;  %v1068_v25 = vpack.c.bf16 %v1026_v57, %v1024_v45  ;;  %v898_v49 = vadd.f32 %v6635_v5, %v649_v27  ;;  %v646_v61 = vunpack.c.l.bf16 %v588_v56  ;;  %v648_v10 = vunpack.c.l.bf16 %v589_v50 }
 0x128   : > { %v907_v2 = vpop.f32.mrf.mxu1  ;;  %v968_v48 = vmul.f32 0.2, %v882_v34  ;;  %v1070_v13 = vpack.c.bf16 %v1030_v28, %v1028_v30  ;;  %v651_v40 = vunpack.c.h.bf16 %v590_v55  ;;  %v973_v46 = vmul.f32 0.2, %v894_v42 }
 0x129   : > { %v975_v58 = vmul.f32 0.2, %v898_v49  ;;  %v1073_v59 = vpack.c.bf16 %v1035_v41, %v1033_v36  ;;  %v653_v51 = vunpack.c.h.bf16 %v591_v60  ;;  %v892_v37 = vadd.f32 %v6623_v44, %v646_v61 }
 0x12a   : > { %v911_v39 = vpop.f32.mrf.mxu1  ;;  %v1032_v62 = vmax.f32 %v882_v34, %v968_v48  ;;  %v896_v53 = vadd.f32 %v6633_v12, %v648_v10  ;;  %v1037_v45 = vmax.f32 %v894_v42, %v973_v46  ;;  %v904_v1 = vadd.f32 %v903_v0, %v651_v40 }
 0x12b   : > { %v1039_v57 = vmax.f32 %v898_v49, %v975_v58  ;;  %v908_v29 = vadd.f32 %v907_v2, %v653_v51  ;;  %v650_v11 = vunpack.c.l.bf16 %v590_v55  ;;  %v652_v14 = vunpack.c.l.bf16 %v591_v60  ;;  %v6089_v51 = vld [vmem:[%s6427_s15 + $0x274] ss:$8 sps:$4 sm:$0xff]  }
 0x12c   : > { %v972_v56 = vmul.f32 0.2, %v892_v37  ;;  %v974_v15 = vmul.f32 0.2, %v896_v53  ;;  %v655_v24 = vunpack.c.h.bf16 %v592_v47  ;;  %v977_v38 = vmul.f32 0.2, %v904_v1  ;;  %2388 = vmatprep.subr.bf16.mxu1 %v6089_v51 }
 0x12d   : > { %v979_v54 = vmul.f32 0.2, %v908_v29  ;;  %v1075_v31 = vpack.c.bf16 %v1039_v57, %v1037_v45  ;;  %v902_v0 = vadd.f32 %v6645_v63, %v650_v11  ;;  %v906_v32 = vadd.f32 %v6657_v52, %v652_v14  ;;  %v6098_v45 = vld [vmem:[%s6427_s15 + $0x244] ss:$8 sps:$4 sm:$0xff]  }
 0x12e   : > { %1403 = vmatmul.mubr.bf16.gmra.mxu1 %v1066_v4  ;;  %v970_v4 = vmul.f32 0.2, %v886_v35  ;;  %v1036_v12 = vmax.f32 %v892_v37, %v972_v56  ;;  %v1038_v8 = vmax.f32 %v896_v53, %v974_v15  ;;  %v1041_v26 = vmax.f32 %v904_v1, %v977_v38  ;;  %v6095_v37 = vld [vmem:[%s6427_s15 + $0x254] ss:$8 sps:$4 sm:$0xff]   ;;  %v6096_v53 = vld [vmem:[%s6427_s15 + $0x240] ss:$8 sps:$4 sm:$0xff]  }
 0x12f   : > { %1412 = vmatprep.mubr.bf16.mxu1 %v1069_v43  ;;  %v913_v43 = vpop.f32.mrf.mxu1  ;;  %v654_v30 = vunpack.c.l.bf16 %v592_v47  ;;  %v976_v28 = vmul.f32 0.2, %v902_v0  ;;  %v978_v34 = vmul.f32 0.2, %v906_v32  ;;  %v1114_v57 = vsub.s32 0, %v6376_v6  ;;  %v6265_v1 = vld [vmem:[%s6396_s28 + $0x8] sm:$0xff] }
 0x130   : > { %v1034_v5 = vmax.f32 %v886_v35, %v970_v4  ;;  %v914_v27 = vadd.f32 %v913_v43, %v655_v24  ;;  %v656_v35 = vunpack.c.l.bf16 %v593_v7  ;;  %v1074_v36 = vpack.c.bf16 %v1038_v8, %v1036_v12  ;;  %v6090_v43 = vld [vmem:[%s6427_s15 + $0x260] ss:$8 sps:$4 sm:$0xff]   ;;  %v6099_v56 = vld [vmem:[%s6427_s15 + $0x230] ss:$8 sps:$4 sm:$0xff]   ;;  %v6101_v15 = vld [vmem:[%s6427_s15 + $0x234] ss:$8 sps:$4 sm:$0xff]  }
 0x131   : > { %v915_v9 = vpop.f32.mrf.mxu1  ;;  %v1040_v55 = vmax.f32 %v902_v0, %v976_v28  ;;  %v1042_v60 = vmax.f32 %v906_v32, %v978_v34  ;;  %v912_v63 = vadd.f32 %v911_v39, %v654_v30  ;;  %v6087_v39 = vld [vmem:[%s6427_s15 + $0x270] ss:$8 sps:$4 sm:$0xff]   ;;  %v6266_v47 = vld [vmem:[%s6396_s28] sm:$0xff]  ;;  %v6107_v32 = vld [vmem:[%s6427_s15 + $0x214] ss:$8 sps:$4 sm:$0xff]  }
 0x132   : > { %v1072_v50 = vpack.c.bf16 %v1034_v5, %v1032_v62  ;;  %v981_v41 = vmul.f32 0.2, %v914_v27  ;;  %v916_v52 = vadd.f32 %v915_v9, %v656_v35  ;;  %2389 = vmatpush1.bf16.msra.mxu1 %v6087_v39  ;;  %v6092_v62 = vld [vmem:[%s6427_s15 + $0x264] ss:$8 sps:$4 sm:$0xff]   ;;  %v6093_v5 = vld [vmem:[%s6427_s15 + $0x250] ss:$8 sps:$4 sm:$0xff]  }
 0x133   : > { %v917_v44 = vpop.f32.mrf.mxu1  ;;  %v980_v48 = vmul.f32 0.2, %v912_v63  ;;  %2390 = vmatprep.subr.bf16.mxu1 %v6092_v62  ;;  %v6104_v12 = vld [vmem:[%s6427_s15 + $0x224] ss:$8 sps:$4 sm:$0xff]   ;;  %v6111_v39 = vld [vmem:[%s6427_s15 + $0x2f0] ss:$8 sps:$4 sm:$0xff]  }
 0x134   : > { %v1045_v61 = vmax.f32 %v914_v27, %v981_v41  ;;  %v982_v4 = vmul.f32 0.2, %v916_v52  ;;  %v6110_v35 = vld [vmem:[%s6427_s15 + $0x204] ss:$8 sps:$4 sm:$0xff]  }
 0x135   : > { %v1044_v46 = vmax.f32 %v912_v63, %v980_v48 }
 0x136   : > { %1413 = vmatmul.mubr.bf16.gmra.mxu1 %v1068_v25  ;;  %v657_v25 = vunpack.c.h.bf16 %v593_v7  ;;  %v1046_v58 = vmax.f32 %v916_v52, %v982_v4  ;;  %v6684_v7 = vrot.slane %v6266_v47, %v1114_v57  ;;  %v6108_v52 = vld [vmem:[%s6427_s15 + $0x200] ss:$8 sps:$4 sm:$0xff]   ;;  %v6113_v4 = vld [vmem:[%s6427_s15 + $0x2f4] ss:$8 sps:$4 sm:$0xff]  }
 0x137   : > { %1422 = vmatprep.mubr.bf16.mxu1 %v1071_v33  ;;  %v1043_v33 = vmax.f32 %v908_v29, %v979_v54  ;;  %2391 = vmatpush1.bf16.msra.mxu1 %v6090_v43  ;;  %v6681_v29 = vrot.slane %v6265_v1, %v1114_v57 }
 0x138   : > { %v918_v2 = vadd.f32 %v917_v44, %v657_v25  ;;  %2392 = vmatprep.subr.bf16.mxu1 %v6095_v37  ;;  %v6102_v44 = vld [vmem:[%s6427_s15 + $0x220] ss:$8 sps:$4 sm:$0xff]  }
 0x139   : > { %v1077_v49 = vpack.c.bf16 %v1043_v33, %v1041_v26 }
 0x13a   : > { %v983_v42 = vmul.f32 0.2, %v918_v2 }
 0x13b   : > { %2393 = vmatpush1.bf16.msra.mxu1 %v6093_v5  ;;  %v6116_v5 = vld [vmem:[%s6427_s15 + $0x2e4] ss:$8 sps:$4 sm:$0xff]  }
 0x13c   : > { %v1047_v10 = vmax.f32 %v918_v2, %v983_v42  ;;  %2394 = vmatprep.subr.bf16.mxu1 %v6098_v45  ;;  %v6105_v2 = vld [vmem:[%s6427_s15 + $0x210] ss:$8 sps:$4 sm:$0xff]  }
 0x13e   : > { %1423 = vmatmul.mubr.bf16.gmra.mxu1 %v1070_v13  ;;  %v1076_v13 = vpack.c.bf16 %v1042_v60, %v1040_v55  ;;  %v1079_v40 = vpack.c.bf16 %v1047_v10, %v1045_v61 }
 0x13f   : > { %1432 = vmatprep.mubr.bf16.mxu1 %v1073_v59  ;;  %v1078_v59 = vpack.c.bf16 %v1046_v58, %v1044_v46  ;;  %2395 = vmatpush1.bf16.msra.mxu1 %v6096_v53 }
 0x140   : > { %2396 = vmatprep.subr.bf16.mxu1 %v6101_v15 }
 0x143   : > { %2397 = vmatpush1.bf16.msra.mxu1 %v6099_v56 }
 0x144   : > { %2398 = vmatprep.subr.bf16.mxu1 %v6104_v12 }
 0x146   : > { %1433 = vmatmul.mubr.bf16.gmra.mxu1 %v1072_v50 }
 0x147   : > { %1442 = vmatprep.mubr.bf16.mxu1 %v1075_v31  ;;  %2399 = vmatpush1.bf16.msra.mxu1 %v6102_v44 }
 0x148   : > { %2400 = vmatprep.subr.bf16.mxu1 %v6107_v32 }
 0x14b   : > { %2401 = vmatpush1.bf16.msra.mxu1 %v6105_v2 }
 0x14c   : > { %2402 = vmatprep.subr.bf16.mxu1 %v6110_v35 }
 0x14e   : > { %1443 = vmatmul.mubr.bf16.gmra.mxu1 %v1074_v36 }
 0x14f   : > { %1452 = vmatprep.mubr.bf16.mxu1 %v1077_v49  ;;  %2403 = vmatpush1.bf16.msra.mxu1 %v6108_v52 }
 0x150   : > { %2404 = vmatprep.subr.bf16.mxu1 %v6113_v4 }
 0x153   : > { %2405 = vmatpush2.bf16.msra.mxu1 %v6111_v39 }
 0x154   : > { %2406 = vmatprep.subr.bf16.mxu1 %v6116_v5 }
 0x156   : > { %1453 = vmatmul.mubr.bf16.gmra.mxu1 %v1076_v13 }
 0x157   : > { %1462 = vmatprep.mubr.bf16.mxu1 %v1079_v40 }
 0x15e   : > { %1463 = vmatmul.mubr.bf16.gmra.mxu1 %v1078_v59 }
 0x1a6   : > { %v1314_v9 = vpop.f32.mrf.mxu1 }
 0x1a7   : > { %v1315_v50 = vadd.f32 %v1314_v9, %v6684_v7 }
 0x1a8   : > { %v1316_v11 = vpop.f32.mrf.mxu1 }
 0x1a9   : > { %v1317_v14 = vadd.f32 %v1316_v11, %v6681_v29  ;;  %v1473_v8 = vmul.f32 0.2, %v1315_v50  ;;  %v6114_v11 = vld [vmem:[%s6427_s15 + $0x2e0] ss:$8 sps:$4 sm:$0xff]  }
 0x1aa   : > { %v1318_v6 = vpop.f32.mrf.mxu1  ;;  %2407 = vmatpush2.bf16.msra.mxu1 %v6114_v11 }
 0x1ab   : > { %v1319_v24 = vadd.f32 %v1318_v6, %v6684_v7  ;;  %v1474_v38 = vmul.f32 0.2, %v1317_v14  ;;  %v1537_v36 = vmax.f32 %v1315_v50, %v1473_v8  ;;  %v6119_v50 = vld [vmem:[%s6427_s15 + $0x2d4] ss:$8 sps:$4 sm:$0xff]  }
 0x1ac   : > { %v1320_v54 = vpop.f32.mrf.mxu1  ;;  %2408 = vmatprep.subr.bf16.mxu1 %v6119_v50 }
 0x1ad   : > { %v1475_v31 = vmul.f32 0.2, %v1319_v24  ;;  %v1321_v25 = vadd.f32 %v1320_v54, %v6681_v29  ;;  %v1538_v30 = vmax.f32 %v1317_v14, %v1474_v38 }
 0x1ae   : > { %v1324_v0 = vpop.f32.mrf.mxu1 }
 0x1af   : > { %v1476_v26 = vmul.f32 0.2, %v1321_v25  ;;  %v1539_v33 = vmax.f32 %v1319_v24, %v1475_v31  ;;  %v1325_v41 = vadd.f32 %v1324_v0, %v6684_v7  ;;  %v6122_v0 = vld [vmem:[%s6427_s15 + $0x2c4] ss:$8 sps:$4 sm:$0xff]  }
 0x1b0   : > { %v1326_v27 = vpop.f32.mrf.mxu1 }
 0x1b1   : > { %v1540_v28 = vmax.f32 %v1321_v25, %v1476_v26  ;;  %v1327_v34 = vadd.f32 %v1326_v27, %v6681_v29  ;;  %v1601_v60 = vpack.c.bf16 %v1539_v33, %v1537_v36  ;;  %v1477_v13 = vmul.f32 0.2, %v1325_v41  ;;  %v6117_v25 = vld [vmem:[%s6427_s15 + $0x2d0] ss:$8 sps:$4 sm:$0xff]  }
 0x1b2   : > { %v1328_v42 = vpop.f32.mrf.mxu1  ;;  %2409 = vmatpush2.bf16.msra.mxu1 %v6117_v25 }
 0x1b3   : > { %v1329_v49 = vadd.f32 %v1328_v42, %v6684_v7  ;;  %v1602_v55 = vpack.c.bf16 %v1540_v28, %v1538_v30  ;;  %v1478_v61 = vmul.f32 0.2, %v1327_v34  ;;  %v1541_v37 = vmax.f32 %v1325_v41, %v1477_v13  ;;  %2410 = vmatprep.subr.bf16.mxu1 %v6122_v0  ;;  %v6125_v42 = vld [vmem:[%s6427_s15 + $0x2b4] ss:$8 sps:$4 sm:$0xff]   ;;  %v6128_v13 = vld [vmem:[%s6427_s15 + $0x2a4] ss:$8 sps:$4 sm:$0xff]  }
 0x1b4   : > { %v1330_v63 = vpop.f32.mrf.mxu1 }
 0x1b5   : > { %v1479_v10 = vmul.f32 0.2, %v1329_v49  ;;  %v1331_v48 = vadd.f32 %v1330_v63, %v6681_v29  ;;  %1866 = vmatprep.mubr.bf16.mxu0 %v1602_v55  ;;  %v1542_v51 = vmax.f32 %v1327_v34, %v1478_v61  ;;  %v6120_v34 = vld [vmem:[%s6427_s15 + $0x2c0] ss:$8 sps:$4 sm:$0xff]   ;;  %v6123_v61 = vld [vmem:[%s6427_s15 + $0x2b0] ss:$8 sps:$4 sm:$0xff]  }
 0x1b6   : > { %v1334_v40 = vpop.f32.mrf.mxu1  ;;  %1867 = vmatmul.mubr.bf16.vlgmr.msra.gmra.mxu0 %v1601_v60  ;;  %2411 = vmatpush2.bf16.msra.mxu1 %v6120_v34 }
 0x1b7   : > { %v1480_v46 = vmul.f32 0.2, %v1331_v48  ;;  %v1543_v58 = vmax.f32 %v1329_v49, %v1479_v10  ;;  %v1335_v53 = vadd.f32 %v1334_v40, %v6684_v7  ;;  %2412 = vmatprep.subr.bf16.mxu1 %v6125_v42 }
 0x1b8   : > { %v1336_v59 = vpop.f32.mrf.mxu1 }
 0x1b9   : > { %v1544_v43 = vmax.f32 %v1331_v48, %v1480_v46  ;;  %v1337_v62 = vadd.f32 %v1336_v59, %v6681_v29  ;;  %v1603_v9 = vpack.c.bf16 %v1543_v58, %v1541_v37  ;;  %v1481_v6 = vmul.f32 0.2, %v1335_v53 }
 0x1ba   : > { %v1338_v45 = vpop.f32.mrf.mxu1  ;;  %2413 = vmatpush2.bf16.msra.mxu1 %v6123_v61 }
 0x1bb   : > { %v1339_v57 = vadd.f32 %v1338_v45, %v6684_v7  ;;  %v1604_v1 = vpack.c.bf16 %v1544_v43, %v1542_v51  ;;  %v1482_v14 = vmul.f32 0.2, %v1337_v62  ;;  %v1545_v32 = vmax.f32 %v1335_v53, %v1481_v6  ;;  %2414 = vmatprep.subr.bf16.mxu1 %v6128_v13  ;;  %v6131_v45 = vld [vmem:[%s6427_s15 + $0x294] ss:$8 sps:$4 sm:$0xff]  }
 0x1bc   : > { %v1340_v47 = vpop.f32.mrf.mxu1 }
 0x1bd   : > { %v1483_v56 = vmul.f32 0.2, %v1339_v57  ;;  %v1341_v15 = vadd.f32 %v1340_v47, %v6681_v29  ;;  %1876 = vmatprep.mubr.bf16.mxu0 %v1604_v1  ;;  %v1546_v44 = vmax.f32 %v1337_v62, %v1482_v14  ;;  %v6126_v62 = vld [vmem:[%s6427_s15 + $0x2a0] ss:$8 sps:$4 sm:$0xff]   ;;  %v6129_v14 = vld [vmem:[%s6427_s15 + $0x290] ss:$8 sps:$4 sm:$0xff]  }
 0x1be   : > { %v1344_v24 = vpop.f32.mrf.mxu1  ;;  %1877 = vmatmul.mubr.bf16.gmra.mxu0 %v1603_v9  ;;  %2415 = vmatpush2.bf16.msra.mxu1 %v6126_v62 }
 0x1bf   : > { %v1484_v38 = vmul.f32 0.2, %v1341_v15  ;;  %v1547_v54 = vmax.f32 %v1339_v57, %v1483_v56  ;;  %v1345_v26 = vadd.f32 %v1344_v24, %v6684_v7  ;;  %2416 = vmatprep.subr.bf16.mxu1 %v6131_v45 }
 0x1c0   : > { %v1346_v31 = vpop.f32.mrf.mxu1 }
 0x1c1   : > { %v1548_v12 = vmax.f32 %v1341_v15, %v1484_v38  ;;  %v1347_v8 = vadd.f32 %v1346_v31, %v6681_v29  ;;  %v1605_v28 = vpack.c.bf16 %v1547_v54, %v1545_v32  ;;  %v1485_v49 = vmul.f32 0.2, %v1345_v26 }
 0x1c2   : > { %v1348_v33 = vpop.f32.mrf.mxu1  ;;  %2417 = vmatpush2.bf16.msra.mxu1 %v6129_v14 }
 0x1c3   : > { %v1349_v27 = vadd.f32 %v1348_v33, %v6684_v7  ;;  %v1606_v2 = vpack.c.bf16 %v1548_v12, %v1546_v44  ;;  %v1486_v35 = vmul.f32 0.2, %v1347_v8  ;;  %v1549_v40 = vmax.f32 %v1345_v26, %v1485_v49 }
 0x1c4   : > { %v1350_v30 = vpop.f32.mrf.mxu1 }
 0x1c5   : > { %v1487_v36 = vmul.f32 0.2, %v1349_v27  ;;  %v1351_v41 = vadd.f32 %v1350_v30, %v6681_v29  ;;  %1886 = vmatprep.mubr.bf16.mxu0 %v1606_v2  ;;  %v1550_v10 = vmax.f32 %v1347_v8, %v1486_v35 }
 0x1c6   : > { %v1354_v55 = vpop.f32.mrf.mxu1  ;;  %1887 = vmatmul.mubr.bf16.gmra.mxu0 %v1605_v28 }
 0x1c7   : > { %v1488_v60 = vmul.f32 0.2, %v1351_v41  ;;  %v1551_v63 = vmax.f32 %v1349_v27, %v1487_v36  ;;  %v1355_v46 = vadd.f32 %v1354_v55, %v6684_v7 }
 0x1c8   : > { %v1356_v52 = vpop.f32.mrf.mxu1 }
 0x1c9   : > { %v1552_v48 = vmax.f32 %v1351_v41, %v1488_v60  ;;  %v1357_v4 = vadd.f32 %v1356_v52, %v6681_v29  ;;  %v1607_v43 = vpack.c.bf16 %v1551_v63, %v1549_v40  ;;  %v1489_v57 = vmul.f32 0.2, %v1355_v46 }
 0x1ca   : > { %v1358_v58 = vpop.f32.mrf.mxu1 }
 0x1cb   : > { %v1359_v59 = vadd.f32 %v1358_v58, %v6684_v7  ;;  %v1608_v39 = vpack.c.bf16 %v1552_v48, %v1550_v10  ;;  %v1490_v5 = vmul.f32 0.2, %v1357_v4  ;;  %v1553_v6 = vmax.f32 %v1355_v46, %v1489_v57 }
 0x1cc   : > { %v1360_v51 = vpop.f32.mrf.mxu1 }
 0x1cd   : > { %v1491_v37 = vmul.f32 0.2, %v1359_v59  ;;  %v1361_v53 = vadd.f32 %v1360_v51, %v6681_v29  ;;  %1896 = vmatprep.mubr.bf16.mxu0 %v1608_v39  ;;  %v1554_v56 = vmax.f32 %v1357_v4, %v1490_v5 }
 0x1ce   : > { %v1364_v1 = vpop.f32.mrf.mxu1  ;;  %1897 = vmatmul.mubr.bf16.gmra.mxu0 %v1607_v43 }
 0x1cf   : > { %v1492_v47 = vmul.f32 0.2, %v1361_v53  ;;  %v1555_v9 = vmax.f32 %v1359_v59, %v1491_v37  ;;  %v1365_v24 = vadd.f32 %v1364_v1, %v6684_v7 }
 0x1d0   : > { %v1366_v11 = vpop.f32.mrf.mxu1 }
 0x1d1   : > { %v1556_v15 = vmax.f32 %v1361_v53, %v1492_v47  ;;  %v1367_v50 = vadd.f32 %v1366_v11, %v6681_v29  ;;  %v1609_v44 = vpack.c.bf16 %v1555_v9, %v1553_v6  ;;  %v1493_v32 = vmul.f32 0.2, %v1365_v24 }
 0x1d2   : > { %v1368_v38 = vpop.f32.mrf.mxu1 }
 0x1d3   : > { %v1369_v54 = vadd.f32 %v1368_v38, %v6684_v7  ;;  %v1610_v31 = vpack.c.bf16 %v1556_v15, %v1554_v56  ;;  %v1494_v12 = vmul.f32 0.2, %v1367_v50  ;;  %v1557_v35 = vmax.f32 %v1365_v24, %v1493_v32 }
 0x1d4   : > { %v1370_v25 = vpop.f32.mrf.mxu1 }
 0x1d5   : > { %v1495_v8 = vmul.f32 0.2, %v1369_v54  ;;  %v1371_v0 = vadd.f32 %v1370_v25, %v6681_v29  ;;  %1906 = vmatprep.mubr.bf16.mxu0 %v1610_v31  ;;  %v1558_v30 = vmax.f32 %v1367_v50, %v1494_v12 }
 0x1d6   : > { %v1374_v26 = vpop.f32.mrf.mxu1  ;;  %1907 = vmatmul.mubr.bf16.gmra.mxu0 %v1609_v44 }
 0x1d7   : > { %v1496_v33 = vmul.f32 0.2, %v1371_v0  ;;  %v1559_v27 = vmax.f32 %v1369_v54, %v1495_v8  ;;  %v1375_v36 = vadd.f32 %v1374_v26, %v6684_v7 }
 0x1d8   : > { %v1376_v2 = vpop.f32.mrf.mxu1 }
 0x1d9   : > { %v1560_v28 = vmax.f32 %v1371_v0, %v1496_v33  ;;  %v1377_v34 = vadd.f32 %v1376_v2, %v6681_v29  ;;  %v1611_v60 = vpack.c.bf16 %v1559_v27, %v1557_v35  ;;  %v1497_v10 = vmul.f32 0.2, %v1375_v36 }
 0x1da   : > { %v1378_v41 = vpop.f32.mrf.mxu1 }
 0x1db   : > { %v1379_v42 = vadd.f32 %v1378_v41, %v6684_v7  ;;  %v1612_v49 = vpack.c.bf16 %v1560_v28, %v1558_v30  ;;  %v1498_v63 = vmul.f32 0.2, %v1377_v34  ;;  %v1561_v39 = vmax.f32 %v1375_v36, %v1497_v10 }
 0x1dc   : > { %v1380_v55 = vpop.f32.mrf.mxu1 }
 0x1dd   : > { %v1499_v52 = vmul.f32 0.2, %v1379_v42  ;;  %v1381_v61 = vadd.f32 %v1380_v55, %v6681_v29  ;;  %1916 = vmatprep.mubr.bf16.mxu0 %v1612_v49  ;;  %v1562_v46 = vmax.f32 %v1377_v34, %v1498_v63 }
 0x1de   : > { %v1384_v48 = vpop.f32.mrf.mxu1  ;;  %1917 = vmatmul.mubr.bf16.gmra.mxu0 %v1611_v60 }
 0x1df   : > { %v1500_v4 = vmul.f32 0.2, %v1381_v61  ;;  %v1563_v13 = vmax.f32 %v1379_v42, %v1499_v52  ;;  %v1385_v51 = vadd.f32 %v1384_v48, %v6684_v7 }
 0x1e0   : > { %v1386_v40 = vpop.f32.mrf.mxu1 }
 0x1e1   : > { %v1564_v58 = vmax.f32 %v1381_v61, %v1500_v4  ;;  %v1387_v59 = vadd.f32 %v1386_v40, %v6681_v29  ;;  %v1613_v53 = vpack.c.bf16 %v1563_v13, %v1561_v39  ;;  %v1501_v47 = vmul.f32 0.2, %v1385_v51 }
 0x1e2   : > { %v1388_v43 = vpop.f32.mrf.mxu1 }
 0x1e3   : > { %v1389_v62 = vadd.f32 %v1388_v43, %v6684_v7  ;;  %v1614_v5 = vpack.c.bf16 %v1564_v58, %v1562_v46  ;;  %v1502_v45 = vmul.f32 0.2, %v1387_v59  ;;  %v1565_v24 = vmax.f32 %v1385_v51, %v1501_v47 }
 0x1e4   : > { %v1390_v37 = vpop.f32.mrf.mxu1 }
 0x1e5   : > { %v1503_v57 = vmul.f32 0.2, %v1389_v62  ;;  %v1391_v1 = vadd.f32 %v1390_v37, %v6681_v29  ;;  %1926 = vmatprep.mubr.bf16.mxu0 %v1614_v5  ;;  %v1566_v15 = vmax.f32 %v1387_v59, %v1502_v45 }
 0x1e6   : > { %v1394_v9 = vpop.f32.mrf.mxu1  ;;  %1927 = vmatmul.mubr.bf16.gmra.mxu0 %v1613_v53 }
 0x1e7   : > { %v1504_v11 = vmul.f32 0.2, %v1391_v1  ;;  %v1567_v14 = vmax.f32 %v1389_v62, %v1503_v57  ;;  %v1395_v38 = vadd.f32 %v1394_v9, %v6684_v7 }
 0x1e8   : > { %v1396_v56 = vpop.f32.mrf.mxu1 }
 0x1e9   : > { %v1568_v50 = vmax.f32 %v1391_v1, %v1504_v11  ;;  %v1397_v6 = vadd.f32 %v1396_v56, %v6681_v29  ;;  %v1615_v12 = vpack.c.bf16 %v1567_v14, %v1565_v24  ;;  %v1505_v26 = vmul.f32 0.2, %v1395_v38 }
 0x1ea   : > { %v1398_v54 = vpop.f32.mrf.mxu1 }
 0x1eb   : > { %v1399_v31 = vadd.f32 %v1398_v54, %v6684_v7  ;;  %v1616_v25 = vpack.c.bf16 %v1568_v50, %v1566_v15  ;;  %v1506_v8 = vmul.f32 0.2, %v1397_v6  ;;  %v1569_v36 = vmax.f32 %v1395_v38, %v1505_v26  ;;  %v6134_v50 = vld [vmem:[%s6427_s15 + $0x284] ss:$8 sps:$4 sm:$0xff]   ;;  %v6132_v54 = vld [vmem:[%s6427_s15 + $0x280] ss:$8 sps:$4 sm:$0xff]  }
 0x1ec   : > { %v1400_v44 = vpop.f32.mrf.mxu1  ;;  %2418 = vmatprep.subr.bf16.mxu1 %v6134_v50 }
 0x1ed   : > { %v1507_v0 = vmul.f32 0.2, %v1399_v31  ;;  %v1401_v32 = vadd.f32 %v1400_v44, %v6681_v29  ;;  %1936 = vmatprep.mubr.bf16.mxu0 %v1616_v25  ;;  %v1570_v28 = vmax.f32 %v1397_v6, %v1506_v8  ;;  %2419 = vmatpush2.bf16.msra.mxu1 %v6132_v54 }
 0x1ee   : > { %v1404_v33 = vpop.f32.mrf.mxu1  ;;  %1937 = vmatmul.mubr.bf16.gmra.mxu0 %v1615_v12 }
 0x1ef   : > { %v1508_v27 = vmul.f32 0.2, %v1401_v32  ;;  %v1571_v2 = vmax.f32 %v1399_v31, %v1507_v0  ;;  %v1405_v41 = vadd.f32 %v1404_v33, %v6684_v7 }
 0x1f0   : > { %v1406_v30 = vpop.f32.mrf.mxu1 }
 0x1f1   : > { %v1572_v34 = vmax.f32 %v1401_v32, %v1508_v27  ;;  %v1407_v35 = vadd.f32 %v1406_v30, %v6681_v29  ;;  %v1617_v63 = vpack.c.bf16 %v1571_v2, %v1569_v36  ;;  %v1509_v48 = vmul.f32 0.2, %v1405_v41 }
 0x1f2   : > { %v1408_v42 = vpop.f32.mrf.mxu1 }
 0x1f3   : > { %v1409_v49 = vadd.f32 %v1408_v42, %v6684_v7  ;;  %v1618_v55 = vpack.c.bf16 %v1572_v34, %v1570_v28  ;;  %v1510_v52 = vmul.f32 0.2, %v1407_v35  ;;  %v1573_v51 = vmax.f32 %v1405_v41, %v1509_v48 }
 0x1f4   : > { %v1410_v60 = vpop.f32.mrf.mxu1 }
 0x1f5   : > { %v1511_v61 = vmul.f32 0.2, %v1409_v49  ;;  %v1411_v10 = vadd.f32 %v1410_v60, %v6681_v29  ;;  %1946 = vmatprep.mubr.bf16.mxu0 %v1618_v55  ;;  %v1574_v58 = vmax.f32 %v1407_v35, %v1510_v52 }
 0x1f6   : > { %v1414_v4 = vpop.f32.mrf.mxu1  ;;  %1947 = vmatmul.mubr.bf16.gmra.mxu0 %v1617_v63 }
 0x1f7   : > { %v1512_v13 = vmul.f32 0.2, %v1411_v10  ;;  %v1575_v40 = vmax.f32 %v1409_v49, %v1511_v61  ;;  %v1415_v43 = vadd.f32 %v1414_v4, %v6684_v7 }
 0x1f8   : > { %v1416_v46 = vpop.f32.mrf.mxu1 }
 0x1f9   : > { %v1576_v59 = vmax.f32 %v1411_v10, %v1512_v13  ;;  %v1417_v39 = vadd.f32 %v1416_v46, %v6681_v29  ;;  %v1619_v45 = vpack.c.bf16 %v1575_v40, %v1573_v51  ;;  %v1513_v9 = vmul.f32 0.2, %v1415_v43 }
 0x1fa   : > { %v1418_v62 = vpop.f32.mrf.mxu1 }
 0x1fb   : > { %v1419_v5 = vadd.f32 %v1418_v62, %v6684_v7  ;;  %v1620_v37 = vpack.c.bf16 %v1576_v59, %v1574_v58  ;;  %v1514_v57 = vmul.f32 0.2, %v1417_v39  ;;  %v1577_v31 = vmax.f32 %v1415_v43, %v1513_v9 }
 0x1fc   : > { %v1420_v53 = vpop.f32.mrf.mxu1 }
 0x1fd   : > { %v1515_v1 = vmul.f32 0.2, %v1419_v5  ;;  %v1421_v47 = vadd.f32 %v1420_v53, %v6681_v29  ;;  %1956 = vmatprep.mubr.bf16.mxu0 %v1620_v37  ;;  %v1578_v6 = vmax.f32 %v1417_v39, %v1514_v57 }
 0x1fe   : > { %v1424_v11 = vpop.f32.mrf.mxu1  ;;  %1957 = vmatmul.mubr.bf16.gmra.mxu0 %v1619_v45 }
 0x1ff   : > { %v1516_v14 = vmul.f32 0.2, %v1421_v47  ;;  %v1579_v56 = vmax.f32 %v1419_v5, %v1515_v1  ;;  %v1425_v25 = vadd.f32 %v1424_v11, %v6684_v7 }
 0x200   : > { %v1426_v15 = vpop.f32.mrf.mxu1 }
 0x201   : > { %v1580_v24 = vmax.f32 %v1421_v47, %v1516_v14  ;;  %v1427_v38 = vadd.f32 %v1426_v15, %v6681_v29  ;;  %v1621_v32 = vpack.c.bf16 %v1579_v56, %v1577_v31  ;;  %v1517_v2 = vmul.f32 0.2, %v1425_v25 }
 0x202   : > { %v1428_v44 = vpop.f32.mrf.mxu1 }
 0x203   : > { %v1429_v12 = vadd.f32 %v1428_v44, %v6684_v7  ;;  %v1622_v8 = vpack.c.bf16 %v1580_v24, %v1578_v6  ;;  %v1518_v26 = vmul.f32 0.2, %v1427_v38  ;;  %v1581_v49 = vmax.f32 %v1425_v25, %v1517_v2 }
 0x204   : > { %v1430_v0 = vpop.f32.mrf.mxu1 }
 0x205   : > { %v1519_v33 = vmul.f32 0.2, %v1429_v12  ;;  %v1431_v27 = vadd.f32 %v1430_v0, %v6681_v29  ;;  %1966 = vmatprep.mubr.bf16.mxu0 %v1622_v8  ;;  %v1582_v36 = vmax.f32 %v1427_v38, %v1518_v26 }
 0x206   : > { %v1434_v30 = vpop.f32.mrf.mxu1  ;;  %1967 = vmatmul.mubr.bf16.gmra.mxu0 %v1621_v32 }
 0x207   : > { %v1520_v28 = vmul.f32 0.2, %v1431_v27  ;;  %v1583_v34 = vmax.f32 %v1429_v12, %v1519_v33  ;;  %v1435_v55 = vadd.f32 %v1434_v30, %v6684_v7 }
 0x208   : > { %v1436_v35 = vpop.f32.mrf.mxu1 }
 0x209   : > { %v1584_v41 = vmax.f32 %v1431_v27, %v1520_v28  ;;  %v1437_v42 = vadd.f32 %v1436_v35, %v6681_v29  ;;  %v1623_v10 = vpack.c.bf16 %v1583_v34, %v1581_v49  ;;  %v1521_v40 = vmul.f32 0.2, %v1435_v55 }
 0x20a   : > { %v1438_v60 = vpop.f32.mrf.mxu1 }
 0x20b   : > { %v1439_v63 = vadd.f32 %v1438_v60, %v6684_v7  ;;  %v1624_v52 = vpack.c.bf16 %v1584_v41, %v1582_v36  ;;  %v1522_v48 = vmul.f32 0.2, %v1437_v42  ;;  %v1585_v5 = vmax.f32 %v1435_v55, %v1521_v40 }
 0x20c   : > { %v1440_v61 = vpop.f32.mrf.mxu1 }
 0x20d   : > { %v1523_v4 = vmul.f32 0.2, %v1439_v63  ;;  %v1441_v13 = vadd.f32 %v1440_v61, %v6681_v29  ;;  %1976 = vmatprep.mubr.bf16.mxu0 %v1624_v52  ;;  %v1586_v51 = vmax.f32 %v1437_v42, %v1522_v48 }
 0x20e   : > { %v1444_v46 = vpop.f32.mrf.mxu1  ;;  %1977 = vmatmul.mubr.bf16.gmra.mxu0 %v1623_v10 }
 0x20f   : > { %v1524_v58 = vmul.f32 0.2, %v1441_v13  ;;  %v1587_v59 = vmax.f32 %v1439_v63, %v1523_v4  ;;  %v1445_v37 = vadd.f32 %v1444_v46, %v6684_v7 }
 0x210   : > { %v1446_v39 = vpop.f32.mrf.mxu1 }
 0x211   : > { %v1588_v43 = vmax.f32 %v1441_v13, %v1524_v58  ;;  %v1447_v62 = vadd.f32 %v1446_v39, %v6681_v29  ;;  %v1625_v47 = vpack.c.bf16 %v1587_v59, %v1585_v5  ;;  %v1525_v56 = vmul.f32 0.2, %v1445_v37 }
 0x212   : > { %v1448_v53 = vpop.f32.mrf.mxu1 }
 0x213   : > { %v1449_v45 = vadd.f32 %v1448_v53, %v6684_v7  ;;  %v1626_v57 = vpack.c.bf16 %v1588_v43, %v1586_v51  ;;  %v1526_v9 = vmul.f32 0.2, %v1447_v62  ;;  %v1589_v25 = vmax.f32 %v1445_v37, %v1525_v56 }
 0x214   : > { %v1450_v1 = vpop.f32.mrf.mxu1 }
 0x215   : > { %v1527_v11 = vmul.f32 0.2, %v1449_v45  ;;  %v1451_v14 = vadd.f32 %v1450_v1, %v6681_v29  ;;  %1986 = vmatprep.mubr.bf16.mxu0 %v1626_v57  ;;  %v1590_v38 = vmax.f32 %v1447_v62, %v1526_v9 }
 0x216   : > { %v1454_v15 = vpop.f32.mrf.mxu1  ;;  %1987 = vmatmul.mubr.bf16.gmra.mxu0 %v1625_v47 }
 0x217   : > { %v1528_v50 = vmul.f32 0.2, %v1451_v14  ;;  %v1591_v6 = vmax.f32 %v1449_v45, %v1527_v11  ;;  %v1455_v44 = vadd.f32 %v1454_v15, %v6684_v7 }
 0x218   : > { %v1456_v24 = vpop.f32.mrf.mxu1 }
 0x219   : > { %v1592_v54 = vmax.f32 %v1451_v14, %v1528_v50  ;;  %v1457_v31 = vadd.f32 %v1456_v24, %v6681_v29  ;;  %v1627_v26 = vpack.c.bf16 %v1591_v6, %v1589_v25  ;;  %v1529_v30 = vmul.f32 0.2, %v1455_v44 }
 0x21a   : > { %v1458_v12 = vpop.f32.mrf.mxu1 }
 0x21b   : > { %v1459_v8 = vadd.f32 %v1458_v12, %v6684_v7  ;;  %v1628_v0 = vpack.c.bf16 %v1592_v54, %v1590_v38  ;;  %v1530_v33 = vmul.f32 0.2, %v1457_v31  ;;  %v1593_v55 = vmax.f32 %v1455_v44, %v1529_v30 }
 0x21c   : > { %v1460_v32 = vpop.f32.mrf.mxu1 }
 0x21d   : > { %v1531_v27 = vmul.f32 0.2, %v1459_v8  ;;  %v1461_v2 = vadd.f32 %v1460_v32, %v6681_v29  ;;  %1996 = vmatprep.mubr.bf16.mxu0 %v1628_v0  ;;  %v1594_v41 = vmax.f32 %v1457_v31, %v1530_v33 }
 0x21e   : > { %v1464_v28 = vpop.f32.mrf.mxu1  ;;  %1997 = vmatmul.mubr.bf16.gmra.mxu0 %v1627_v26 }
 0x21f   : > { %v1532_v34 = vmul.f32 0.2, %v1461_v2  ;;  %v1595_v35 = vmax.f32 %v1459_v8, %v1531_v27  ;;  %v1465_v60 = vadd.f32 %v1464_v28, %v6684_v7 }
 0x220   : > { %v1466_v36 = vpop.f32.mrf.mxu1 }
 0x221   : > { %v1596_v42 = vmax.f32 %v1461_v2, %v1532_v34  ;;  %v1467_v49 = vadd.f32 %v1466_v36, %v6681_v29  ;;  %v1629_v48 = vpack.c.bf16 %v1595_v35, %v1593_v55  ;;  %v1533_v46 = vmul.f32 0.2, %v1465_v60  ;;  %v6136_v2 = vld [vmem:[%s6427_s15 + $0x370] ss:$8 sps:$4 sm:$0xff]   ;;  %v6142_v34 = vld [vmem:[%s6427_s15 + $0x364] ss:$8 sps:$4 sm:$0xff]  }
 0x222   : > { %v1468_v63 = vpop.f32.mrf.mxu1 }
 0x223   : > { %v1469_v52 = vadd.f32 %v1468_v63, %v6684_v7  ;;  %v1630_v61 = vpack.c.bf16 %v1596_v42, %v1594_v41  ;;  %v1534_v4 = vmul.f32 0.2, %v1467_v49  ;;  %v1597_v43 = vmax.f32 %v1465_v60, %v1533_v46  ;;  %v6138_v7 = vld [vmem:[%s6427_s15 + $0x374] ss:$8 sps:$4 sm:$0xff]   ;;  %v6140_v60 = vld [vmem:[%s6427_s15 + $0x360] ss:$8 sps:$4 sm:$0xff]  }
 0x224   : > { %v1470_v10 = vpop.f32.mrf.mxu1  ;;  %3269 = vmatprep.subr.bf16.mxu1 %v6138_v7 }
 0x225   : > { %v1535_v13 = vmul.f32 0.2, %v1469_v52  ;;  %v1471_v40 = vadd.f32 %v1470_v10, %v6681_v29  ;;  %2006 = vmatprep.mubr.bf16.mxu0 %v1630_v61  ;;  %v1598_v39 = vmax.f32 %v1467_v49, %v1534_v4  ;;  %v2854_v29 = vld [vmem:[%s491_s23] sm:$0xff]  ;;  %v6145_v61 = vld [vmem:[%s6427_s15 + $0x354] ss:$8 sps:$4 sm:$0xff]  }
 0x226   : > { %2007 = vmatmul.mubr.bf16.gmra.mxu0 %v1629_v48  ;;  %v5385_v37 = vcombine.high %v2854_v29, %v2854_v29  ;;  %v5384_v53 = vcombine.low %v2854_v29, %v2854_v29 }
 0x227   : > { %v1536_v58 = vmul.f32 0.2, %v1471_v40  ;;  %v1599_v59 = vmax.f32 %v1469_v52, %v1535_v13 }
 0x228   : > { %5386 = vmatprep.subr.msk.bf16.mxu0 %vm2909_vm1, %v5385_v37  ;;  %v2911_v45 = vsel %vm2909_vm1, %v5384_v53, 0 }
 0x229   : > { %v1600_v51 = vmax.f32 %v1471_v40, %v1536_v58  ;;  %v1631_v5 = vpack.c.bf16 %v1599_v59, %v1597_v43  ;;  %2931 = vmatpush1.bf16.msra.mxu0 %v2911_v45 }
 0x22b   : > { %v1632_v62 = vpack.c.bf16 %v1600_v51, %v1598_v39  ;;  %v6143_v39 = vld [vmem:[%s6427_s15 + $0x350] ss:$8 sps:$4 sm:$0xff]  }
 0x22d   : > { %2016 = vmatprep.mubr.bf16.mxu0 %v1632_v62  ;;  %v6148_v62 = vld [vmem:[%s6427_s15 + $0x344] ss:$8 sps:$4 sm:$0xff]  }
 0x22e   : > { %2017 = vmatmul.mubr.bf16.gmra.mxu0 %v1631_v5 }
 0x22f   : > { %2948 = vmatprep.mubr.bf16.mxu0 %v6291_v3 }
 0x276   : > { %v1868_v57 = vpop.f32.mrf.mxu0 }
 0x277   : > { %v1869_v9 = vadd.f32 %v1868_v57, %v6401_v16  ;;  %v6146_v57 = vld [vmem:[%s6427_s15 + $0x340] ss:$8 sps:$4 sm:$0xff]  }
 0x278   : > { %v1870_v1 = vpop.f32.mrf.mxu0 }
 0x279   : > { %v1871_v47 = vadd.f32 %v1870_v1, %v6403_v17  ;;  %v2027_v24 = vmul.f32 0.2, %v1869_v9 }
 0x27a   : > { %v1872_v11 = vpop.f32.mrf.mxu0 }
 0x27b   : > { %v1873_v14 = vadd.f32 %v1872_v11, %v6401_v16  ;;  %v2028_v15 = vmul.f32 0.2, %v1871_v47  ;;  %v2091_v0 = vmax.f32 %v1869_v9, %v2027_v24  ;;  %v6151_v9 = vld [vmem:[%s6427_s15 + $0x334] ss:$8 sps:$4 sm:$0xff]  }
 0x27c   : > { %v1874_v56 = vpop.f32.mrf.mxu0 }
 0x27d   : > { %v2029_v50 = vmul.f32 0.2, %v1873_v14  ;;  %v1875_v6 = vadd.f32 %v1874_v56, %v6403_v17  ;;  %v2092_v44 = vmax.f32 %v1871_v47, %v2028_v15 }
 0x27e   : > { %v1878_v38 = vpop.f32.mrf.mxu0 }
 0x27f   : > { %v2030_v54 = vmul.f32 0.2, %v1875_v6  ;;  %v2093_v31 = vmax.f32 %v1873_v14, %v2029_v50  ;;  %v1879_v32 = vadd.f32 %v1878_v38, %v6401_v16 }
 0x280   : > { %v1880_v25 = vpop.f32.mrf.mxu0 }
 0x281   : > { %v2094_v12 = vmax.f32 %v1875_v6, %v2030_v54  ;;  %v1881_v8 = vadd.f32 %v1880_v25, %v6403_v17  ;;  %v2155_v30 = vpack.c.bf16 %v2093_v31, %v2091_v0  ;;  %v2031_v42 = vmul.f32 0.2, %v1879_v32  ;;  %v6149_v54 = vld [vmem:[%s6427_s15 + $0x330] ss:$8 sps:$4 sm:$0xff]  }
 0x282   : > { %v1882_v26 = vpop.f32.mrf.mxu0 }
 0x283   : > { %v1883_v33 = vadd.f32 %v1882_v26, %v6401_v16  ;;  %v2156_v27 = vpack.c.bf16 %v2094_v12, %v2092_v44  ;;  %v2032_v35 = vmul.f32 0.2, %v1881_v8  ;;  %v2095_v13 = vmax.f32 %v1879_v32, %v2031_v42  ;;  %v6154_v44 = vld [vmem:[%s6427_s15 + $0x324] ss:$8 sps:$4 sm:$0xff]  }
 0x284   : > { %v1884_v28 = vpop.f32.mrf.mxu0 }
 0x285   : > { %v2033_v36 = vmul.f32 0.2, %v1883_v33  ;;  %v1885_v41 = vadd.f32 %v1884_v28, %v6403_v17  ;;  %2420 = vmatprep.mubr.bf16.mxu1 %v2156_v27  ;;  %v2096_v10 = vmax.f32 %v1881_v8, %v2032_v35  ;;  %v6152_v27 = vld [vmem:[%s6427_s15 + $0x320] ss:$8 sps:$4 sm:$0xff]   ;;  %v6157_v28 = vld [vmem:[%s6427_s15 + $0x314] ss:$8 sps:$4 sm:$0xff]  }
 0x286   : > { %v1888_v49 = vpop.f32.mrf.mxu0  ;;  %2421 = vmatmul.mubr.bf16.vlgmr.msra.gmra.mxu1 %v2155_v30 }
 0x287   : > { %v2034_v55 = vmul.f32 0.2, %v1885_v41  ;;  %3270 = vmatpush1.bf16.msra.mxu1 %v6136_v2  ;;  %v2097_v63 = vmax.f32 %v1883_v33, %v2033_v36  ;;  %v1889_v40 = vadd.f32 %v1888_v49, %v6401_v16 }
 0x288   : > { %v1890_v52 = vpop.f32.mrf.mxu0  ;;  %3271 = vmatprep.subr.bf16.mxu1 %v6142_v34 }
 0x289   : > { %v2098_v48 = vmax.f32 %v1885_v41, %v2034_v55  ;;  %v1891_v4 = vadd.f32 %v1890_v52, %v6403_v17  ;;  %v2157_v43 = vpack.c.bf16 %v2097_v63, %v2095_v13  ;;  %v2035_v37 = vmul.f32 0.2, %v1889_v40  ;;  %v6155_v63 = vld [vmem:[%s6427_s15 + $0x310] ss:$8 sps:$4 sm:$0xff]  }
 0x28a   : > { %v1892_v46 = vpop.f32.mrf.mxu0 }
 0x28b   : > { %v1893_v58 = vadd.f32 %v1892_v46, %v6401_v16  ;;  %v2158_v59 = vpack.c.bf16 %v2098_v48, %v2096_v10  ;;  %3272 = vmatpush1.bf16.msra.mxu1 %v6140_v60  ;;  %v2036_v5 = vmul.f32 0.2, %v1891_v4  ;;  %v2099_v15 = vmax.f32 %v1889_v40, %v2035_v37  ;;  %v6160_v10 = vld [vmem:[%s6427_s15 + $0x304] ss:$8 sps:$4 sm:$0xff]  }
 0x28c   : > { %v1894_v51 = vpop.f32.mrf.mxu0  ;;  %3273 = vmatprep.subr.bf16.mxu1 %v6145_v61 }
 0x28d   : > { %v2037_v7 = vmul.f32 0.2, %v1893_v58  ;;  %v1895_v29 = vadd.f32 %v1894_v51, %v6403_v17  ;;  %2430 = vmatprep.mubr.bf16.mxu1 %v2158_v59  ;;  %v2100_v11 = vmax.f32 %v1891_v4, %v2036_v5  ;;  %v6158_v59 = vld [vmem:[%s6427_s15 + $0x300] ss:$8 sps:$4 sm:$0xff]  }
 0x28e   : > { %v1898_v53 = vpop.f32.mrf.mxu0  ;;  %2431 = vmatmul.mubr.bf16.gmra.mxu1 %v2157_v43  ;;  %v6163_v43 = vld [vmem:[%s6427_s15 + $0x3f4] ss:$8 sps:$4 sm:$0xff]  }
 0x28f   : > { %v2038_v45 = vmul.f32 0.2, %v1895_v29  ;;  %3274 = vmatpush1.bf16.msra.mxu1 %v6143_v39  ;;  %v2101_v1 = vmax.f32 %v1893_v58, %v2037_v7  ;;  %v1899_v50 = vadd.f32 %v1898_v53, %v6401_v16 }
 0x290   : > { %v1900_v47 = vpop.f32.mrf.mxu0  ;;  %3275 = vmatprep.subr.bf16.mxu1 %v6148_v62 }
 0x291   : > { %v2102_v14 = vmax.f32 %v1895_v29, %v2038_v45  ;;  %v1901_v56 = vadd.f32 %v1900_v47, %v6403_v17  ;;  %v2159_v25 = vpack.c.bf16 %v2101_v1, %v2099_v15  ;;  %v2039_v32 = vmul.f32 0.2, %v1899_v50  ;;  %v6161_v1 = vld [vmem:[%s6427_s15 + $0x3f0] ss:$8 sps:$4 sm:$0xff]  }
 0x292   : > { %v1902_v6 = vpop.f32.mrf.mxu0 }
 0x293   : > { %v1903_v24 = vadd.f32 %v1902_v6, %v6401_v16  ;;  %v2160_v38 = vpack.c.bf16 %v2102_v14, %v2100_v11  ;;  %3276 = vmatpush1.bf16.msra.mxu1 %v6146_v57  ;;  %v2040_v12 = vmul.f32 0.2, %v1901_v56  ;;  %v2103_v41 = vmax.f32 %v1899_v50, %v2039_v32  ;;  %v6166_v11 = vld [vmem:[%s6427_s15 + $0x3e4] ss:$8 sps:$4 sm:$0xff]  }
 0x294   : > { %v1904_v31 = vpop.f32.mrf.mxu0  ;;  %3277 = vmatprep.subr.bf16.mxu1 %v6151_v9 }
 0x295   : > { %v2041_v8 = vmul.f32 0.2, %v1903_v24  ;;  %v1905_v0 = vadd.f32 %v1904_v31, %v6403_v17  ;;  %2440 = vmatprep.mubr.bf16.mxu1 %v2160_v38  ;;  %v2104_v34 = vmax.f32 %v1901_v56, %v2040_v12  ;;  %v6164_v38 = vld [vmem:[%s6427_s15 + $0x3e0] ss:$8 sps:$4 sm:$0xff]  }
 0x296   : > { %v1908_v26 = vpop.f32.mrf.mxu0  ;;  %2441 = vmatmul.mubr.bf16.gmra.mxu1 %v2159_v25  ;;  %v6169_v25 = vld [vmem:[%s6427_s15 + $0x3d4] ss:$8 sps:$4 sm:$0xff]  }
 0x297   : > { %v2042_v33 = vmul.f32 0.2, %v1905_v0  ;;  %3278 = vmatpush1.bf16.msra.mxu1 %v6149_v54  ;;  %v2105_v2 = vmax.f32 %v1903_v24, %v2041_v8  ;;  %v1909_v42 = vadd.f32 %v1908_v26, %v6401_v16 }
 0x298   : > { %v1910_v30 = vpop.f32.mrf.mxu0  ;;  %3279 = vmatprep.subr.bf16.mxu1 %v6154_v44 }
 0x299   : > { %v2106_v35 = vmax.f32 %v1905_v0, %v2042_v33  ;;  %v1911_v36 = vadd.f32 %v1910_v30, %v6403_v17  ;;  %v2161_v61 = vpack.c.bf16 %v2105_v2, %v2103_v41  ;;  %v2043_v40 = vmul.f32 0.2, %v1909_v42  ;;  %v6167_v2 = vld [vmem:[%s6427_s15 + $0x3d0] ss:$8 sps:$4 sm:$0xff]  }
 0x29a   : > { %v1912_v49 = vpop.f32.mrf.mxu0 }
 0x29b   : > { %v1913_v55 = vadd.f32 %v1912_v49, %v6401_v16  ;;  %v2162_v60 = vpack.c.bf16 %v2106_v35, %v2104_v34  ;;  %3280 = vmatpush1.bf16.msra.mxu1 %v6152_v27  ;;  %v2044_v48 = vmul.f32 0.2, %v1911_v36  ;;  %v2107_v29 = vmax.f32 %v1909_v42, %v2043_v40  ;;  %v6172_v34 = vld [vmem:[%s6427_s15 + $0x3c4] ss:$8 sps:$4 sm:$0xff]  }
 0x29c   : > { %v1914_v52 = vpop.f32.mrf.mxu0  ;;  %3281 = vmatprep.subr.bf16.mxu1 %v6157_v28 }
 0x29d   : > { %v2045_v4 = vmul.f32 0.2, %v1913_v55  ;;  %v1915_v13 = vadd.f32 %v1914_v52, %v6403_v17  ;;  %2450 = vmatprep.mubr.bf16.mxu1 %v2162_v60  ;;  %v2108_v62 = vmax.f32 %v1911_v36, %v2044_v48  ;;  %v6170_v60 = vld [vmem:[%s6427_s15 + $0x3c0] ss:$8 sps:$4 sm:$0xff]  }
 0x29e   : > { %v1918_v46 = vpop.f32.mrf.mxu0  ;;  %2451 = vmatmul.mubr.bf16.gmra.mxu1 %v2161_v61  ;;  %v6175_v61 = vld [vmem:[%s6427_s15 + $0x3b4] ss:$8 sps:$4 sm:$0xff]  }
 0x29f   : > { %v2046_v58 = vmul.f32 0.2, %v1915_v13  ;;  %3282 = vmatpush1.bf16.msra.mxu1 %v6155_v63  ;;  %v2109_v39 = vmax.f32 %v1913_v55, %v2045_v4  ;;  %v1919_v37 = vadd.f32 %v1918_v46, %v6401_v16 }
 0x2a0   : > { %v1920_v51 = vpop.f32.mrf.mxu0  ;;  %3283 = vmatprep.subr.bf16.mxu1 %v6160_v10 }
 0x2a1   : > { %v2110_v5 = vmax.f32 %v1915_v13, %v2046_v58  ;;  %v1921_v7 = vadd.f32 %v1920_v51, %v6403_v17  ;;  %v2163_v47 = vpack.c.bf16 %v2109_v39, %v2107_v29  ;;  %v2047_v50 = vmul.f32 0.2, %v1919_v37  ;;  %v6173_v39 = vld [vmem:[%s6427_s15 + $0x3b0] ss:$8 sps:$4 sm:$0xff]  }
 0x2a2   : > { %v1922_v53 = vpop.f32.mrf.mxu0 }
 0x2a3   : > { %v1923_v45 = vadd.f32 %v1922_v53, %v6401_v16  ;;  %v2164_v57 = vpack.c.bf16 %v2110_v5, %v2108_v62  ;;  %3284 = vmatpush1.bf16.msra.mxu1 %v6158_v59  ;;  %v2048_v14 = vmul.f32 0.2, %v1921_v7  ;;  %v2111_v0 = vmax.f32 %v1919_v37, %v2047_v50  ;;  %v6178_v62 = vld [vmem:[%s6427_s15 + $0x3a4] ss:$8 sps:$4 sm:$0xff]  }
 0x2a4   : > { %v1924_v9 = vpop.f32.mrf.mxu0  ;;  %3285 = vmatprep.subr.bf16.mxu1 %v6163_v43 }
 0x2a5   : > { %v2049_v56 = vmul.f32 0.2, %v1923_v45  ;;  %v1925_v15 = vadd.f32 %v1924_v9, %v6403_v17  ;;  %2460 = vmatprep.mubr.bf16.mxu1 %v2164_v57  ;;  %v2112_v44 = vmax.f32 %v1921_v7, %v2048_v14  ;;  %v6176_v57 = vld [vmem:[%s6427_s15 + $0x3a0] ss:$8 sps:$4 sm:$0xff]   ;;  %v6181_v9 = vld [vmem:[%s6427_s15 + $0x394] ss:$8 sps:$4 sm:$0xff]  }
 0x2a6   : > { %v1928_v6 = vpop.f32.mrf.mxu0  ;;  %2461 = vmatmul.mubr.bf16.gmra.mxu1 %v2163_v47 }
 0x2a7   : > { %v2050_v24 = vmul.f32 0.2, %v1925_v15  ;;  %3286 = vmatpush2.bf16.msra.mxu1 %v6161_v1  ;;  %v2113_v54 = vmax.f32 %v1923_v45, %v2049_v56  ;;  %v1929_v32 = vadd.f32 %v1928_v6, %v6401_v16 }
 0x2a8   : > { %v1930_v31 = vpop.f32.mrf.mxu0  ;;  %3287 = vmatprep.subr.bf16.mxu1 %v6166_v11 }
 0x2a9   : > { %v2114_v12 = vmax.f32 %v1925_v15, %v2050_v24  ;;  %v1931_v8 = vadd.f32 %v1930_v31, %v6403_v17  ;;  %v2165_v30 = vpack.c.bf16 %v2113_v54, %v2111_v0  ;;  %v2051_v42 = vmul.f32 0.2, %v1929_v32  ;;  %v6179_v54 = vld [vmem:[%s6427_s15 + $0x390] ss:$8 sps:$4 sm:$0xff]  }
 0x2aa   : > { %v1932_v26 = vpop.f32.mrf.mxu0 }
 0x2ab   : > { %v1933_v33 = vadd.f32 %v1932_v26, %v6401_v16  ;;  %v2166_v27 = vpack.c.bf16 %v2114_v12, %v2112_v44  ;;  %3288 = vmatpush2.bf16.msra.mxu1 %v6164_v38  ;;  %v2052_v35 = vmul.f32 0.2, %v1931_v8  ;;  %v2115_v13 = vmax.f32 %v1929_v32, %v2051_v42 }
 0x2ac   : > { %v1934_v28 = vpop.f32.mrf.mxu0  ;;  %3289 = vmatprep.subr.bf16.mxu1 %v6169_v25 }
 0x2ad   : > { %v2053_v36 = vmul.f32 0.2, %v1933_v33  ;;  %v1935_v41 = vadd.f32 %v1934_v28, %v6403_v17  ;;  %2470 = vmatprep.mubr.bf16.mxu1 %v2166_v27  ;;  %v2116_v10 = vmax.f32 %v1931_v8, %v2052_v35 }
 0x2ae   : > { %v1938_v49 = vpop.f32.mrf.mxu0  ;;  %2471 = vmatmul.mubr.bf16.gmra.mxu1 %v2165_v30 }
 0x2af   : > { %v2054_v55 = vmul.f32 0.2, %v1935_v41  ;;  %3290 = vmatpush2.bf16.msra.mxu1 %v6167_v2  ;;  %v2117_v63 = vmax.f32 %v1933_v33, %v2053_v36  ;;  %v1939_v40 = vadd.f32 %v1938_v49, %v6401_v16 }
 0x2b0   : > { %v1940_v52 = vpop.f32.mrf.mxu0  ;;  %3291 = vmatprep.subr.bf16.mxu1 %v6172_v34 }
 0x2b1   : > { %v2118_v48 = vmax.f32 %v1935_v41, %v2054_v55  ;;  %v1941_v4 = vadd.f32 %v1940_v52, %v6403_v17  ;;  %v2167_v51 = vpack.c.bf16 %v2117_v63, %v2115_v13  ;;  %v2055_v37 = vmul.f32 0.2, %v1939_v40 }
 0x2b2   : > { %v1942_v46 = vpop.f32.mrf.mxu0 }
 0x2b3   : > { %v1943_v58 = vadd.f32 %v1942_v46, %v6401_v16  ;;  %v2168_v59 = vpack.c.bf16 %v2118_v48, %v2116_v10  ;;  %3292 = vmatpush2.bf16.msra.mxu1 %v6170_v60  ;;  %v2056_v5 = vmul.f32 0.2, %v1941_v4  ;;  %v2119_v15 = vmax.f32 %v1939_v40, %v2055_v37 }
 0x2b4   : > { %v1944_v43 = vpop.f32.mrf.mxu0  ;;  %3293 = vmatprep.subr.bf16.mxu1 %v6175_v61 }
 0x2b5   : > { %v2057_v7 = vmul.f32 0.2, %v1943_v58  ;;  %v1945_v29 = vadd.f32 %v1944_v43, %v6403_v17  ;;  %2480 = vmatprep.mubr.bf16.mxu1 %v2168_v59  ;;  %v2120_v11 = vmax.f32 %v1941_v4, %v2056_v5 }
 0x2b6   : > { %v1948_v53 = vpop.f32.mrf.mxu0  ;;  %2481 = vmatmul.mubr.bf16.gmra.mxu1 %v2167_v51 }
 0x2b7   : > { %v2058_v45 = vmul.f32 0.2, %v1945_v29  ;;  %3294 = vmatpush2.bf16.msra.mxu1 %v6173_v39  ;;  %v2121_v1 = vmax.f32 %v1943_v58, %v2057_v7  ;;  %v1949_v50 = vadd.f32 %v1948_v53, %v6401_v16 }
 0x2b8   : > { %v1950_v47 = vpop.f32.mrf.mxu0  ;;  %3295 = vmatprep.subr.bf16.mxu1 %v6178_v62 }
 0x2b9   : > { %v2122_v14 = vmax.f32 %v1945_v29, %v2058_v45  ;;  %v1951_v56 = vadd.f32 %v1950_v47, %v6403_v17  ;;  %v2169_v31 = vpack.c.bf16 %v2121_v1, %v2119_v15  ;;  %v2059_v0 = vmul.f32 0.2, %v1949_v50  ;;  %v2806_v45 = vld [vmem:[%s6854_s26] sm:$0xff] }
 0x2ba   : > { %v1952_v6 = vpop.f32.mrf.mxu0  ;;  %v6184_v15 = vld [vmem:[%s6427_s15 + $0x384] ss:$8 sps:$4 sm:$0xff]  }
 0x2bb   : > { %v1953_v24 = vadd.f32 %v1952_v6, %v6401_v16  ;;  %v2170_v38 = vpack.c.bf16 %v2122_v14, %v2120_v11  ;;  %3296 = vmatpush2.bf16.msra.mxu1 %v6176_v57  ;;  %v2060_v44 = vmul.f32 0.2, %v1951_v56  ;;  %v2123_v34 = vmax.f32 %v1949_v50, %v2059_v0  ;;  %v2807_v57 = vld [vmem:[%s6854_s26 + $0x8] sm:$0xff] }
 0x2bc   : > { %v1954_v25 = vpop.f32.mrf.mxu0  ;;  %3297 = vmatprep.subr.bf16.mxu1 %v6181_v9  ;;  %v2838_v9 = vpack.c.bf16 %v2807_v57, %v2806_v45 }
 0x2bd   : > { %v2061_v12 = vmul.f32 0.2, %v1953_v24  ;;  %v1955_v8 = vadd.f32 %v1954_v25, %v6403_v17  ;;  %2490 = vmatprep.mubr.bf16.mxu1 %v2170_v38  ;;  %v2124_v2 = vmax.f32 %v1951_v56, %v2060_v44  ;;  %v6182_v38 = vld [vmem:[%s6427_s15 + $0x380] ss:$8 sps:$4 sm:$0xff]  }
 0x2be   : > { %v1958_v32 = vpop.f32.mrf.mxu0  ;;  %2491 = vmatmul.mubr.bf16.gmra.mxu1 %v2169_v31  ;;  %5387 = vmatmul.mubr.msk.bf16.vlgmr.msra.gmra.mxu0 %vm2860_vm2, %v2838_v9 }
 0x2bf   : > { %v2062_v26 = vmul.f32 0.2, %v1955_v8  ;;  %3298 = vmatpush2.bf16.msra.mxu1 %v6179_v54  ;;  %v2125_v33 = vmax.f32 %v1953_v24, %v2061_v12  ;;  %v1959_v35 = vadd.f32 %v1958_v32, %v6401_v16  ;;  %2958 = vmatprep.mubr.bf16.mxu0 %v6291_v3 }
 0x2c0   : > { %v1960_v27 = vpop.f32.mrf.mxu0  ;;  %3299 = vmatprep.subr.bf16.mxu1 %v6184_v15 }
 0x2c1   : > { %v2126_v30 = vmax.f32 %v1955_v8, %v2062_v26  ;;  %v1961_v28 = vadd.f32 %v1960_v27, %v6403_v17  ;;  %v2171_v49 = vpack.c.bf16 %v2125_v33, %v2123_v34  ;;  %v2063_v61 = vmul.f32 0.2, %v1959_v35  ;;  %v2808_v27 = vld [vmem:[%s6854_s26 + $0x10] sm:$0xff] }
 0x2c2   : > { %v1962_v36 = vpop.f32.mrf.mxu0 }
 0x2c3   : > { %v1963_v41 = vadd.f32 %v1962_v36, %v6401_v16  ;;  %v2172_v42 = vpack.c.bf16 %v2126_v30, %v2124_v2  ;;  %v2064_v60 = vmul.f32 0.2, %v1961_v28  ;;  %v2127_v59 = vmax.f32 %v1959_v35, %v2063_v61  ;;  %3300 = vmatpush2.bf16.msra.mxu1 %v6182_v38  ;;  %v2809_v2 = vld [vmem:[%s6854_s26 + $0x18] sm:$0xff] }
 0x2c4   : > { %v1964_v55 = vpop.f32.mrf.mxu0  ;;  %v2839_v34 = vpack.c.bf16 %v2809_v2, %v2808_v27 }
 0x2c5   : > { %v2065_v63 = vmul.f32 0.2, %v1963_v41  ;;  %v1965_v52 = vadd.f32 %v1964_v55, %v6403_v17  ;;  %2500 = vmatprep.mubr.bf16.mxu1 %v2172_v42  ;;  %v2128_v40 = vmax.f32 %v1961_v28, %v2064_v60 }
 0x2c6   : > { %v1968_v10 = vpop.f32.mrf.mxu0  ;;  %2501 = vmatmul.mubr.bf16.gmra.mxu1 %v2171_v49  ;;  %5388 = vmatmul.mubr.msk.bf16.gmra.mxu0 %vm2860_vm2, %v2839_v34 }
 0x2c7   : > { %v2066_v48 = vmul.f32 0.2, %v1965_v52  ;;  %v2129_v4 = vmax.f32 %v1963_v41, %v2065_v63  ;;  %v1969_v39 = vadd.f32 %v1968_v10, %v6401_v16  ;;  %2968 = vmatprep.mubr.bf16.mxu0 %v6291_v3 }
 0x2c8   : > { %v1970_v13 = vpop.f32.mrf.mxu0 }
 0x2c9   : > { %v2130_v46 = vmax.f32 %v1965_v52, %v2066_v48  ;;  %v1971_v58 = vadd.f32 %v1970_v13, %v6403_v17  ;;  %v2173_v5 = vpack.c.bf16 %v2129_v4, %v2127_v59  ;;  %v2067_v1 = vmul.f32 0.2, %v1969_v39  ;;  %v2811_v59 = vld [vmem:[%s6854_s26 + $0x28] sm:$0xff] }
 0x2ca   : > { %v1972_v51 = vpop.f32.mrf.mxu0 }
 0x2cb   : > { %v1973_v43 = vadd.f32 %v1972_v51, %v6401_v16  ;;  %v2174_v62 = vpack.c.bf16 %v2130_v46, %v2128_v40  ;;  %v2068_v29 = vmul.f32 0.2, %v1971_v58  ;;  %v2131_v54 = vmax.f32 %v1969_v39, %v2067_v1 }
 0x2cc   : > { %v1974_v7 = vpop.f32.mrf.mxu0 }
 0x2cd   : > { %v2069_v37 = vmul.f32 0.2, %v1973_v43  ;;  %v1975_v53 = vadd.f32 %v1974_v7, %v6403_v17  ;;  %2510 = vmatprep.mubr.bf16.mxu1 %v2174_v62  ;;  %v2132_v50 = vmax.f32 %v1971_v58, %v2068_v29  ;;  %v2810_v58 = vld [vmem:[%s6854_s26 + $0x20] sm:$0xff] }
 0x2ce   : > { %v1978_v47 = vpop.f32.mrf.mxu0  ;;  %2511 = vmatmul.mubr.bf16.gmra.mxu1 %v2173_v5 }
 0x2cf   : > { %v2070_v11 = vmul.f32 0.2, %v1975_v53  ;;  %v2133_v14 = vmax.f32 %v1973_v43, %v2069_v37  ;;  %v1979_v31 = vadd.f32 %v1978_v47, %v6401_v16  ;;  %v2840_v43 = vpack.c.bf16 %v2811_v59, %v2810_v58 }
 0x2d0   : > { %v1980_v56 = vpop.f32.mrf.mxu0 }
 0x2d1   : > { %v2134_v6 = vmax.f32 %v1975_v53, %v2070_v11  ;;  %v1981_v24 = vadd.f32 %v1980_v56, %v6403_v17  ;;  %v2175_v8 = vpack.c.bf16 %v2133_v14, %v2131_v54  ;;  %v2071_v30 = vmul.f32 0.2, %v1979_v31  ;;  %5389 = vmatmul.mubr.msk.bf16.gmra.mxu0 %vm2860_vm2, %v2840_v43 }
 0x2d2   : > { %v1982_v25 = vpop.f32.mrf.mxu0  ;;  %2978 = vmatprep.mubr.bf16.mxu0 %v6291_v3 }
 0x2d3   : > { %v1983_v44 = vadd.f32 %v1982_v25, %v6401_v16  ;;  %v2176_v12 = vpack.c.bf16 %v2134_v6, %v2132_v50  ;;  %v2072_v32 = vmul.f32 0.2, %v1981_v24  ;;  %v2135_v60 = vmax.f32 %v1979_v31, %v2071_v30  ;;  %v2812_v6 = vld [vmem:[%s6854_s26 + $0x30] sm:$0xff] }
 0x2d4   : > { %v1984_v0 = vpop.f32.mrf.mxu0 }
 0x2d5   : > { %v2073_v26 = vmul.f32 0.2, %v1983_v44  ;;  %v1985_v33 = vadd.f32 %v1984_v0, %v6403_v17  ;;  %2520 = vmatprep.mubr.bf16.mxu1 %v2176_v12  ;;  %v2136_v42 = vmax.f32 %v1981_v24, %v2072_v32  ;;  %v2813_v24 = vld [vmem:[%s6854_s26 + $0x38] sm:$0xff] }
 0x2d6   : > { %v1988_v28 = vpop.f32.mrf.mxu0  ;;  %2521 = vmatmul.mubr.bf16.gmra.mxu1 %v2175_v8  ;;  %v2841_v31 = vpack.c.bf16 %v2813_v24, %v2812_v6  ;;  %v2821_v6 = vld [vmem:[%s6854_s26 + $0x78] sm:$0xff] }
 0x2d7   : > { %v2074_v35 = vmul.f32 0.2, %v1985_v33  ;;  %v2137_v36 = vmax.f32 %v1983_v44, %v2073_v26  ;;  %v1989_v63 = vadd.f32 %v1988_v28, %v6401_v16 }
 0x2d8   : > { %v1990_v41 = vpop.f32.mrf.mxu0 }
 0x2d9   : > { %v2138_v49 = vmax.f32 %v1985_v33, %v2074_v35  ;;  %v1991_v55 = vadd.f32 %v1990_v41, %v6403_v17  ;;  %v2177_v48 = vpack.c.bf16 %v2137_v36, %v2135_v60  ;;  %v2075_v39 = vmul.f32 0.2, %v1989_v63  ;;  %5390 = vmatmul.mubr.msk.bf16.gmra.mxu0 %vm2860_vm2, %v2841_v31 }
 0x2da   : > { %v1992_v52 = vpop.f32.mrf.mxu0  ;;  %2988 = vmatprep.mubr.bf16.mxu0 %v6291_v3 }
 0x2db   : > { %v1993_v61 = vadd.f32 %v1992_v52, %v6401_v16  ;;  %v2178_v10 = vpack.c.bf16 %v2138_v49, %v2136_v42  ;;  %v2076_v13 = vmul.f32 0.2, %v1991_v55  ;;  %v2139_v45 = vmax.f32 %v1989_v63, %v2075_v39  ;;  %v2814_v42 = vld [vmem:[%s6854_s26 + $0x40] sm:$0xff]  ;;  %v2815_v49 = vld [vmem:[%s6854_s26 + $0x48] sm:$0xff] }
 0x2dc   : > { %v1994_v4 = vpop.f32.mrf.mxu0  ;;  %v2842_v63 = vpack.c.bf16 %v2815_v49, %v2814_v42  ;;  %v2832_v42 = vld [vmem:[%s6854_s26 + $0xd0] sm:$0xff]  ;;  %v2833_v49 = vld [vmem:[%s6854_s26 + $0xd8] sm:$0xff] }
 0x2dd   : > { %v2077_v40 = vmul.f32 0.2, %v1993_v61  ;;  %v1995_v46 = vadd.f32 %v1994_v4, %v6403_v17  ;;  %2530 = vmatprep.mubr.bf16.mxu1 %v2178_v10  ;;  %v2140_v29 = vmax.f32 %v1991_v55, %v2076_v13 }
 0x2de   : > { %v1998_v51 = vpop.f32.mrf.mxu0  ;;  %2531 = vmatmul.mubr.bf16.gmra.mxu1 %v2177_v48 }
 0x2df   : > { %v2078_v62 = vmul.f32 0.2, %v1995_v46  ;;  %v2141_v5 = vmax.f32 %v1993_v61, %v2077_v40  ;;  %v1999_v57 = vadd.f32 %v1998_v51, %v6401_v16 }
 0x2e0   : > { %v2000_v7 = vpop.f32.mrf.mxu0 }
 0x2e1   : > { %v2142_v37 = vmax.f32 %v1995_v46, %v2078_v62  ;;  %v2001_v53 = vadd.f32 %v2000_v7, %v6403_v17  ;;  %v2179_v11 = vpack.c.bf16 %v2141_v5, %v2139_v45  ;;  %v2079_v38 = vmul.f32 0.2, %v1999_v57  ;;  %5391 = vmatmul.mubr.msk.bf16.gmra.mxu0 %vm2860_vm2, %v2842_v63  ;;  %v6193_v63 = vld [vmem:[%s6427_s15 + $0x454] ss:$8 sps:$4 sm:$0xff]  }
 0x2e2   : > { %v2002_v1 = vpop.f32.mrf.mxu0  ;;  %2998 = vmatprep.mubr.bf16.mxu0 %v6291_v3 }
 0x2e3   : > { %v2003_v47 = vadd.f32 %v2002_v1, %v6401_v16  ;;  %v2180_v9 = vpack.c.bf16 %v2142_v37, %v2140_v29  ;;  %v2080_v56 = vmul.f32 0.2, %v2001_v53  ;;  %v2143_v26 = vmax.f32 %v1999_v57, %v2079_v38  ;;  %v2816_v29 = vld [vmem:[%s6854_s26 + $0x50] sm:$0xff]  ;;  %v2817_v37 = vld [vmem:[%s6854_s26 + $0x58] sm:$0xff]  ;;  %v2822_v38 = vld [vmem:[%s6854_s26 + $0x80] sm:$0xff] }
 0x2e4   : > { %v2004_v14 = vpop.f32.mrf.mxu0  ;;  %v2843_v45 = vpack.c.bf16 %v2817_v37, %v2816_v29 }
 0x2e5   : > { %v2081_v15 = vmul.f32 0.2, %v2003_v47  ;;  %v2005_v50 = vadd.f32 %v2004_v14, %v6403_v17  ;;  %2540 = vmatprep.mubr.bf16.mxu1 %v2180_v9  ;;  %v2144_v8 = vmax.f32 %v2001_v53, %v2080_v56  ;;  %v2818_v14 = vld [vmem:[%s6854_s26 + $0x60] sm:$0xff]  ;;  %v2819_v56 = vld [vmem:[%s6854_s26 + $0x68] sm:$0xff] }
 0x2e6   : > { %v2008_v54 = vpop.f32.mrf.mxu0  ;;  %2541 = vmatmul.mubr.bf16.gmra.mxu1 %v2179_v11 }
 0x2e7   : > { %v2082_v25 = vmul.f32 0.2, %v2005_v50  ;;  %v2145_v44 = vmax.f32 %v2003_v47, %v2081_v15  ;;  %v2009_v33 = vadd.f32 %v2008_v54, %v6401_v16  ;;  %v2844_v15 = vpack.c.bf16 %v2819_v56, %v2818_v14  ;;  %v2823_v54 = vld [vmem:[%s6854_s26 + $0x88] sm:$0xff] }
 0x2e8   : > { %v2010_v12 = vpop.f32.mrf.mxu0  ;;  %v2846_v31 = vpack.c.bf16 %v2823_v54, %v2822_v38  ;;  %v6208_v54 = vld [vmem:[%s6427_s15 + $0x404] ss:$8 sps:$4 sm:$0xff]  }
 0x2e9   : > { %v2146_v0 = vmax.f32 %v2005_v50, %v2082_v25  ;;  %v2011_v32 = vadd.f32 %v2010_v12, %v6403_v17  ;;  %v2181_v28 = vpack.c.bf16 %v2145_v44, %v2143_v26  ;;  %v2083_v55 = vmul.f32 0.2, %v2009_v33  ;;  %5392 = vmatmul.mubr.msk.bf16.gmra.mxu0 %vm2860_vm2, %v2843_v45  ;;  %v2820_v50 = vld [vmem:[%s6854_s26 + $0x70] sm:$0xff]  ;;  %v2825_v44 = vld [vmem:[%s6854_s26 + $0x98] sm:$0xff] }
 0x2ea   : > { %v2012_v27 = vpop.f32.mrf.mxu0  ;;  %3008 = vmatprep.mubr.bf16.mxu0 %v6291_v3  ;;  %v2845_v24 = vpack.c.bf16 %v2821_v6, %v2820_v50  ;;  %v2824_v25 = vld [vmem:[%s6854_s26 + $0x90] sm:$0xff] }
 0x2eb   : > { %v2013_v2 = vadd.f32 %v2012_v27, %v6401_v16  ;;  %v2182_v30 = vpack.c.bf16 %v2146_v0, %v2144_v8  ;;  %v2084_v35 = vmul.f32 0.2, %v2011_v32  ;;  %v2147_v40 = vmax.f32 %v2009_v33, %v2083_v55  ;;  %v2826_v8 = vld [vmem:[%s6854_s26 + $0xa0] sm:$0xff]  ;;  %v2827_v0 = vld [vmem:[%s6854_s26 + $0xa8] sm:$0xff]  ;;  %v2828_v26 = vld [vmem:[%s6854_s26 + $0xb0] sm:$0xff] }
 0x2ec   : > { %v2014_v34 = vpop.f32.mrf.mxu0  ;;  %v2847_v12 = vpack.c.bf16 %v2825_v44, %v2824_v25  ;;  %v2829_v33 = vld [vmem:[%s6854_s26 + $0xb8] sm:$0xff]  ;;  %v2851_v55 = vpack.c.bf16 %v2833_v49, %v2832_v42 }
 0x2ed   : > { %v2085_v36 = vmul.f32 0.2, %v2013_v2  ;;  %v2015_v41 = vadd.f32 %v2014_v34, %v6403_v17  ;;  %2550 = vmatprep.mubr.bf16.mxu1 %v2182_v30  ;;  %v2148_v48 = vmax.f32 %v2011_v32, %v2084_v35  ;;  %v2848_v32 = vpack.c.bf16 %v2827_v0, %v2826_v8  ;;  %v6187_v30 = vld [vmem:[%s6427_s15 + $0x474] ss:$8 sps:$4 sm:$0xff]   ;;  %v2831_v34 = vld [vmem:[%s6854_s26 + $0xc8] sm:$0xff] }
 0x2ee   : > { %v2018_v60 = vpop.f32.mrf.mxu0  ;;  %2551 = vmatmul.mubr.bf16.gmra.mxu1 %v2181_v28  ;;  %v2849_v27 = vpack.c.bf16 %v2829_v33, %v2828_v26  ;;  %3895 = vmatprep.subr.bf16.mxu0 %v6187_v30  ;;  %v2830_v28 = vld [vmem:[%s6854_s26 + $0xc0] sm:$0xff]  ;;  %v6203_v50 = vld [vmem:[%s6427_s15 + $0x410] ss:$8 sps:$4 sm:$0xff]  }
 0x2ef   : > { %v2086_v52 = vmul.f32 0.2, %v2015_v41  ;;  %v2149_v61 = vmax.f32 %v2013_v2, %v2085_v36  ;;  %v2019_v46 = vadd.f32 %v2018_v60, %v6401_v16  ;;  %v6185_v2 = vld [vmem:[%s6427_s15 + $0x470] ss:$8 sps:$4 sm:$0xff]   ;;  %v2850_v35 = vpack.c.bf16 %v2831_v34, %v2830_v28  ;;  %v6188_v36 = vld [vmem:[%s6427_s15 + $0x460] ss:$8 sps:$4 sm:$0xff]  }
 0x2f0   : > { %v2020_v10 = vpop.f32.mrf.mxu0  ;;  %3896 = vmatpush1.bf16.msra.mxu0 %v6185_v2  ;;  %v6191_v60 = vld [vmem:[%s6427_s15 + $0x450] ss:$8 sps:$4 sm:$0xff]   ;;  %v6206_v26 = vld [vmem:[%s6427_s15 + $0x400] ss:$8 sps:$4 sm:$0xff]   ;;  %v6211_v2 = vld [vmem:[%s6427_s15 + $0x4f4] ss:$8 sps:$4 sm:$0xff]  }
 0x2f1   : > { %v2150_v4 = vmax.f32 %v2015_v41, %v2086_v52  ;;  %v2021_v13 = vadd.f32 %v2020_v10, %v6403_v17  ;;  %v2183_v51 = vpack.c.bf16 %v2149_v61, %v2147_v40  ;;  %v2087_v53 = vmul.f32 0.2, %v2019_v46  ;;  %5393 = vmatmul.mubr.msk.bf16.gmra.mxu0 %vm2860_vm2, %v2844_v15  ;;  %v6190_v41 = vld [vmem:[%s6427_s15 + $0x464] ss:$8 sps:$4 sm:$0xff]   ;;  %v2837_v40 = vld [vmem:[%s6854_s26 + $0xf8] sm:$0xff] }
 0x2f2   : > { %v2022_v58 = vpop.f32.mrf.mxu0  ;;  %3018 = vmatprep.mubr.bf16.mxu0 %v6291_v3  ;;  %3897 = vmatprep.subr.bf16.mxu0 %v6190_v41  ;;  %v2834_v52 = vld [vmem:[%s6854_s26 + $0xe0] sm:$0xff]  ;;  %v2835_v61 = vld [vmem:[%s6854_s26 + $0xe8] sm:$0xff]  ;;  %v6209_v42 = vld [vmem:[%s6427_s15 + $0x4f0] ss:$8 sps:$4 sm:$0xff]  }
 0x2f3   : > { %v2023_v59 = vadd.f32 %v2022_v58, %v6401_v16  ;;  %v2184_v39 = vpack.c.bf16 %v2150_v4, %v2148_v48  ;;  %v2088_v62 = vmul.f32 0.2, %v2021_v13  ;;  %v2852_v10 = vpack.c.bf16 %v2835_v61, %v2834_v52  ;;  %v6194_v48 = vld [vmem:[%s6427_s15 + $0x440] ss:$8 sps:$4 sm:$0xff]   ;;  %v6196_v4 = vld [vmem:[%s6427_s15 + $0x444] ss:$8 sps:$4 sm:$0xff]  }
 0x2f4   : > { %v2024_v43 = vpop.f32.mrf.mxu0  ;;  %3898 = vmatpush1.bf16.msra.mxu0 %v6188_v36 }
 0x2f5   : > { %v2089_v5 = vmul.f32 0.2, %v2023_v59  ;;  %v2025_v7 = vadd.f32 %v2024_v43, %v6403_v17  ;;  %2560 = vmatprep.mubr.bf16.mxu1 %v2184_v39  ;;  %v2152_v16 = vmax.f32 %v2021_v13, %v2088_v62  ;;  %v2151_v17 = vmax.f32 %v2019_v46, %v2087_v53  ;;  %3899 = vmatprep.subr.bf16.mxu0 %v6193_v63  ;;  %v2836_v13 = vld [vmem:[%s6854_s26 + $0xf0] sm:$0xff]  ;;  %v6214_v63 = vld [vmem:[%s6427_s15 + $0x4e4] ss:$8 sps:$4 sm:$0xff]  }
 0x2f6   : > { %2561 = vmatmul.mubr.bf16.gmra.mxu1 %v2183_v51  ;;  %v2853_v58 = vpack.c.bf16 %v2837_v40, %v2836_v13  ;;  %v6197_v51 = vld [vmem:[%s6427_s15 + $0x430] ss:$8 sps:$4 sm:$0xff]   ;;  %v6199_v43 = vld [vmem:[%s6427_s15 + $0x434] ss:$8 sps:$4 sm:$0xff]  }
 0x2f7   : > { %v2090_v57 = vmul.f32 0.2, %v2025_v7  ;;  %v2153_v1 = vmax.f32 %v2023_v59, %v2089_v5 }
 0x2f8   : > { %3900 = vmatpush1.bf16.msra.mxu0 %v6191_v60 }
 0x2f9   : > { %v2154_v47 = vmax.f32 %v2025_v7, %v2090_v57  ;;  %v2185_v11 = vpack.c.bf16 %v2153_v1, %v2151_v17  ;;  %5394 = vmatmul.mubr.msk.bf16.gmra.mxu0 %vm2860_vm2, %v2845_v24  ;;  %3901 = vmatprep.subr.bf16.mxu0 %v6196_v4  ;;  %v6200_v1 = vld [vmem:[%s6427_s15 + $0x420] ss:$8 sps:$4 sm:$0xff]   ;;  %v6205_v17 = vld [vmem:[%s6427_s15 + $0x414] ss:$8 sps:$4 sm:$0xff]  }
 0x2fa   : > { %3028 = vmatprep.mubr.bf16.mxu0 %v6291_v3 }
 0x2fb   : > { %v2186_v9 = vpack.c.bf16 %v2154_v47, %v2152_v16  ;;  %v6202_v16 = vld [vmem:[%s6427_s15 + $0x424] ss:$8 sps:$4 sm:$0xff]  }
 0x2fc   : > { %3902 = vmatpush1.bf16.msra.mxu0 %v6194_v48 }
 0x2fd   : > { %2570 = vmatprep.mubr.bf16.mxu1 %v2186_v9  ;;  %3903 = vmatprep.subr.bf16.mxu0 %v6199_v43 }
 0x2fe   : > { %2571 = vmatmul.mubr.bf16.gmra.mxu1 %v2185_v11 }
 0x300   : > { %3904 = vmatpush1.bf16.msra.mxu0 %v6197_v51 }
 0x301   : > { %5395 = vmatmul.mubr.msk.bf16.gmra.mxu0 %vm2860_vm2, %v2846_v31  ;;  %3905 = vmatprep.subr.bf16.mxu0 %v6202_v16 }
 0x302   : > { %3038 = vmatprep.mubr.bf16.mxu0 %v6291_v3 }
 0x304   : > { %3906 = vmatpush1.bf16.msra.mxu0 %v6200_v1 }
 0x305   : > { %3907 = vmatprep.subr.bf16.mxu0 %v6205_v17 }
 0x308   : > { %3908 = vmatpush1.bf16.msra.mxu0 %v6203_v50 }
 0x309   : > { %5396 = vmatmul.mubr.msk.bf16.gmra.mxu0 %vm2860_vm2, %v2847_v12  ;;  %3909 = vmatprep.subr.bf16.mxu0 %v6208_v54 }
 0x30a   : > { %3048 = vmatprep.mubr.bf16.mxu0 %v6291_v3 }
 0x30c   : > { %3910 = vmatpush1.bf16.msra.mxu0 %v6206_v26 }
 0x30d   : > { %3911 = vmatprep.subr.bf16.mxu0 %v6211_v2 }
 0x310   : > { %3912 = vmatpush2.bf16.msra.mxu0 %v6209_v42  ;;  %v6224_v42 = vld [vmem:[%s6427_s15 + $0x4a0] ss:$8 sps:$4 sm:$0xff]  }
 0x311   : > { %5397 = vmatmul.mubr.msk.bf16.gmra.mxu0 %vm2860_vm2, %v2848_v32  ;;  %3913 = vmatprep.subr.bf16.mxu0 %v6214_v63 }
 0x312   : > { %3058 = vmatprep.mubr.bf16.mxu0 %v6291_v3 }
 0x319   : > { %5398 = vmatmul.mubr.msk.bf16.gmra.mxu0 %vm2860_vm2, %v2849_v27 }
 0x31a   : > { %3068 = vmatprep.mubr.bf16.mxu0 %v6291_v3 }
 0x321   : > { %5399 = vmatmul.mubr.msk.bf16.gmra.mxu0 %vm2860_vm2, %v2850_v35 }
 0x322   : > { %3078 = vmatprep.mubr.bf16.mxu0 %v6291_v3 }
 0x329   : > { %5400 = vmatmul.mubr.msk.bf16.gmra.mxu0 %vm2860_vm2, %v2851_v55 }
 0x32a   : > { %3088 = vmatprep.mubr.bf16.mxu0 %v6291_v3 }
 0x331   : > { %5401 = vmatmul.mubr.msk.bf16.gmra.mxu0 %vm2860_vm2, %v2852_v10 }
 0x332   : > { %3098 = vmatprep.mubr.bf16.mxu0 %v6291_v3 }
 0x339   : > { %5402 = vmatmul.mubr.msk.bf16.gmra.mxu0 %vm2860_vm2, %v2853_v58 }
 0x346   : > { %v2422_v46 = vpop.f32.mrf.mxu1 }
 0x347   : > { %v2423_v3 = vadd.f32 %v2422_v46, %v6406_v18  ;;  %v6212_v46 = vld [vmem:[%s6427_s15 + $0x4e0] ss:$8 sps:$4 sm:$0xff]  }
 0x348   : > { %v2424_v59 = vpop.f32.mrf.mxu1  ;;  %3914 = vmatpush2.bf16.msra.mxu0 %v6212_v46 }
 0x349   : > { %v2425_v39 = vadd.f32 %v2424_v59, %v6408_v19  ;;  %v2581_v45 = vmul.f32 0.2, %v2423_v3 }
 0x34a   : > { %v2426_v62 = vpop.f32.mrf.mxu1 }
 0x34b   : > { %v2427_v5 = vadd.f32 %v2426_v62, %v6406_v18  ;;  %v2582_v29 = vmul.f32 0.2, %v2425_v39  ;;  %v2645_v6 = vmax.f32 %v2423_v3, %v2581_v45 }
 0x34c   : > { %v2428_v7 = vpop.f32.mrf.mxu1 }
 0x34d   : > { %v2583_v37 = vmul.f32 0.2, %v2427_v5  ;;  %v2429_v53 = vadd.f32 %v2428_v7, %v6408_v19  ;;  %v2646_v14 = vmax.f32 %v2425_v39, %v2582_v29  ;;  %v6217_v39 = vld [vmem:[%s6427_s15 + $0x4d4] ss:$8 sps:$4 sm:$0xff]   ;;  %v6215_v29 = vld [vmem:[%s6427_s15 + $0x4d0] ss:$8 sps:$4 sm:$0xff]  }
 0x34e   : > { %v2432_v57 = vpop.f32.mrf.mxu1  ;;  %3915 = vmatprep.subr.bf16.mxu0 %v6217_v39 }
 0x34f   : > { %v2584_v47 = vmul.f32 0.2, %v2429_v53  ;;  %v2647_v9 = vmax.f32 %v2427_v5, %v2583_v37  ;;  %v2433_v24 = vadd.f32 %v2432_v57, %v6406_v18  ;;  %v6220_v57 = vld [vmem:[%s6427_s15 + $0x4c4] ss:$8 sps:$4 sm:$0xff]   ;;  %3916 = vmatpush2.bf16.msra.mxu0 %v6215_v29 }
 0x350   : > { %v2434_v11 = vpop.f32.mrf.mxu1  ;;  %3917 = vmatprep.subr.bf16.mxu0 %v6220_v57 }
 0x351   : > { %v2648_v56 = vmax.f32 %v2429_v53, %v2584_v47  ;;  %v2435_v15 = vadd.f32 %v2434_v11, %v6408_v19  ;;  %v6968_v44 = vpack.c.bf16 %v2647_v9, %v2645_v6  ;;  %v2585_v33 = vmul.f32 0.2, %v2433_v24  ;;  %v6223_v6 = vld [vmem:[%s6427_s15 + $0x4b4] ss:$8 sps:$4 sm:$0xff]  }
 0x352   : > { %v2436_v38 = vpop.f32.mrf.mxu1 }
 0x353   : > { %v2437_v31 = vadd.f32 %v2436_v38, %v6406_v18  ;;  %v6966_v25 = vpack.c.bf16 %v2648_v56, %v2646_v14  ;;  %v2586_v8 = vmul.f32 0.2, %v2435_v15  ;;  %v2649_v49 = vmax.f32 %v2433_v24, %v2585_v33  ;;  %v6218_v56 = vld [vmem:[%s6427_s15 + $0x4c0] ss:$8 sps:$4 sm:$0xff]  }
 0x354   : > { %v2438_v12 = vpop.f32.mrf.mxu1  ;;  %3918 = vmatpush2.bf16.msra.mxu0 %v6218_v56 }
 0x355   : > { %v2587_v0 = vmul.f32 0.2, %v2437_v31  ;;  %v2439_v32 = vadd.f32 %v2438_v12, %v6408_v19  ;;  %3301 = vmatprep.mubr.bf16.mxu1 %v6966_v25  ;;  %v2650_v35 = vmax.f32 %v2435_v15, %v2586_v8  ;;  %3919 = vmatprep.subr.bf16.mxu0 %v6223_v6 }
 0x356   : > { %v2442_v27 = vpop.f32.mrf.mxu1  ;;  %3302 = vmatmul.mubr.bf16.vlgmr.msra.gmra.mxu1 %v6968_v44 }
 0x357   : > { %v2588_v30 = vmul.f32 0.2, %v2439_v32  ;;  %v2651_v28 = vmax.f32 %v2437_v31, %v2587_v0  ;;  %v2443_v55 = vadd.f32 %v2442_v27, %v6406_v18  ;;  %v6221_v0 = vld [vmem:[%s6427_s15 + $0x4b0] ss:$8 sps:$4 sm:$0xff]   ;;  %v6226_v27 = vld [vmem:[%s6427_s15 + $0x4a4] ss:$8 sps:$4 sm:$0xff]  }
 0x358   : > { %v2444_v34 = vpop.f32.mrf.mxu1  ;;  %3920 = vmatpush2.bf16.msra.mxu0 %v6221_v0 }
 0x359   : > { %v2652_v36 = vmax.f32 %v2439_v32, %v2588_v30  ;;  %v2445_v41 = vadd.f32 %v2444_v34, %v6408_v19  ;;  %v6982_v10 = vpack.c.bf16 %v2651_v28, %v2649_v49  ;;  %v2589_v58 = vmul.f32 0.2, %v2443_v55  ;;  %3921 = vmatprep.subr.bf16.mxu0 %v6226_v27 }
 0x35a   : > { %v2446_v60 = vpop.f32.mrf.mxu1 }
 0x35b   : > { %v2447_v52 = vadd.f32 %v2446_v60, %v6406_v18  ;;  %v6980_v61 = vpack.c.bf16 %v2652_v36, %v2650_v35  ;;  %v2590_v4 = vmul.f32 0.2, %v2445_v41  ;;  %v2653_v37 = vmax.f32 %v2443_v55, %v2589_v58 }
 0x35c   : > { %v2448_v48 = vpop.f32.mrf.mxu1  ;;  %3922 = vmatpush2.bf16.msra.mxu0 %v6224_v42 }
 0x35d   : > { %v2591_v13 = vmul.f32 0.2, %v2447_v52  ;;  %v2449_v40 = vadd.f32 %v2448_v48, %v6408_v19  ;;  %3311 = vmatprep.mubr.bf16.mxu1 %v6980_v61  ;;  %v2654_v62 = vmax.f32 %v2445_v41, %v2590_v4 }
 0x35e   : > { %v2452_v59 = vpop.f32.mrf.mxu1  ;;  %3312 = vmatmul.mubr.bf16.gmra.mxu1 %v6982_v10 }
 0x35f   : > { %v2592_v51 = vmul.f32 0.2, %v2449_v40  ;;  %v2655_v43 = vmax.f32 %v2447_v52, %v2591_v13  ;;  %v2453_v53 = vadd.f32 %v2452_v59, %v6406_v18 }
 0x360   : > { %v2454_v3 = vpop.f32.mrf.mxu1 }
 0x361   : > { %v2656_v5 = vmax.f32 %v2449_v40, %v2592_v51  ;;  %v2455_v7 = vadd.f32 %v2454_v3, %v6408_v19  ;;  %v6996_v47 = vpack.c.bf16 %v2655_v43, %v2653_v37  ;;  %v2593_v15 = vmul.f32 0.2, %v2453_v53 }
 0x362   : > { %v2456_v45 = vpop.f32.mrf.mxu1 }
 0x363   : > { %v2457_v1 = vadd.f32 %v2456_v45, %v6406_v18  ;;  %v6994_v16 = vpack.c.bf16 %v2656_v5, %v2654_v62  ;;  %v2594_v9 = vmul.f32 0.2, %v2455_v7  ;;  %v2657_v32 = vmax.f32 %v2453_v53, %v2593_v15 }
 0x364   : > { %v2458_v17 = vpop.f32.mrf.mxu1 }
 0x365   : > { %v2595_v11 = vmul.f32 0.2, %v2457_v1  ;;  %v2459_v14 = vadd.f32 %v2458_v17, %v6408_v19  ;;  %3321 = vmatprep.mubr.bf16.mxu1 %v6994_v16  ;;  %v2658_v31 = vmax.f32 %v2455_v7, %v2594_v9 }
 0x366   : > { %v2462_v50 = vpop.f32.mrf.mxu1  ;;  %3322 = vmatmul.mubr.bf16.gmra.mxu1 %v6996_v47 }
 0x367   : > { %v2596_v24 = vmul.f32 0.2, %v2459_v14  ;;  %v2659_v38 = vmax.f32 %v2457_v1, %v2595_v11  ;;  %v2463_v26 = vadd.f32 %v2462_v50, %v6406_v18 }
 0x368   : > { %v2464_v54 = vpop.f32.mrf.mxu1 }
 0x369   : > { %v2660_v12 = vmax.f32 %v2459_v14, %v2596_v24  ;;  %v2465_v8 = vadd.f32 %v2464_v54, %v6408_v19  ;;  %v7010_v28 = vpack.c.bf16 %v2659_v38, %v2657_v32  ;;  %v2597_v49 = vmul.f32 0.2, %v2463_v26 }
 0x36a   : > { %v2466_v33 = vpop.f32.mrf.mxu1 }
 0x36b   : > { %v2467_v2 = vadd.f32 %v2466_v33, %v6406_v18  ;;  %v7008_v30 = vpack.c.bf16 %v2660_v12, %v2658_v31  ;;  %v2598_v35 = vmul.f32 0.2, %v2465_v8  ;;  %v2661_v40 = vmax.f32 %v2463_v26, %v2597_v49 }
 0x36c   : > { %v2468_v34 = vpop.f32.mrf.mxu1 }
 0x36d   : > { %v2599_v36 = vmul.f32 0.2, %v2467_v2  ;;  %v2469_v41 = vadd.f32 %v2468_v34, %v6408_v19  ;;  %3331 = vmatprep.mubr.bf16.mxu1 %v7008_v30  ;;  %v2662_v48 = vmax.f32 %v2465_v8, %v2598_v35 }
 0x36e   : > { %v2472_v55 = vpop.f32.mrf.mxu1  ;;  %3332 = vmatmul.mubr.bf16.gmra.mxu1 %v7010_v28 }
 0x36f   : > { %v2600_v60 = vmul.f32 0.2, %v2469_v41  ;;  %v2663_v63 = vmax.f32 %v2467_v2, %v2599_v36  ;;  %v2473_v46 = vadd.f32 %v2472_v55, %v6406_v18 }
 0x370   : > { %v2474_v52 = vpop.f32.mrf.mxu1 }
 0x371   : > { %v2664_v4 = vmax.f32 %v2469_v41, %v2600_v60  ;;  %v2475_v13 = vadd.f32 %v2474_v52, %v6408_v19  ;;  %v7021_v51 = vpack.c.bf16 %v2663_v63, %v2661_v40  ;;  %v2601_v7 = vmul.f32 0.2, %v2473_v46 }
 0x372   : > { %v2476_v58 = vpop.f32.mrf.mxu1 }
 0x373   : > { %v2477_v59 = vadd.f32 %v2476_v58, %v6406_v18  ;;  %v7019_v39 = vpack.c.bf16 %v2664_v4, %v2662_v48  ;;  %7785 = vst [vmem:[#allocation4_spill] sm:$0xff] %v7021_v51  ;;  %v2602_v3 = vmul.f32 0.2, %v2475_v13  ;;  %v2665_v9 = vmax.f32 %v2473_v46, %v2601_v7 }
 0x374   : > { %v2478_v43 = vpop.f32.mrf.mxu1 }
 0x375   : > { %v2603_v62 = vmul.f32 0.2, %v2477_v59  ;;  %v2479_v5 = vadd.f32 %v2478_v43, %v6408_v19  ;;  %3341 = vmatprep.mubr.bf16.mxu1 %v7019_v39  ;;  %v2666_v57 = vmax.f32 %v2475_v13, %v2602_v3 }
 0x376   : > { %v2482_v29 = vpop.f32.mrf.mxu1  ;;  %3342 = vmatmul.mubr.bf16.gmra.mxu1 %v7021_v51 }
 0x377   : > { %v2604_v37 = vmul.f32 0.2, %v2479_v5  ;;  %v2667_v53 = vmax.f32 %v2477_v59, %v2603_v62  ;;  %v2483_v11 = vadd.f32 %v2482_v29, %v6406_v18 }
 0x378   : > { %v2484_v45 = vpop.f32.mrf.mxu1 }
 0x379   : > { %v2668_v1 = vmax.f32 %v2479_v5, %v2604_v37  ;;  %v2485_v17 = vadd.f32 %v2484_v45, %v6408_v19  ;;  %v7031_v50 = vpack.c.bf16 %v2667_v53, %v2665_v9  ;;  %v2605_v31 = vmul.f32 0.2, %v2483_v11 }
 0x37a   : > { %v2486_v14 = vpop.f32.mrf.mxu1 }
 0x37b   : > { %v2487_v56 = vadd.f32 %v2486_v14, %v6406_v18  ;;  %v7029_v15 = vpack.c.bf16 %v2668_v1, %v2666_v57  ;;  %7787 = vst [vmem:[#allocation6_spill] sm:$0xff] %v7031_v50  ;;  %v2606_v24 = vmul.f32 0.2, %v2485_v17  ;;  %v2669_v2 = vmax.f32 %v2483_v11, %v2605_v31 }
 0x37c   : > { %v2488_v6 = vpop.f32.mrf.mxu1 }
 0x37d   : > { %7786 = vst [vmem:[#allocation5_spill] sm:$0xff] %v7029_v15  ;;  %v2607_v38 = vmul.f32 0.2, %v2487_v56  ;;  %v2489_v54 = vadd.f32 %v2488_v6, %v6408_v19  ;;  %3351 = vmatprep.mubr.bf16.mxu1 %v7029_v15  ;;  %v2670_v26 = vmax.f32 %v2485_v17, %v2606_v24 }
 0x37e   : > { %v2492_v12 = vpop.f32.mrf.mxu1  ;;  %3352 = vmatmul.mubr.bf16.gmra.mxu1 %v7031_v50 }
 0x37f   : > { %v2608_v8 = vmul.f32 0.2, %v2489_v54  ;;  %v2671_v0 = vmax.f32 %v2487_v56, %v2607_v38  ;;  %v2493_v34 = vadd.f32 %v2492_v12, %v6406_v18 }
 0x380   : > { %v2494_v32 = vpop.f32.mrf.mxu1 }
 0x381   : > { %v2672_v33 = vmax.f32 %v2489_v54, %v2608_v8  ;;  %v2495_v27 = vadd.f32 %v2494_v32, %v6408_v19  ;;  %v7041_v42 = vpack.c.bf16 %v2671_v0, %v2669_v2  ;;  %v2609_v52 = vmul.f32 0.2, %v2493_v34 }
 0x382   : > { %v2496_v35 = vpop.f32.mrf.mxu1 }
 0x383   : > { %v2497_v36 = vadd.f32 %v2496_v35, %v6406_v18  ;;  %v7039_v41 = vpack.c.bf16 %v2672_v33, %v2670_v26  ;;  %7789 = vst [vmem:[#allocation8_spill] sm:$0xff] %v7041_v42  ;;  %v2610_v55 = vmul.f32 0.2, %v2495_v27  ;;  %v2673_v43 = vmax.f32 %v2493_v34, %v2609_v52 }
 0x384   : > { %v2498_v49 = vpop.f32.mrf.mxu1 }
 0x385   : > { %7788 = vst [vmem:[#allocation7_spill] sm:$0xff] %v7039_v41  ;;  %v2611_v60 = vmul.f32 0.2, %v2497_v36  ;;  %v2499_v63 = vadd.f32 %v2498_v49, %v6408_v19  ;;  %3361 = vmatprep.mubr.bf16.mxu1 %v7039_v41  ;;  %v2674_v46 = vmax.f32 %v2495_v27, %v2610_v55  ;;  %v7066_v55 = vpop.f32.mrf.mxu0 }
 0x386   : > { %v2502_v48 = vpop.f32.mrf.mxu1  ;;  %3362 = vmatmul.mubr.bf16.gmra.mxu1 %v7041_v42 }
 0x387   : > { %v2612_v4 = vmul.f32 0.2, %v2499_v63  ;;  %v2675_v13 = vmax.f32 %v2497_v36, %v2611_v60  ;;  %v2503_v3 = vadd.f32 %v2502_v48, %v6406_v18 }
 0x388   : > { %v2504_v40 = vpop.f32.mrf.mxu1 }
 0x389   : > { %v2676_v58 = vmax.f32 %v2499_v63, %v2612_v4  ;;  %v2505_v59 = vadd.f32 %v2504_v40, %v6408_v19  ;;  %v7051_v29 = vpack.c.bf16 %v2675_v13, %v2673_v43  ;;  %v2613_v1 = vmul.f32 0.2, %v2503_v3 }
 0x38a   : > { %v2506_v62 = vpop.f32.mrf.mxu1 }
 0x38b   : > { %v2507_v5 = vadd.f32 %v2506_v62, %v6406_v18  ;;  %v7049_v7 = vpack.c.bf16 %v2676_v58, %v2674_v46  ;;  %7791 = vst [vmem:[#allocation10_spill] sm:$0xff] %v7051_v29  ;;  %v2614_v53 = vmul.f32 0.2, %v2505_v59  ;;  %v2677_v38 = vmax.f32 %v2503_v3, %v2613_v1  ;;  %v7075_v3 = vpop.f32.mrf.mxu0 }
 0x38c   : > { %v2508_v37 = vpop.f32.mrf.mxu1 }
 0x38d   : > { %7790 = vst [vmem:[#allocation9_spill] sm:$0xff] %v7049_v7  ;;  %v2615_v45 = vmul.f32 0.2, %v2507_v5  ;;  %v2509_v57 = vadd.f32 %v2508_v37, %v6408_v19  ;;  %3371 = vmatprep.mubr.bf16.mxu1 %v7049_v7  ;;  %v2678_v56 = vmax.f32 %v2505_v59, %v2614_v53  ;;  %v6227_v37 = vld [vmem:[%s6427_s15 + $0x490] ss:$8 sps:$4 sm:$0xff]  }
 0x38e   : > { %v2512_v17 = vpop.f32.mrf.mxu1  ;;  %3372 = vmatmul.mubr.bf16.gmra.mxu1 %v7051_v29  ;;  %v6229_v53 = vld [vmem:[%s6427_s15 + $0x494] ss:$8 sps:$4 sm:$0xff]  }
 0x38f   : > { %v2616_v9 = vmul.f32 0.2, %v2509_v57  ;;  %v2679_v11 = vmax.f32 %v2507_v5, %v2615_v45  ;;  %v2513_v54 = vadd.f32 %v2512_v17, %v6406_v18  ;;  %3923 = vmatprep.subr.bf16.mxu0 %v6229_v53 }
 0x390   : > { %v2514_v14 = vpop.f32.mrf.mxu1  ;;  %3924 = vmatpush2.bf16.msra.mxu0 %v6227_v37 }
 0x391   : > { %v2680_v6 = vmax.f32 %v2509_v57, %v2616_v9  ;;  %v2515_v24 = vadd.f32 %v2514_v14, %v6408_v19  ;;  %v7061_v0 = vpack.c.bf16 %v2679_v11, %v2677_v38  ;;  %v2617_v2 = vmul.f32 0.2, %v2513_v54  ;;  %v7082_v11 = vpop.f32.mrf.mxu0 }
 0x392   : > { %v2516_v31 = vpop.f32.mrf.mxu1 }
 0x393   : > { %v2517_v12 = vadd.f32 %v2516_v31, %v6406_v18  ;;  %v7059_v8 = vpack.c.bf16 %v2680_v6, %v2678_v56  ;;  %7793 = vst [vmem:[#allocation12_spill] sm:$0xff] %v7061_v0  ;;  %v2618_v26 = vmul.f32 0.2, %v2515_v24  ;;  %v2681_v48 = vmax.f32 %v2513_v54, %v2617_v2  ;;  %v6232_v31 = vld [vmem:[%s6427_s15 + $0x484] ss:$8 sps:$4 sm:$0xff]   ;;  %v7093_v2 = vpop.f32.mrf.mxu0 }
 0x394   : > { %v2518_v32 = vpop.f32.mrf.mxu1  ;;  %3925 = vmatprep.subr.bf16.mxu0 %v6232_v31 }
 0x395   : > { %7792 = vst [vmem:[#allocation11_spill] sm:$0xff] %v7059_v8  ;;  %v2619_v33 = vmul.f32 0.2, %v2517_v12  ;;  %v2519_v27 = vadd.f32 %v2518_v32, %v6408_v19  ;;  %3381 = vmatprep.mubr.bf16.mxu1 %v7059_v8  ;;  %v2682_v60 = vmax.f32 %v2515_v24, %v2618_v26  ;;  %v6230_v26 = vld [vmem:[%s6427_s15 + $0x480] ss:$8 sps:$4 sm:$0xff]  }
 0x396   : > { %v2522_v34 = vpop.f32.mrf.mxu1  ;;  %3382 = vmatmul.mubr.bf16.gmra.mxu1 %v7061_v0  ;;  %3926 = vmatpush2.bf16.msra.mxu0 %v6230_v26 }
 0x397   : > { %v2620_v35 = vmul.f32 0.2, %v2519_v27  ;;  %v2683_v36 = vmax.f32 %v2517_v12, %v2619_v33  ;;  %v2523_v4 = vadd.f32 %v2522_v34, %v6406_v18 }
 0x398   : > { %v2524_v49 = vpop.f32.mrf.mxu1 }
 0x399   : > { %v2684_v63 = vmax.f32 %v2519_v27, %v2620_v35  ;;  %v2525_v52 = vadd.f32 %v2524_v49, %v6408_v19  ;;  %v7073_v58 = vpack.c.bf16 %v2683_v36, %v2681_v48  ;;  %v2621_v45 = vmul.f32 0.2, %v2523_v4 }
 0x39a   : > { %v2526_v13 = vpop.f32.mrf.mxu1 }
 0x39b   : > { %v2527_v40 = vadd.f32 %v2526_v13, %v6406_v18  ;;  %v7071_v46 = vpack.c.bf16 %v2684_v63, %v2682_v60  ;;  %7795 = vst [vmem:[#allocation14_spill] sm:$0xff] %v7073_v58  ;;  %v2622_v59 = vmul.f32 0.2, %v2525_v52  ;;  %v2685_v24 = vmax.f32 %v2523_v4, %v2621_v45  ;;  %v7098_v4 = vpop.f32.mrf.mxu0 }
 0x39c   : > { %v2528_v43 = vpop.f32.mrf.mxu1 }
 0x39d   : > { %7794 = vst [vmem:[#allocation13_spill] sm:$0xff] %v7071_v46  ;;  %v2623_v62 = vmul.f32 0.2, %v2527_v40  ;;  %v2529_v5 = vadd.f32 %v2528_v43, %v6408_v19  ;;  %3391 = vmatprep.mubr.bf16.mxu1 %v7071_v46  ;;  %v2686_v14 = vmax.f32 %v2525_v52, %v2622_v59 }
 0x39e   : > { %v2532_v57 = vpop.f32.mrf.mxu1  ;;  %3392 = vmatmul.mubr.bf16.gmra.mxu1 %v7073_v58 }
 0x39f   : > { %v2624_v1 = vmul.f32 0.2, %v2529_v5  ;;  %v2687_v17 = vmax.f32 %v2527_v40, %v2623_v62  ;;  %v2533_v38 = vadd.f32 %v2532_v57, %v6406_v18 }
 0x3a0   : > { %v2534_v9 = vpop.f32.mrf.mxu1 }
 0x3a1   : > { %v2688_v56 = vmax.f32 %v2529_v5, %v2624_v1  ;;  %v2535_v6 = vadd.f32 %v2534_v9, %v6408_v19  ;;  %v7091_v33 = vpack.c.bf16 %v2687_v17, %v2685_v24  ;;  %v2625_v49 = vmul.f32 0.2, %v2533_v38  ;;  %v7107_v1 = vpop.f32.mrf.mxu0 }
 0x3a2   : > { %v2536_v54 = vpop.f32.mrf.mxu1 }
 0x3a3   : > { %v2537_v12 = vadd.f32 %v2536_v54, %v6406_v18  ;;  %v7088_v32 = vpack.c.bf16 %v2688_v56, %v2686_v14  ;;  %7797 = vst [vmem:[#allocation16_spill] sm:$0xff] %v7091_v33  ;;  %v2626_v34 = vmul.f32 0.2, %v2535_v6  ;;  %v2689_v43 = vmax.f32 %v2533_v38, %v2625_v49  ;;  %v7112_v31 = vpop.f32.mrf.mxu0 }
 0x3a4   : > { %v2538_v27 = vpop.f32.mrf.mxu1 }
 0x3a5   : > { %7796 = vst [vmem:[#allocation15_spill] sm:$0xff] %v7088_v32  ;;  %v2627_v35 = vmul.f32 0.2, %v2537_v12  ;;  %v2539_v36 = vadd.f32 %v2538_v27, %v6408_v19  ;;  %3401 = vmatprep.mubr.bf16.mxu1 %v7088_v32  ;;  %v2690_v13 = vmax.f32 %v2535_v6, %v2626_v34 }
 0x3a6   : > { %v2542_v60 = vpop.f32.mrf.mxu1  ;;  %3402 = vmatmul.mubr.bf16.gmra.mxu1 %v7091_v33 }
 0x3a7   : > { %v2628_v63 = vmul.f32 0.2, %v2539_v36  ;;  %v2691_v52 = vmax.f32 %v2537_v12, %v2627_v35  ;;  %v2543_v62 = vadd.f32 %v2542_v60, %v6406_v18 }
 0x3a8   : > { %v2544_v48 = vpop.f32.mrf.mxu1 }
 0x3a9   : > { %v2692_v40 = vmax.f32 %v2539_v36, %v2628_v63  ;;  %v2545_v59 = vadd.f32 %v2544_v48, %v6408_v19  ;;  %v7105_v45 = vpack.c.bf16 %v2691_v52, %v2689_v43  ;;  %v2629_v56 = vmul.f32 0.2, %v2543_v62  ;;  %v7121_v48 = vpop.f32.mrf.mxu0 }
 0x3aa   : > { %v2546_v5 = vpop.f32.mrf.mxu1 }
 0x3ab   : > { %v2547_v37 = vadd.f32 %v2546_v5, %v6406_v18  ;;  %v7103_v53 = vpack.c.bf16 %v2692_v40, %v2690_v13  ;;  %7799 = vst [vmem:[#allocation18_spill] sm:$0xff] %v7105_v45  ;;  %v2630_v17 = vmul.f32 0.2, %v2545_v59  ;;  %v2693_v34 = vmax.f32 %v2543_v62, %v2629_v56 }
 0x3ac   : > { %v2548_v57 = vpop.f32.mrf.mxu1 }
 0x3ad   : > { %7798 = vst [vmem:[#allocation17_spill] sm:$0xff] %v7103_v53  ;;  %v2631_v9 = vmul.f32 0.2, %v2547_v37  ;;  %v2549_v14 = vadd.f32 %v2548_v57, %v6408_v19  ;;  %3411 = vmatprep.mubr.bf16.mxu1 %v7103_v53  ;;  %v2694_v12 = vmax.f32 %v2545_v59, %v2630_v17  ;;  %v7126_v17 = vpop.f32.mrf.mxu0 }
 0x3ae   : > { %v2552_v6 = vpop.f32.mrf.mxu1  ;;  %3412 = vmatmul.mubr.bf16.gmra.mxu1 %v7105_v45 }
 0x3af   : > { %v2632_v24 = vmul.f32 0.2, %v2549_v14  ;;  %v2695_v38 = vmax.f32 %v2547_v37, %v2631_v9  ;;  %v2553_v35 = vadd.f32 %v2552_v6, %v6406_v18 }
 0x3b0   : > { %v2554_v54 = vpop.f32.mrf.mxu1 }
 0x3b1   : > { %v2696_v26 = vmax.f32 %v2549_v14, %v2632_v24  ;;  %v2555_v27 = vadd.f32 %v2554_v54, %v6408_v19  ;;  %v7119_v63 = vpack.c.bf16 %v2695_v38, %v2693_v34  ;;  %v2633_v43 = vmul.f32 0.2, %v2553_v35 }
 0x3b2   : > { %v2556_v36 = vpop.f32.mrf.mxu1 }
 0x3b3   : > { %v2557_v49 = vadd.f32 %v2556_v36, %v6406_v18  ;;  %v7117_v60 = vpack.c.bf16 %v2696_v26, %v2694_v12  ;;  %7801 = vst [vmem:[#allocation20_spill] sm:$0xff] %v7119_v63  ;;  %v2634_v13 = vmul.f32 0.2, %v2555_v27  ;;  %v2697_v6 = vmax.f32 %v2553_v35, %v2633_v43  ;;  %v7135_v36 = vpop.f32.mrf.mxu0 }
 0x3b4   : > { %v2558_v52 = vpop.f32.mrf.mxu1 }
 0x3b5   : > { %7800 = vst [vmem:[#allocation19_spill] sm:$0xff] %v7117_v60  ;;  %v2635_v40 = vmul.f32 0.2, %v2557_v49  ;;  %v2559_v59 = vadd.f32 %v2558_v52, %v6408_v19  ;;  %3421 = vmatprep.mubr.bf16.mxu1 %v7117_v60  ;;  %v2698_v9 = vmax.f32 %v2555_v27, %v2634_v13 }
 0x3b6   : > { %v2562_v62 = vpop.f32.mrf.mxu1  ;;  %3422 = vmatmul.mubr.bf16.gmra.mxu1 %v7119_v63 }
 0x3b7   : > { %v2636_v5 = vmul.f32 0.2, %v2559_v59  ;;  %v2699_v37 = vmax.f32 %v2557_v49, %v2635_v40  ;;  %v2563_v24 = vadd.f32 %v2562_v62, %v6406_v18  ;;  %v7140_v62 = vpop.f32.mrf.mxu0 }
 0x3b8   : > { %v2564_v57 = vpop.f32.mrf.mxu1 }
 0x3b9   : > { %v2700_v14 = vmax.f32 %v2559_v59, %v2636_v5  ;;  %v2565_v56 = vadd.f32 %v2564_v57, %v6408_v19  ;;  %v7133_v26 = vpack.c.bf16 %v2699_v37, %v2697_v6  ;;  %v2637_v13 = vmul.f32 0.2, %v2563_v24  ;;  %v7149_v63 = vpop.f32.mrf.mxu0 }
 0x3ba   : > { %v2566_v38 = vpop.f32.mrf.mxu1 }
 0x3bb   : > { %v2567_v54 = vadd.f32 %v2566_v38, %v6406_v18  ;;  %v7131_v12 = vpack.c.bf16 %v2700_v14, %v2698_v9  ;;  %7803 = vst [vmem:[#allocation22_spill] sm:$0xff] %v7133_v26  ;;  %v2638_v49 = vmul.f32 0.2, %v2565_v56  ;;  %v2701_v9 = vmax.f32 %v2563_v24, %v2637_v13  ;;  %v7154_v13 = vpop.f32.mrf.mxu0 }
 0x3bc   : > { %v2568_v34 = vpop.f32.mrf.mxu1 }
 0x3bd   : > { %7802 = vst [vmem:[#allocation21_spill] sm:$0xff] %v7131_v12  ;;  %v2639_v52 = vmul.f32 0.2, %v2567_v54  ;;  %v2569_v27 = vadd.f32 %v2568_v34, %v6408_v19  ;;  %3431 = vmatprep.mubr.bf16.mxu1 %v7131_v12  ;;  %v2702_v5 = vmax.f32 %v2565_v56, %v2638_v49 }
 0x3be   : > { %v2572_v35 = vpop.f32.mrf.mxu1  ;;  %3432 = vmatmul.mubr.bf16.gmra.mxu1 %v7133_v26 }
 0x3bf   : > { %v2640_v40 = vmul.f32 0.2, %v2569_v27  ;;  %v2703_v59 = vmax.f32 %v2567_v54, %v2639_v52  ;;  %v2573_v14 = vadd.f32 %v2572_v35, %v6406_v18 }
 0x3c0   : > { %v2574_v43 = vpop.f32.mrf.mxu1 }
 0x3c1   : > { %v2704_v37 = vmax.f32 %v2569_v27, %v2640_v40  ;;  %v2575_v57 = vadd.f32 %v2574_v43, %v6408_v19  ;;  %v7147_v12 = vpack.c.bf16 %v2703_v59, %v2701_v9  ;;  %v2641_v49 = vmul.f32 0.2, %v2573_v14 }
 0x3c2   : > { %v2576_v6 = vpop.f32.mrf.mxu1 }
 0x3c3   : > { %v2577_v38 = vadd.f32 %v2576_v6, %v6406_v18  ;;  %v7145_v34 = vpack.c.bf16 %v2704_v37, %v2702_v5  ;;  %7805 = vst [vmem:[#allocation24_spill] sm:$0xff] %v7147_v12  ;;  %v2642_v54 = vmul.f32 0.2, %v2575_v57  ;;  %v2705_v40 = vmax.f32 %v2573_v14, %v2641_v49  ;;  %v7160_v5 = vpop.f32.mrf.mxu0 }
 0x3c4   : > { %v2578_v26 = vpop.f32.mrf.mxu1 }
 0x3c5   : > { %7804 = vst [vmem:[#allocation23_spill] sm:$0xff] %v7145_v34  ;;  %v2643_v52 = vmul.f32 0.2, %v2577_v38  ;;  %v2579_v56 = vadd.f32 %v2578_v26, %v6408_v19  ;;  %3441 = vmatprep.mubr.bf16.mxu1 %v7145_v34  ;;  %v2706_v18 = vmax.f32 %v2575_v57, %v2642_v54  ;;  %v7164_v19 = vpop.f32.mrf.mxu0 }
 0x3c6   : > { %3442 = vmatmul.mubr.bf16.gmra.mxu1 %v7147_v12  ;;  %v6237_v12 = vld [vmem:[%s7755_s7 + $0xf0] sm:$0xff]  }
 0x3c7   : > { %v2644_v24 = vmul.f32 0.2, %v2579_v56  ;;  %v2707_v27 = vmax.f32 %v2577_v38, %v2643_v52  ;;  %v7166_v26 = vpop.f32.mrf.mxu0 }
 0x3c9   : > { %v2708_v35 = vmax.f32 %v2579_v56, %v2644_v24  ;;  %v7158_v43 = vpack.c.bf16 %v2707_v27, %v2705_v40  ;;  %v7168_v37 = vpop.f32.mrf.mxu0  ;;  %v6233_v24 = vld [vmem:[%s7755_s7 + $0xf8] sm:$0xff]  }
 0x3ca   : > { %v6234_v27 = vld [vmem:[%s7755_s7 + $0x78] sm:$0xff]   ;;  %5731 = vmatprep.subr.bf16.mxu1 %v6233_v24  ;;  %v6239_v24 = vld [vmem:[%s7755_s7 + $0xb0] sm:$0xff]  }
 0x3cb   : > { %v7156_v59 = vpack.c.bf16 %v2708_v35, %v2706_v18  ;;  %7807 = vst [vmem:[#allocation26_spill] sm:$0xff] %v7158_v43  ;;  %v7170_v9 = vpop.f32.mrf.mxu0  ;;  %5843 = vmatprep.subr.bf16.mxu0 %v6234_v27  ;;  %v6235_v18 = vld [vmem:[%s7755_s7 + $0xb8] sm:$0xff]  }
 0x3cc   : > { %5732 = vmatpush3.bf16.msra.mxu1 %v6235_v18 }
 0x3cd   : > { %7806 = vst [vmem:[#allocation25_spill] sm:$0xff] %v7156_v59  ;;  %3451 = vmatprep.mubr.bf16.mxu1 %v7156_v59  ;;  %v7172_v57 = vpop.f32.mrf.mxu0  ;;  %5733 = vmatprep.subr.bf16.mxu1 %v6237_v12 }
 0x3ce   : > { %3452 = vmatmul.mubr.bf16.gmra.mxu1 %v7158_v43 }
 0x3cf   : > { %v7174_v14 = vpop.f32.mrf.mxu0 }
 0x3d0   : > { %5734 = vmatpush3.bf16.msra.mxu1 %v6239_v24  ;;  %v6245_v24 = vld [vmem:[%s7755_s7 + $0xe8] sm:$0xff]  }
 0x3d1   : > { %v7176_v6 = vpop.f32.mrf.mxu0  ;;  %5735 = vmatprep.subr.bf16.mxu1 %v6245_v24 }
 0x3d3   : > { %v7178_v38 = vpop.f32.mrf.mxu0 }
 0x3d5   : > { %v7180_v54 = vpop.f32.mrf.mxu0 }
 0x3d7   : > { %v7182_v52 = vpop.f32.mrf.mxu0 }
 0x3d9   : > { %v7184_v56 = vpop.f32.mrf.mxu0 }
 0x3db   : > { %v7186_v49 = vpop.f32.mrf.mxu0 }
 0x3dd   : > { %v7197_v35 = vpop.f32.mrf.mxu0 }
 0x3df   : > { %v7199_v40 = vpop.f32.mrf.mxu0 }
 0x3e1   : > { %v7201_v43 = vpop.f32.mrf.mxu0 }
 0x3e3   : > { %v7203_v59 = vpop.f32.mrf.mxu0 }
 0x3e5   : > { %v7211_v27 = vpop.f32.mrf.mxu0 }
 0x3e7   : > { %v7213_v34 = vpop.f32.mrf.mxu0 }
 0x3e9   : > { %v7216_v53 = vpop.f32.mrf.mxu0 }
 0x3eb   : > { %v7222_v46 = vpop.f32.mrf.mxu0 }
 0x3ed   : > { %v7233_v8 = vpop.f32.mrf.mxu0 }
 0x416   : > { %v3303_v18 = vpop.f32.mrf.mxu1 }
 0x417   : > { %v3304_v60 = vadd.f32 %v3303_v18, %v7066_v55  ;;  %v6246_v55 = vld [vmem:[%s7755_s7 + $0xa8] sm:$0xff]  }
 0x418   : > { %v3305_v45 = vpop.f32.mrf.mxu1  ;;  %5736 = vmatpush3.bf16.msra.mxu1 %v6246_v55  ;;  %v6256_v55 = vld [vmem:[%s7755_s7 + $0xa0] sm:$0xff]  }
 0x419   : > { %v3306_v33 = vadd.f32 %v3305_v45, %v7075_v3  ;;  %v3470_v22 = vadd.f32 %v6410_v20, %v3304_v60 }
 0x41a   : > { %v3307_v32 = vpop.f32.mrf.mxu1 }
 0x41b   : > { %v3471_v12 = vadd.f32 %v6412_v21, %v3306_v33  ;;  %v3308_v58 = vadd.f32 %v3307_v32, %v7082_v11  ;;  %v3534_v18 = vmul.f32 0.2, %v3470_v22 }
 0x41c   : > { %v3309_v23 = vpop.f32.mrf.mxu1 }
 0x41d   : > { %v3472_v3 = vadd.f32 %v6410_v20, %v3308_v58  ;;  %v3310_v45 = vadd.f32 %v3309_v23, %v7093_v2  ;;  %v3535_v11 = vmul.f32 0.2, %v3471_v12  ;;  %v6255_v23 = vld [vmem:[%s7755_s7 + $0xe0] sm:$0xff]  }
 0x41e   : > { %v3313_v33 = vpop.f32.mrf.mxu1  ;;  %5737 = vmatprep.subr.bf16.mxu1 %v6255_v23  ;;  %v6240_v23 = vld [vmem:[%s7755_s7 + $0x30] sm:$0xff]  }
 0x41f   : > { %v3536_v32 = vmul.f32 0.2, %v3472_v3  ;;  %v3473_v60 = vadd.f32 %v6412_v21, %v3310_v45  ;;  %v3314_v7 = vadd.f32 %v3313_v33, %v7098_v4  ;;  %v3599_v2 = vmax.f32 %v3471_v12, %v3535_v11  ;;  %v7245_v33 = vpop.f32.mrf.mxu0  ;;  %5738 = vmatpush3.bf16.msra.mxu1 %v6256_v55 }
 0x420   : > { %v3315_v0 = vpop.f32.mrf.mxu1  ;;  %v3598_v45 = vmax.f32 %v3470_v22, %v3534_v18 }
 0x421   : > { %v3537_v29 = vmul.f32 0.2, %v3473_v60  ;;  %v3316_v42 = vadd.f32 %v3315_v0, %v7107_v1  ;;  %v3600_v41 = vmax.f32 %v3472_v3, %v3536_v32  ;;  %v3474_v0 = vadd.f32 %v6410_v20, %v3314_v7 }
 0x422   : > { %v3317_v58 = vpop.f32.mrf.mxu1 }
 0x423   : > { %v3601_v24 = vmax.f32 %v3473_v60, %v3537_v29  ;;  %v3475_v50 = vadd.f32 %v6412_v21, %v3316_v42  ;;  %v3318_v15 = vadd.f32 %v3317_v58, %v7112_v31  ;;  %v6236_v29 = vld [vmem:[%s7755_s7 + $0x38] sm:$0xff]   ;;  %v3662_v12 = vpack.c.bf16 %v3600_v41, %v3598_v45  ;;  %v6238_v31 = vld [vmem:[%s7755_s7 + $0x70] sm:$0xff]   ;;  %v7257_v60 = vpop.f32.mrf.mxu0 }
 0x424   : > { %v3319_v4 = vpop.f32.mrf.mxu1  ;;  %v3538_v18 = vmul.f32 0.2, %v3474_v0 }
 0x425   : > { %v3320_v1 = vadd.f32 %v3319_v4, %v7121_v48  ;;  %v3663_v3 = vpack.c.bf16 %v3601_v24, %v3599_v2  ;;  %v3476_v22 = vadd.f32 %v6410_v20, %v3318_v15  ;;  %v3539_v7 = vmul.f32 0.2, %v3475_v50  ;;  %v6241_v24 = vld [vmem:[%s7755_s7 + $0x68] sm:$0xff]  }
 0x426   : > { %v3323_v42 = vpop.f32.mrf.mxu1 }
 0x427   : > { %v3477_v11 = vadd.f32 %v6412_v21, %v3320_v1  ;;  %3927 = vmatprep.mubr.bf16.mxu0 %v3663_v3  ;;  %v3540_v32 = vmul.f32 0.2, %v3476_v22  ;;  %v3324_v41 = vadd.f32 %v3323_v42, %v7126_v17  ;;  %v3603_v17 = vmax.f32 %v3475_v50, %v3539_v7 }
 0x428   : > { %v3325_v48 = vpop.f32.mrf.mxu1  ;;  %3928 = vmatmul.mubr.bf16.vlgmr.msra.gmra.mxu0 %v3662_v12 }
 0x429   : > { %v3541_v58 = vmul.f32 0.2, %v3477_v11  ;;  %v3326_v15 = vadd.f32 %v3325_v48, %v7135_v36  ;;  %5844 = vmatpush3.bf16.msra.mxu0 %v6236_v29  ;;  %v3604_v55 = vmax.f32 %v3476_v22, %v3540_v32  ;;  %v7269_v36 = vpop.f32.mrf.mxu0  ;;  %v3602_v29 = vmax.f32 %v3474_v0, %v3538_v18  ;;  %v6242_v22 = vld [vmem:[%s7755_s7 + $0x28] sm:$0xff]   ;;  %v6243_v0 = vld [vmem:[%s7755_s7 + $0x60] sm:$0xff]  }
 0x42a   : > { %v3327_v2 = vpop.f32.mrf.mxu1  ;;  %5845 = vmatprep.subr.bf16.mxu0 %v6238_v31  ;;  %v3478_v12 = vadd.f32 %v6410_v20, %v3324_v41 }
 0x42b   : > { %v3605_v45 = vmax.f32 %v3477_v11, %v3541_v58  ;;  %v3479_v4 = vadd.f32 %v6412_v21, %v3326_v15  ;;  %v3328_v1 = vadd.f32 %v3327_v2, %v7140_v62  ;;  %v3664_v62 = vpack.c.bf16 %v3604_v55, %v3602_v29  ;;  %v6244_v2 = vld [vmem:[%s7755_s7 + $0x20] sm:$0xff]  }
 0x42c   : > { %v3329_v3 = vpop.f32.mrf.mxu1  ;;  %v3542_v18 = vmul.f32 0.2, %v3478_v12 }
 0x42d   : > { %v3480_v42 = vadd.f32 %v6410_v20, %v3328_v1  ;;  %v3330_v31 = vadd.f32 %v3329_v3, %v7149_v63  ;;  %5846 = vmatpush3.bf16.msra.mxu0 %v6240_v23  ;;  %v3665_v51 = vpack.c.bf16 %v3605_v45, %v3603_v17  ;;  %v3543_v50 = vmul.f32 0.2, %v3479_v4  ;;  %v7281_v63 = vpop.f32.mrf.mxu0 }
 0x42e   : > { %v3333_v48 = vpop.f32.mrf.mxu1  ;;  %5847 = vmatprep.subr.bf16.mxu0 %v6241_v24  ;;  %v6258_v24 = vld [vmem:[%s7755_s7 + $0x98] sm:$0xff]  }
 0x42f   : > { %v3544_v11 = vmul.f32 0.2, %v3480_v42  ;;  %v3481_v7 = vadd.f32 %v6412_v21, %v3330_v31  ;;  %3937 = vmatprep.mubr.bf16.mxu0 %v3665_v51  ;;  %v3334_v41 = vadd.f32 %v3333_v48, %v7154_v13  ;;  %v6257_v51 = vld [vmem:[%s7755_s7 + $0xd8] sm:$0xff]   ;;  %v3607_v55 = vmax.f32 %v3479_v4, %v3543_v50  ;;  %v7299_v29 = vpop.f32.mrf.mxu0 }
 0x430   : > { %v3335_v32 = vpop.f32.mrf.mxu1  ;;  %3938 = vmatmul.mubr.bf16.gmra.mxu0 %v3664_v62  ;;  %5739 = vmatprep.subr.bf16.mxu1 %v6257_v51  ;;  %v3606_v31 = vmax.f32 %v3478_v12, %v3542_v18  ;;  %v6248_v50 = vld [vmem:[%s7755_s7 + $0x18] sm:$0xff]   ;;  %v6249_v12 = vld [vmem:[%s7755_s7 + $0x50] sm:$0xff]  }
 0x431   : > { %v3545_v58 = vmul.f32 0.2, %v3481_v7  ;;  %v3336_v15 = vadd.f32 %v3335_v32, %v7160_v5  ;;  %5848 = vmatpush3.bf16.msra.mxu0 %v6242_v22  ;;  %v3608_v45 = vmax.f32 %v3480_v42, %v3544_v11  ;;  %v6247_v5 = vld [vmem:[%s7755_s7 + $0x58] sm:$0xff]   ;;  %v3482_v48 = vadd.f32 %v6410_v20, %v3334_v41  ;;  %5740 = vmatpush3.bf16.msra.mxu1 %v6258_v24  ;;  %v7311_v32 = vpop.f32.mrf.mxu0 }
 0x432   : > { %v3337_v23 = vpop.f32.mrf.mxu1  ;;  %5849 = vmatprep.subr.bf16.mxu0 %v6243_v0 }
 0x433   : > { %v3609_v13 = vmax.f32 %v3481_v7, %v3545_v58  ;;  %v3483_v1 = vadd.f32 %v6412_v21, %v3336_v15  ;;  %v3338_v17 = vadd.f32 %v3337_v23, %v7164_v19  ;;  %v3666_v19 = vpack.c.bf16 %v3608_v45, %v3606_v31 }
 0x434   : > { %v3339_v3 = vpop.f32.mrf.mxu1  ;;  %v3546_v18 = vmul.f32 0.2, %v3482_v48 }
 0x435   : > { %v3340_v4 = vadd.f32 %v3339_v3, %v7166_v26  ;;  %v3667_v42 = vpack.c.bf16 %v3609_v13, %v3607_v55  ;;  %v3484_v22 = vadd.f32 %v6410_v20, %v3338_v17  ;;  %5850 = vmatpush3.bf16.msra.mxu0 %v6244_v2  ;;  %v3547_v26 = vmul.f32 0.2, %v3483_v1  ;;  %v6250_v2 = vld [vmem:[%s7755_s7 + $0x10] sm:$0xff]  }
 0x436   : > { %v3343_v62 = vpop.f32.mrf.mxu1  ;;  %5851 = vmatprep.subr.bf16.mxu0 %v6247_v5  ;;  %v7323_v5 = vpop.f32.mrf.mxu0  ;;  %v3610_v17 = vmax.f32 %v3482_v48, %v3546_v18  ;;  %v6253_v48 = vld [vmem:[%s7755_s7 + $0x40] sm:$0xff]  }
 0x437   : > { %v3485_v11 = vadd.f32 %v6412_v21, %v3340_v4  ;;  %3947 = vmatprep.mubr.bf16.mxu0 %v3667_v42  ;;  %v3548_v7 = vmul.f32 0.2, %v3484_v22  ;;  %v3344_v41 = vadd.f32 %v3343_v62, %v7168_v37  ;;  %v6251_v37 = vld [vmem:[%s7755_s7 + $0x48] sm:$0xff]   ;;  %v3611_v13 = vmax.f32 %v3483_v1, %v3547_v26 }
 0x438   : > { %v3345_v0 = vpop.f32.mrf.mxu1  ;;  %3948 = vmatmul.mubr.bf16.gmra.mxu0 %v3666_v19 }
 0x439   : > { %v3549_v58 = vmul.f32 0.2, %v3485_v11  ;;  %v3346_v15 = vadd.f32 %v3345_v0, %v7170_v9  ;;  %5852 = vmatpush3.bf16.msra.mxu0 %v6248_v50  ;;  %v3612_v51 = vmax.f32 %v3484_v22, %v3548_v7  ;;  %v3486_v3 = vadd.f32 %v6410_v20, %v3344_v41  ;;  %v6259_v41 = vld [vmem:[%s7755_s7 + $0xd0] sm:$0xff]  }
 0x43a   : > { %v3347_v23 = vpop.f32.mrf.mxu1  ;;  %5853 = vmatprep.subr.bf16.mxu0 %v6249_v12  ;;  %5741 = vmatprep.subr.bf16.mxu1 %v6259_v41 }
 0x43b   : > { %v3613_v24 = vmax.f32 %v3485_v11, %v3549_v58  ;;  %v3487_v55 = vadd.f32 %v6412_v21, %v3346_v15  ;;  %v3348_v45 = vadd.f32 %v3347_v23, %v7172_v57  ;;  %v6252_v57 = vld [vmem:[%s7755_s7 + $0x8] sm:$0xff]   ;;  %v3668_v62 = vpack.c.bf16 %v3612_v51, %v3610_v17  ;;  %v6254_v58 = vld [vmem:[%s7755_s7] sm:$0xff]   ;;  %v6260_v15 = vld [vmem:[%s7755_s7 + $0x90] sm:$0xff]  }
 0x43c   : > { %v3349_v9 = vpop.f32.mrf.mxu1  ;;  %v3550_v12 = vmul.f32 0.2, %v3486_v3  ;;  %5742 = vmatpush3.bf16.msra.mxu1 %v6260_v15 }
 0x43d   : > { %v3488_v31 = vadd.f32 %v6410_v20, %v3348_v45  ;;  %v3350_v4 = vadd.f32 %v3349_v9, %v7174_v14  ;;  %v3669_v22 = vpack.c.bf16 %v3613_v24, %v3611_v13  ;;  %5854 = vmatpush3.bf16.msra.mxu0 %v6250_v2  ;;  %v3551_v50 = vmul.f32 0.2, %v3487_v55  ;;  %v7335_v14 = vpop.f32.mrf.mxu0 }
 0x43e   : > { %v3353_v42 = vpop.f32.mrf.mxu1  ;;  %5855 = vmatprep.subr.bf16.mxu0 %v6251_v37  ;;  %v3614_v37 = vmax.f32 %v3486_v3, %v3550_v12 }
 0x43f   : > { %v3552_v1 = vmul.f32 0.2, %v3488_v31  ;;  %v3489_v19 = vadd.f32 %v6412_v21, %v3350_v4  ;;  %3957 = vmatprep.mubr.bf16.mxu0 %v3669_v22  ;;  %v3354_v7 = vadd.f32 %v3353_v42, %v7176_v6  ;;  %v3615_v23 = vmax.f32 %v3487_v55, %v3551_v50  ;;  %v7350_v45 = vpop.f32.mrf.mxu0 }
 0x440   : > { %v3355_v11 = vpop.f32.mrf.mxu1  ;;  %3958 = vmatmul.mubr.bf16.gmra.mxu0 %v3668_v62 }
 0x441   : > { %v3553_v26 = vmul.f32 0.2, %v3489_v19  ;;  %v3356_v0 = vadd.f32 %v3355_v11, %v7178_v38  ;;  %5856 = vmatpush3.bf16.msra.mxu0 %v6252_v57  ;;  %v3616_v2 = vmax.f32 %v3488_v31, %v3552_v1  ;;  %v3490_v13 = vadd.f32 %v6410_v20, %v3354_v7  ;;  %v7356_v62 = vpop.f32.mrf.mxu0 }
 0x442   : > { %v3357_v18 = vpop.f32.mrf.mxu1  ;;  %5857 = vmatprep.subr.bf16.mxu0 %v6253_v48 }
 0x443   : > { %v3617_v6 = vmax.f32 %v3489_v19, %v3553_v26  ;;  %v3491_v38 = vadd.f32 %v6412_v21, %v3356_v0  ;;  %v3358_v51 = vadd.f32 %v3357_v18, %v7180_v54  ;;  %v3670_v4 = vpack.c.bf16 %v3616_v2, %v3614_v37  ;;  %v7362_v18 = vpop.f32.mrf.mxu0 }
 0x444   : > { %v3359_v24 = vpop.f32.mrf.mxu1  ;;  %v3554_v3 = vmul.f32 0.2, %v3490_v13 }
 0x445   : > { %v3360_v9 = vadd.f32 %v3359_v24, %v7182_v52  ;;  %v3671_v17 = vpack.c.bf16 %v3617_v6, %v3615_v23  ;;  %v3492_v55 = vadd.f32 %v6410_v20, %v3358_v51  ;;  %5858 = vmatpush3.bf16.msra.mxu0 %v6254_v58  ;;  %v3555_v54 = vmul.f32 0.2, %v3491_v38 }
 0x446   : > { %v3363_v31 = vpop.f32.mrf.mxu1  ;;  %v3618_v58 = vmax.f32 %v3490_v13, %v3554_v3 }
 0x447   : > { %v3493_v42 = vadd.f32 %v6412_v21, %v3360_v9  ;;  %3967 = vmatprep.mubr.bf16.mxu0 %v3671_v17  ;;  %v3556_v22 = vmul.f32 0.2, %v3492_v55  ;;  %v3364_v1 = vadd.f32 %v3363_v31, %v7184_v56  ;;  %v3619_v7 = vmax.f32 %v3491_v38, %v3555_v54  ;;  %v7368_v38 = vpop.f32.mrf.mxu0  ;;  %v6262_v31 = vld [vmem:[%s7755_s7 + $0x88] sm:$0xff]  }
 0x448   : > { %v3365_v57 = vpop.f32.mrf.mxu1  ;;  %3968 = vmatmul.mubr.bf16.gmra.mxu0 %v3670_v4 }
 0x449   : > { %v3557_v50 = vmul.f32 0.2, %v3493_v42  ;;  %v3366_v52 = vadd.f32 %v3365_v57, %v7186_v49  ;;  %v3620_v48 = vmax.f32 %v3492_v55, %v3556_v22  ;;  %v3494_v41 = vadd.f32 %v6410_v20, %v3364_v1  ;;  %v7380_v3 = vpop.f32.mrf.mxu0 }
 0x44a   : > { %v3367_v19 = vpop.f32.mrf.mxu1 }
 0x44b   : > { %v3621_v11 = vmax.f32 %v3493_v42, %v3557_v50  ;;  %v3495_v12 = vadd.f32 %v6412_v21, %v3366_v52  ;;  %v3368_v26 = vadd.f32 %v3367_v19, %v7197_v35  ;;  %v3672_v2 = vpack.c.bf16 %v3620_v48, %v3618_v58 }
 0x44c   : > { %v3369_v0 = vpop.f32.mrf.mxu1  ;;  %v3558_v37 = vmul.f32 0.2, %v3494_v41 }
 0x44d   : > { %v3496_v15 = vadd.f32 %v6410_v20, %v3368_v26  ;;  %v3370_v56 = vadd.f32 %v3369_v0, %v7199_v40  ;;  %v3673_v23 = vpack.c.bf16 %v3621_v11, %v3619_v7  ;;  %v3559_v6 = vmul.f32 0.2, %v3495_v12  ;;  %v6261_v40 = vld [vmem:[%s7755_s7 + $0xc8] sm:$0xff]   ;;  %v7386_v0 = vpop.f32.mrf.mxu0 }
 0x44e   : > { %v3373_v49 = vpop.f32.mrf.mxu1  ;;  %5743 = vmatprep.subr.bf16.mxu1 %v6261_v40 }
 0x44f   : > { %v3560_v51 = vmul.f32 0.2, %v3496_v15  ;;  %v3497_v24 = vadd.f32 %v6412_v21, %v3370_v56  ;;  %3977 = vmatprep.mubr.bf16.mxu0 %v3673_v23  ;;  %v3374_v13 = vadd.f32 %v3373_v49, %v7201_v43  ;;  %v3623_v4 = vmax.f32 %v3495_v12, %v3559_v6  ;;  %5744 = vmatpush3.bf16.msra.mxu1 %v6262_v31 }
 0x450   : > { %v3375_v35 = vpop.f32.mrf.mxu1  ;;  %3978 = vmatmul.mubr.bf16.gmra.mxu0 %v3672_v2 }
 0x451   : > { %v3561_v9 = vmul.f32 0.2, %v3497_v24  ;;  %v3376_v17 = vadd.f32 %v3375_v35, %v7203_v59  ;;  %v3624_v42 = vmax.f32 %v3496_v15, %v3560_v51  ;;  %v3622_v59 = vmax.f32 %v3494_v41, %v3558_v37  ;;  %v7392_v35 = vpop.f32.mrf.mxu0 }
 0x452   : > { %v3377_v55 = vpop.f32.mrf.mxu1  ;;  %v3498_v50 = vadd.f32 %v6410_v20, %v3374_v13 }
 0x453   : > { %v3625_v54 = vmax.f32 %v3497_v24, %v3561_v9  ;;  %v3499_v22 = vadd.f32 %v6412_v21, %v3376_v17  ;;  %v3378_v57 = vadd.f32 %v3377_v55, %v7211_v27  ;;  %v3674_v11 = vpack.c.bf16 %v3624_v42, %v3622_v59  ;;  %v7398_v42 = vpop.f32.mrf.mxu0 }
 0x454   : > { %v3379_v43 = vpop.f32.mrf.mxu1  ;;  %v3562_v58 = vmul.f32 0.2, %v3498_v50 }
 0x455   : > { %v3380_v1 = vadd.f32 %v3379_v43, %v7213_v34  ;;  %v3675_v52 = vpack.c.bf16 %v3625_v54, %v3623_v4  ;;  %v3500_v19 = vadd.f32 %v6410_v20, %v3378_v57  ;;  %v3563_v26 = vmul.f32 0.2, %v3499_v22 }
 0x456   : > { %v3383_v48 = vpop.f32.mrf.mxu1  ;;  %v3626_v37 = vmax.f32 %v3498_v50, %v3562_v58 }
 0x457   : > { %v3501_v12 = vadd.f32 %v6412_v21, %v3380_v1  ;;  %3987 = vmatprep.mubr.bf16.mxu0 %v3675_v52  ;;  %v3564_v27 = vmul.f32 0.2, %v3500_v19  ;;  %v3384_v15 = vadd.f32 %v3383_v48, %v7216_v53  ;;  %v3627_v51 = vmax.f32 %v3499_v22, %v3563_v26 }
 0x458   : > { %v3385_v7 = vpop.f32.mrf.mxu1  ;;  %3988 = vmatmul.mubr.bf16.gmra.mxu0 %v3674_v11 }
 0x459   : > { %v3565_v41 = vmul.f32 0.2, %v3501_v12  ;;  %v3386_v34 = vadd.f32 %v3385_v7, %v7222_v46  ;;  %v3628_v49 = vmax.f32 %v3500_v19, %v3564_v27  ;;  %v3502_v9 = vadd.f32 %v6410_v20, %v3384_v15 }
 0x45a   : > { %v3387_v56 = vpop.f32.mrf.mxu1 }
 0x45b   : > { %v3629_v23 = vmax.f32 %v3501_v12, %v3565_v41  ;;  %v3503_v2 = vadd.f32 %v6412_v21, %v3386_v34  ;;  %v3388_v6 = vadd.f32 %v3387_v56, %v7233_v8  ;;  %v3676_v55 = vpack.c.bf16 %v3628_v49, %v3626_v37  ;;  %v7407_v12 = vpop.f32.mrf.mxu0 }
 0x45c   : > { %v3389_v24 = vpop.f32.mrf.mxu1  ;;  %v3566_v54 = vmul.f32 0.2, %v3502_v9 }
 0x45d   : > { %v3504_v13 = vadd.f32 %v6410_v20, %v3388_v6  ;;  %v3390_v53 = vadd.f32 %v3389_v24, %v7245_v33  ;;  %v3677_v17 = vpack.c.bf16 %v3629_v23, %v3627_v51  ;;  %v3567_v40 = vmul.f32 0.2, %v3503_v2  ;;  %v6263_v33 = vld [vmem:[%s7755_s7 + $0xc0] sm:$0xff]   ;;  %v7413_v49 = vpop.f32.mrf.mxu0 }
 0x45e   : > { %v3393_v46 = vpop.f32.mrf.mxu1  ;;  %5745 = vmatprep.subr.bf16.mxu1 %v6263_v33 }
 0x45f   : > { %v3568_v31 = vmul.f32 0.2, %v3504_v13  ;;  %v3505_v4 = vadd.f32 %v6412_v21, %v3390_v53  ;;  %3997 = vmatprep.mubr.bf16.mxu0 %v3677_v17  ;;  %v3394_v57 = vadd.f32 %v3393_v46, %v7257_v60  ;;  %v3631_v50 = vmax.f32 %v3503_v2, %v3567_v40  ;;  %v7419_v17 = vpop.f32.mrf.mxu0 }
 0x460   : > { %v3395_v8 = vpop.f32.mrf.mxu1  ;;  %3998 = vmatmul.mubr.bf16.gmra.mxu0 %v3676_v55  ;;  %v3630_v60 = vmax.f32 %v3502_v9, %v3566_v54 }
 0x461   : > { %v3569_v22 = vmul.f32 0.2, %v3505_v4  ;;  %v3396_v43 = vadd.f32 %v3395_v8, %v7269_v36  ;;  %v3632_v1 = vmax.f32 %v3504_v13, %v3568_v31  ;;  %v3506_v36 = vadd.f32 %v6410_v20, %v3394_v57 }
 0x462   : > { %v3397_v59 = vpop.f32.mrf.mxu1 }
 0x463   : > { %v3633_v52 = vmax.f32 %v3505_v4, %v3569_v22  ;;  %v3507_v19 = vadd.f32 %v6412_v21, %v3396_v43  ;;  %v3398_v48 = vadd.f32 %v3397_v59, %v7281_v63  ;;  %v3678_v41 = vpack.c.bf16 %v3632_v1, %v3630_v60  ;;  %v7428_v59 = vpop.f32.mrf.mxu0 }
 0x464   : > { %v3399_v11 = vpop.f32.mrf.mxu1  ;;  %v3570_v23 = vmul.f32 0.2, %v3506_v36 }
 0x465   : > { %v3400_v26 = vadd.f32 %v3399_v11, %v7299_v29  ;;  %v3679_v27 = vpack.c.bf16 %v3633_v52, %v3631_v50  ;;  %v3508_v7 = vadd.f32 %v6410_v20, %v3398_v48  ;;  %v3571_v34 = vmul.f32 0.2, %v3507_v19 }
 0x466   : > { %v3403_v58 = vpop.f32.mrf.mxu1  ;;  %v3634_v55 = vmax.f32 %v3506_v36, %v3570_v23 }
 0x467   : > { %v3509_v15 = vadd.f32 %v6412_v21, %v3400_v26  ;;  %4007 = vmatprep.mubr.bf16.mxu0 %v3679_v27  ;;  %v3572_v56 = vmul.f32 0.2, %v3508_v7  ;;  %v3404_v6 = vadd.f32 %v3403_v58, %v7311_v32  ;;  %v3635_v53 = vmax.f32 %v3507_v19, %v3571_v34  ;;  %v3086_v27 = vpop.f32.mrf.mxu0 }
 0x468   : > { %v3405_v63 = vpop.f32.mrf.mxu1  ;;  %4008 = vmatmul.mubr.bf16.gmra.mxu0 %v3678_v41 }
 0x469   : > { %v3573_v2 = vmul.f32 0.2, %v3509_v15  ;;  %v3406_v51 = vadd.f32 %v3405_v63, %v7323_v5  ;;  %v3636_v24 = vmax.f32 %v3508_v7, %v3572_v56  ;;  %v3510_v40 = vadd.f32 %v6410_v20, %v3404_v6  ;;  %v6264_v5 = vld [vmem:[%s7755_s7 + $0x80] sm:$0xff]   ;;  %v3090_v6 = vpop.f32.mrf.mxu0 }
 0x46a   : > { %v3407_v29 = vpop.f32.mrf.mxu1  ;;  %5746 = vmatpush3.bf16.msra.mxu1 %v6264_v5 }
 0x46b   : > { %v3637_v37 = vmax.f32 %v3509_v15, %v3573_v2  ;;  %v3511_v9 = vadd.f32 %v6412_v21, %v3406_v51  ;;  %v3408_v13 = vadd.f32 %v3407_v29, %v7335_v14  ;;  %v3680_v54 = vpack.c.bf16 %v3636_v24, %v3634_v55 }
 0x46c   : > { %v3409_v46 = vpop.f32.mrf.mxu1  ;;  %v3574_v33 = vmul.f32 0.2, %v3510_v40 }
 0x46d   : > { %v3512_v31 = vadd.f32 %v6410_v20, %v3408_v13  ;;  %v3410_v32 = vadd.f32 %v3409_v46, %v7350_v45  ;;  %v3681_v8 = vpack.c.bf16 %v3637_v37, %v3635_v53  ;;  %v3575_v22 = vmul.f32 0.2, %v3511_v9 }
 0x46e   : > { %v3413_v4 = vpop.f32.mrf.mxu1  ;;  %v3638_v7 = vmax.f32 %v3510_v40, %v3574_v33  ;;  %v3092_v40 = vpop.f32.mrf.mxu0 }
 0x46f   : > { %v3576_v14 = vmul.f32 0.2, %v3512_v31  ;;  %v3513_v57 = vadd.f32 %v6412_v21, %v3410_v32  ;;  %4017 = vmatprep.mubr.bf16.mxu0 %v3681_v8  ;;  %v3414_v45 = vadd.f32 %v3413_v4, %v7356_v62  ;;  %v3639_v19 = vmax.f32 %v3511_v9, %v3575_v22 }
 0x470   : > { %v3415_v43 = vpop.f32.mrf.mxu1  ;;  %4018 = vmatmul.mubr.bf16.gmra.mxu0 %v3680_v54 }
 0x471   : > { %v3577_v50 = vmul.f32 0.2, %v3513_v57  ;;  %v3416_v1 = vadd.f32 %v3415_v43, %v7362_v18  ;;  %v3640_v48 = vmax.f32 %v3512_v31, %v3576_v14  ;;  %v3514_v58 = vadd.f32 %v6410_v20, %v3414_v45 }
 0x472   : > { %v3417_v52 = vpop.f32.mrf.mxu1 }
 0x473   : > { %v3641_v11 = vmax.f32 %v3513_v57, %v3577_v50  ;;  %v3515_v60 = vadd.f32 %v6412_v21, %v3416_v1  ;;  %v3418_v36 = vadd.f32 %v3417_v52, %v7368_v38  ;;  %v3682_v34 = vpack.c.bf16 %v3640_v48, %v3638_v7 }
 0x474   : > { %v3419_v26 = vpop.f32.mrf.mxu1  ;;  %v3578_v38 = vmul.f32 0.2, %v3514_v58 }
 0x475   : > { %v3420_v41 = vadd.f32 %v3419_v26, %v7380_v3  ;;  %v3683_v15 = vpack.c.bf16 %v3641_v11, %v3639_v19  ;;  %v3516_v62 = vadd.f32 %v6410_v20, %v3418_v36  ;;  %v3579_v63 = vmul.f32 0.2, %v3515_v60 }
 0x476   : > { %v3423_v18 = vpop.f32.mrf.mxu1  ;;  %v3642_v31 = vmax.f32 %v3514_v58, %v3578_v38 }
 0x477   : > { %v3517_v56 = vadd.f32 %v6412_v21, %v3420_v41  ;;  %4027 = vmatprep.mubr.bf16.mxu0 %v3683_v15  ;;  %v3580_v23 = vmul.f32 0.2, %v3516_v62  ;;  %v3424_v29 = vadd.f32 %v3423_v18, %v7386_v0  ;;  %v3643_v46 = vmax.f32 %v3515_v60, %v3579_v63 }
 0x478   : > { %v3425_v2 = vpop.f32.mrf.mxu1  ;;  %4028 = vmatmul.mubr.bf16.gmra.mxu0 %v3682_v34 }
 0x479   : > { %v3581_v51 = vmul.f32 0.2, %v3517_v56  ;;  %v3426_v24 = vadd.f32 %v3425_v2, %v7392_v35  ;;  %v3644_v37 = vmax.f32 %v3516_v62, %v3580_v23  ;;  %v3518_v32 = vadd.f32 %v6410_v20, %v3424_v29 }
 0x47a   : > { %v3427_v3 = vpop.f32.mrf.mxu1 }
 0x47b   : > { %v3645_v9 = vmax.f32 %v3517_v56, %v3581_v51  ;;  %v3519_v13 = vadd.f32 %v6412_v21, %v3426_v24  ;;  %v3428_v53 = vadd.f32 %v3427_v3, %v7398_v42  ;;  %v3684_v8 = vpack.c.bf16 %v3644_v37, %v3642_v31  ;;  %v3094_v42 = vpop.f32.mrf.mxu0 }
 0x47c   : > { %v3429_v55 = vpop.f32.mrf.mxu1  ;;  %v3582_v43 = vmul.f32 0.2, %v3518_v32 }
 0x47d   : > { %v3520_v5 = vadd.f32 %v6410_v20, %v3428_v53  ;;  %v3430_v0 = vadd.f32 %v3429_v55, %v7407_v12  ;;  %v3685_v35 = vpack.c.bf16 %v3645_v9, %v3643_v46  ;;  %v3583_v54 = vmul.f32 0.2, %v3519_v13  ;;  %v3096_v36 = vpop.f32.mrf.mxu0 }
 0x47e   : > { %v3433_v4 = vpop.f32.mrf.mxu1  ;;  %v3646_v26 = vmax.f32 %v3518_v32, %v3582_v43 }
 0x47f   : > { %v3584_v22 = vmul.f32 0.2, %v3520_v5  ;;  %v3521_v14 = vadd.f32 %v6412_v21, %v3430_v0  ;;  %4037 = vmatprep.mubr.bf16.mxu0 %v3685_v35  ;;  %v3434_v50 = vadd.f32 %v3433_v4, %v7413_v49  ;;  %v3647_v52 = vmax.f32 %v3519_v13, %v3583_v54  ;;  %v3100_v56 = vpop.f32.mrf.mxu0 }
 0x480   : > { %v3435_v57 = vpop.f32.mrf.mxu1  ;;  %4038 = vmatmul.mubr.bf16.gmra.mxu0 %v3684_v8 }
 0x481   : > { %v3585_v33 = vmul.f32 0.2, %v3521_v14  ;;  %v3436_v45 = vadd.f32 %v3435_v57, %v7419_v17  ;;  %v3648_v12 = vmax.f32 %v3520_v5, %v3584_v22  ;;  %v3522_v7 = vadd.f32 %v6410_v20, %v3434_v50  ;;  %v3102_v9 = vpop.f32.mrf.mxu0 }
 0x482   : > { %v3437_v1 = vpop.f32.mrf.mxu1 }
 0x483   : > { %v3649_v19 = vmax.f32 %v3521_v14, %v3585_v33  ;;  %v3523_v48 = vadd.f32 %v6412_v21, %v3436_v45  ;;  %v3438_v11 = vadd.f32 %v3437_v1, %v7428_v59  ;;  %v3686_v17 = vpack.c.bf16 %v3648_v12, %v3646_v26  ;;  %v3104_v35 = vpop.f32.mrf.mxu0 }
 0x484   : > { %v3439_v60 = vpop.f32.mrf.mxu1  ;;  %v3586_v23 = vmul.f32 0.2, %v3522_v7 }
 0x485   : > { %v3440_v58 = vadd.f32 %v3439_v60, %v3086_v27  ;;  %v3687_v41 = vpack.c.bf16 %v3649_v19, %v3647_v52  ;;  %v3524_v49 = vadd.f32 %v6410_v20, %v3438_v11  ;;  %v3587_v18 = vmul.f32 0.2, %v3523_v48  ;;  %v3106_v1 = vpop.f32.mrf.mxu0 }
 0x486   : > { %v3443_v15 = vpop.f32.mrf.mxu1  ;;  %v3650_v53 = vmax.f32 %v3522_v7, %v3586_v23 }
 0x487   : > { %v3525_v62 = vadd.f32 %v6412_v21, %v3440_v58  ;;  %4047 = vmatprep.mubr.bf16.mxu0 %v3687_v41  ;;  %v3588_v34 = vmul.f32 0.2, %v3524_v49  ;;  %v3444_v2 = vadd.f32 %v3443_v15, %v3090_v6  ;;  %v3651_v37 = vmax.f32 %v3523_v48, %v3587_v18 }
 0x488   : > { %v3445_v63 = vpop.f32.mrf.mxu1  ;;  %4048 = vmatmul.mubr.bf16.gmra.mxu0 %v3686_v17 }
 0x489   : > { %v3589_v59 = vmul.f32 0.2, %v3525_v62  ;;  %v3446_v38 = vadd.f32 %v3445_v63, %v3092_v40  ;;  %v3652_v29 = vmax.f32 %v3524_v49, %v3588_v34  ;;  %v3526_v46 = vadd.f32 %v6410_v20, %v3444_v2 }
 0x48a   : > { %v3447_v51 = vpop.f32.mrf.mxu1 }
 0x48b   : > { %v3653_v27 = vmax.f32 %v3525_v62, %v3589_v59  ;;  %v3527_v24 = vadd.f32 %v6412_v21, %v3446_v38  ;;  %v3448_v3 = vadd.f32 %v3447_v51, %v3094_v42  ;;  %v3688_v6 = vpack.c.bf16 %v3652_v29, %v3650_v53  ;;  %v7818_v59 = vld [vmem:[#allocation3_spill] sm:$0xff]  ;;  %v7819_v38 = vld [vmem:[#allocation2_spill] sm:$0xff] }
 0x48c   : > { %v3449_v13 = vpop.f32.mrf.mxu1  ;;  %v3590_v54 = vmul.f32 0.2, %v3526_v46 }
 0x48d   : > { %v3528_v55 = vadd.f32 %v6410_v20, %v3448_v3  ;;  %v3450_v31 = vadd.f32 %v3449_v13, %v3096_v36  ;;  %v3689_v5 = vpack.c.bf16 %v3653_v27, %v3651_v37  ;;  %v3591_v40 = vmul.f32 0.2, %v3527_v24 }
 0x48e   : > { %v3453_v32 = vpop.f32.mrf.mxu1  ;;  %v3654_v19 = vmax.f32 %v3526_v46, %v3590_v54 }
 0x48f   : > { %v3592_v0 = vmul.f32 0.2, %v3528_v55  ;;  %v3529_v4 = vadd.f32 %v6412_v21, %v3450_v31  ;;  %4057 = vmatprep.mubr.bf16.mxu0 %v3689_v5  ;;  %v3454_v14 = vadd.f32 %v3453_v32, %v3100_v56  ;;  %v3655_v43 = vmax.f32 %v3527_v24, %v3591_v40  ;;  %v7821_v32 = vld [vmem:[#allocation15_spill] sm:$0xff] }
 0x490   : > { %v3455_v8 = vpop.f32.mrf.mxu1  ;;  %4058 = vmatmul.mubr.bf16.gmra.mxu0 %v3688_v6 }
 0x491   : > { %v3593_v22 = vmul.f32 0.2, %v3529_v4  ;;  %v3456_v57 = vadd.f32 %v3455_v8, %v3102_v9  ;;  %v3656_v33 = vmax.f32 %v3528_v55, %v3592_v0  ;;  %v3530_v48 = vadd.f32 %v6410_v20, %v3454_v14  ;;  %v7820_v55 = vld [vmem:[#allocation14_spill] sm:$0xff] }
 0x492   : > { %v3457_v42 = vpop.f32.mrf.mxu1 }
 0x493   : > { %v3657_v50 = vmax.f32 %v3529_v4, %v3593_v22  ;;  %v3531_v45 = vadd.f32 %v6412_v21, %v3456_v57  ;;  %v3458_v52 = vadd.f32 %v3457_v42, %v3104_v35  ;;  %v3690_v26 = vpack.c.bf16 %v3656_v33, %v3654_v19 }
 0x494   : > { %v3459_v12 = vpop.f32.mrf.mxu1  ;;  %v3594_v49 = vmul.f32 0.2, %v3530_v48 }
 0x495   : > { %v3460_v11 = vadd.f32 %v3459_v12, %v3106_v1  ;;  %v3691_v60 = vpack.c.bf16 %v3657_v50, %v3655_v43  ;;  %v3532_v36 = vadd.f32 %v6410_v20, %v3458_v52  ;;  %v3595_v7 = vmul.f32 0.2, %v3531_v45  ;;  %v7808_v20 = vld [vmem:[#allocation4_spill] sm:$0xff]  ;;  %v7823_v12 = vld [vmem:[#allocation17_spill] sm:$0xff] }
 0x496   : > { %v3658_v34 = vmax.f32 %v3530_v48, %v3594_v49  ;;  %v7822_v1 = vld [vmem:[#allocation16_spill] sm:$0xff] }
 0x497   : > { %v3533_v58 = vadd.f32 %v6412_v21, %v3460_v11  ;;  %4067 = vmatprep.mubr.bf16.mxu0 %v3691_v60  ;;  %v3596_v41 = vmul.f32 0.2, %v3532_v36  ;;  %v3659_v17 = vmax.f32 %v3531_v45, %v3595_v7  ;;  %v7809_v21 = vld [vmem:[#allocation5_spill] sm:$0xff] }
 0x498   : > { %4068 = vmatmul.mubr.bf16.gmra.mxu0 %v3690_v26 }
 0x499   : > { %v3597_v15 = vmul.f32 0.2, %v3533_v58  ;;  %v3660_v62 = vmax.f32 %v3532_v36, %v3596_v41 }
 0x49b   : > { %v3661_v18 = vmax.f32 %v3533_v58, %v3597_v15  ;;  %v3692_v63 = vpack.c.bf16 %v3660_v62, %v3658_v34 }
 0x49d   : > { %v3693_v56 = vpack.c.bf16 %v3661_v18, %v3659_v17 }
 0x49f   : > { %4077 = vmatprep.mubr.bf16.mxu0 %v3693_v56 }
 0x4a0   : > { %4078 = vmatmul.mubr.bf16.gmra.mxu0 %v3692_v63 }
 0x4a1   : > { %4666 = vmatprep.mubr.bf16.mxu0 %v6966_v25  ;;  %v7810_v25 = vld [vmem:[#allocation6_spill] sm:$0xff] }
 0x4a8   : > { %4667 = vmatmul.mubr.bf16.vlgmr.msra.gmra.mxu0 %v6968_v44  ;;  %v7811_v44 = vld [vmem:[#allocation7_spill] sm:$0xff] }
 0x4a9   : > { %4674 = vmatprep.mubr.bf16.mxu0 %v6980_v61  ;;  %v7812_v61 = vld [vmem:[#allocation8_spill] sm:$0xff] }
 0x4b0   : > { %4675 = vmatmul.mubr.bf16.gmra.mxu0 %v6982_v10  ;;  %v7813_v10 = vld [vmem:[#allocation9_spill] sm:$0xff] }
 0x4b1   : > { %4682 = vmatprep.mubr.bf16.mxu0 %v6994_v16  ;;  %v7814_v16 = vld [vmem:[#allocation10_spill] sm:$0xff] }
 0x4b8   : > { %4683 = vmatmul.mubr.bf16.gmra.mxu0 %v6996_v47  ;;  %v7815_v47 = vld [vmem:[#allocation11_spill] sm:$0xff] }
 0x4b9   : > { %4690 = vmatprep.mubr.bf16.mxu0 %v7008_v30 }
 0x4c0   : > { %4691 = vmatmul.mubr.bf16.gmra.mxu0 %v7010_v28  ;;  %v7816_v28 = vld [vmem:[#allocation12_spill] sm:$0xff] }
 0x4c1   : > { %4698 = vmatprep.mubr.bf16.mxu0 %v7019_v39  ;;  %v7817_v39 = vld [vmem:[#allocation13_spill] sm:$0xff] }
 0x4c8   : > { %4699 = vmatmul.mubr.bf16.gmra.mxu0 %v7808_v20  ;;  %v7824_v20 = vld [vmem:[#allocation18_spill] sm:$0xff] }
 0x4c9   : > { %4706 = vmatprep.mubr.bf16.mxu0 %v7809_v21 }
 0x4d0   : > { %4707 = vmatmul.mubr.bf16.gmra.mxu0 %v7810_v25  ;;  %v7825_v25 = vld [vmem:[#allocation19_spill] sm:$0xff] }
 0x4d1   : > { %4714 = vmatprep.mubr.bf16.mxu0 %v7811_v44 }
 0x4d8   : > { %4715 = vmatmul.mubr.bf16.gmra.mxu0 %v7812_v61 }
 0x4d9   : > { %4722 = vmatprep.mubr.bf16.mxu0 %v7813_v10 }
 0x4e0   : > { %4723 = vmatmul.mubr.bf16.gmra.mxu0 %v7814_v16 }
 0x4e1   : > { %4730 = vmatprep.mubr.bf16.mxu0 %v7815_v47 }
 0x4e8   : > { %v3929_v30 = vpop.f32.mrf.mxu0  ;;  %4731 = vmatmul.mubr.bf16.gmra.mxu0 %v7816_v28 }
 0x4e9   : > { %4738 = vmatprep.mubr.bf16.mxu0 %v7817_v39  ;;  %v3930_v51 = vadd.f32 %v3929_v30, %v7819_v38 }
 0x4ea   : > { %v3931_v23 = vpop.f32.mrf.mxu0 }
 0x4eb   : > { %v3932_v2 = vadd.f32 %v3931_v23, %v7818_v59  ;;  %v4088_v13 = vmul.f32 0.2, %v3930_v51 }
 0x4ec   : > { %v3933_v29 = vpop.f32.mrf.mxu0 }
 0x4ed   : > { %v3934_v27 = vadd.f32 %v3933_v29, %v7819_v38  ;;  %v4089_v3 = vmul.f32 0.2, %v3932_v2  ;;  %v4152_v0 = vmax.f32 %v3930_v51, %v4088_v13  ;;  %v7826_v13 = vld [vmem:[#allocation20_spill] sm:$0xff] }
 0x4ee   : > { %v3935_v24 = vpop.f32.mrf.mxu0 }
 0x4ef   : > { %v4090_v37 = vmul.f32 0.2, %v3934_v27  ;;  %v3936_v9 = vadd.f32 %v3935_v24, %v7818_v59  ;;  %v4153_v5 = vmax.f32 %v3932_v2, %v4089_v3 }
 0x4f0   : > { %v3939_v46 = vpop.f32.mrf.mxu0  ;;  %4739 = vmatmul.mubr.bf16.gmra.mxu0 %v7820_v55 }
 0x4f1   : > { %v4091_v53 = vmul.f32 0.2, %v3936_v9  ;;  %v4154_v31 = vmax.f32 %v3934_v27, %v4090_v37  ;;  %4746 = vmatprep.mubr.bf16.mxu0 %v7821_v32  ;;  %v3940_v35 = vadd.f32 %v3939_v46, %v7819_v38  ;;  %v7827_v46 = vld [vmem:[#allocation21_spill] sm:$0xff] }
 0x4f2   : > { %v3941_v40 = vpop.f32.mrf.mxu0 }
 0x4f3   : > { %v4155_v6 = vmax.f32 %v3936_v9, %v4091_v53  ;;  %v3942_v4 = vadd.f32 %v3941_v40, %v7818_v59  ;;  %v4216_v22 = vpack.c.bf16 %v4154_v31, %v4152_v0  ;;  %v4092_v50 = vmul.f32 0.2, %v3940_v35 }
 0x4f4   : > { %v3943_v8 = vpop.f32.mrf.mxu0 }
 0x4f5   : > { %v4217_v54 = vpack.c.bf16 %v4155_v6, %v4153_v5  ;;  %v3944_v14 = vadd.f32 %v3943_v8, %v7819_v38  ;;  %v4093_v42 = vmul.f32 0.2, %v3942_v4  ;;  %v4156_v26 = vmax.f32 %v3940_v35, %v4092_v50  ;;  %v7828_v50 = vld [vmem:[#allocation22_spill] sm:$0xff] }
 0x4f6   : > { %v3945_v57 = vpop.f32.mrf.mxu0 }
 0x4f7   : > { %4409 = vmatprep.mubr.bf16.mxu1 %v4217_v54  ;;  %v4094_v43 = vmul.f32 0.2, %v3944_v14  ;;  %v3946_v33 = vadd.f32 %v3945_v57, %v7818_v59  ;;  %v4157_v11 = vmax.f32 %v3942_v4, %v4093_v42 }
 0x4f8   : > { %4410 = vmatmul.mubr.bf16.vlgmr.msra.gmra.mxu1 %v4216_v22  ;;  %v3949_v45 = vpop.f32.mrf.mxu0  ;;  %4747 = vmatmul.mubr.bf16.gmra.mxu0 %v7822_v1  ;;  %v7829_v1 = vld [vmem:[#allocation23_spill] sm:$0xff] }
 0x4f9   : > { %v4095_v52 = vmul.f32 0.2, %v3946_v33  ;;  %4754 = vmatprep.mubr.bf16.mxu0 %v7823_v12  ;;  %v4158_v19 = vmax.f32 %v3944_v14, %v4094_v43  ;;  %v3950_v7 = vadd.f32 %v3949_v45, %v7819_v38 }
 0x4fa   : > { %v3951_v48 = vpop.f32.mrf.mxu0 }
 0x4fb   : > { %v4159_v60 = vmax.f32 %v3946_v33, %v4095_v52  ;;  %v3952_v36 = vadd.f32 %v3951_v48, %v7818_v59  ;;  %v4218_v15 = vpack.c.bf16 %v4158_v19, %v4156_v26  ;;  %v4096_v56 = vmul.f32 0.2, %v3950_v7 }
 0x4fc   : > { %v3953_v58 = vpop.f32.mrf.mxu0 }
 0x4fd   : > { %v3954_v41 = vadd.f32 %v3953_v58, %v7819_v38  ;;  %v4219_v49 = vpack.c.bf16 %v4159_v60, %v4157_v11  ;;  %v4097_v62 = vmul.f32 0.2, %v3952_v36  ;;  %v4160_v30 = vmax.f32 %v3950_v7, %v4096_v56  ;;  %v7830_v56 = vld [vmem:[#allocation24_spill] sm:$0xff] }
 0x4fe   : > { %v3955_v17 = vpop.f32.mrf.mxu0 }
 0x4ff   : > { %v4098_v18 = vmul.f32 0.2, %v3954_v41  ;;  %v3956_v34 = vadd.f32 %v3955_v17, %v7818_v59  ;;  %4417 = vmatprep.mubr.bf16.mxu1 %v4219_v49  ;;  %v4161_v10 = vmax.f32 %v3952_v36, %v4097_v62 }
 0x500   : > { %v3959_v63 = vpop.f32.mrf.mxu0  ;;  %4418 = vmatmul.mubr.bf16.gmra.mxu1 %v4218_v15  ;;  %4755 = vmatmul.mubr.bf16.gmra.mxu0 %v7824_v20  ;;  %v7831_v20 = vld [vmem:[#allocation25_spill] sm:$0xff] }
 0x501   : > { %v4099_v21 = vmul.f32 0.2, %v3956_v34  ;;  %4762 = vmatprep.mubr.bf16.mxu0 %v7825_v25  ;;  %v4162_v44 = vmax.f32 %v3954_v41, %v4098_v18  ;;  %v3960_v28 = vadd.f32 %v3959_v63, %v7819_v38 }
 0x502   : > { %v3961_v61 = vpop.f32.mrf.mxu0 }
 0x503   : > { %v4163_v16 = vmax.f32 %v3956_v34, %v4099_v21  ;;  %v3962_v47 = vadd.f32 %v3961_v61, %v7818_v59  ;;  %v4220_v51 = vpack.c.bf16 %v4162_v44, %v4160_v30  ;;  %v4100_v37 = vmul.f32 0.2, %v3960_v28 }
 0x504   : > { %v3963_v39 = vpop.f32.mrf.mxu0 }
 0x505   : > { %v3964_v23 = vadd.f32 %v3963_v39, %v7819_v38  ;;  %v4221_v2 = vpack.c.bf16 %v4163_v16, %v4161_v10  ;;  %v4101_v27 = vmul.f32 0.2, %v3962_v47  ;;  %v4164_v40 = vmax.f32 %v3960_v28, %v4100_v37  ;;  %v7832_v37 = vld [vmem:[#allocation26_spill] sm:$0xff] }
 0x506   : > { %v3965_v29 = vpop.f32.mrf.mxu0 }
 0x507   : > { %v4102_v24 = vmul.f32 0.2, %v3964_v23  ;;  %v3966_v3 = vadd.f32 %v3965_v29, %v7818_v59  ;;  %4425 = vmatprep.mubr.bf16.mxu1 %v4221_v2  ;;  %v4165_v32 = vmax.f32 %v3962_v47, %v4101_v27 }
 0x508   : > { %v3969_v9 = vpop.f32.mrf.mxu0  ;;  %4426 = vmatmul.mubr.bf16.gmra.mxu1 %v4220_v51  ;;  %4763 = vmatmul.mubr.bf16.gmra.mxu0 %v7826_v13 }
 0x509   : > { %v4103_v53 = vmul.f32 0.2, %v3966_v3  ;;  %4770 = vmatprep.mubr.bf16.mxu0 %v7827_v46  ;;  %v4166_v55 = vmax.f32 %v3964_v23, %v4102_v24  ;;  %v3970_v0 = vadd.f32 %v3969_v9, %v7819_v38 }
 0x50a   : > { %v3971_v31 = vpop.f32.mrf.mxu0 }
 0x50b   : > { %v4167_v5 = vmax.f32 %v3966_v3, %v4103_v53  ;;  %v3972_v6 = vadd.f32 %v3971_v31, %v7818_v59  ;;  %v4222_v54 = vpack.c.bf16 %v4166_v55, %v4164_v40  ;;  %v4104_v43 = vmul.f32 0.2, %v3970_v0 }
 0x50c   : > { %v3973_v4 = vpop.f32.mrf.mxu0 }
 0x50d   : > { %v3974_v35 = vadd.f32 %v3973_v4, %v7819_v38  ;;  %v4223_v8 = vpack.c.bf16 %v4167_v5, %v4165_v32  ;;  %v4105_v14 = vmul.f32 0.2, %v3972_v6  ;;  %v4168_v60 = vmax.f32 %v3970_v0, %v4104_v43 }
 0x50e   : > { %v3975_v22 = vpop.f32.mrf.mxu0 }
 0x50f   : > { %v4106_v57 = vmul.f32 0.2, %v3974_v35  ;;  %v3976_v42 = vadd.f32 %v3975_v22, %v7818_v59  ;;  %4433 = vmatprep.mubr.bf16.mxu1 %v4223_v8  ;;  %v4169_v19 = vmax.f32 %v3972_v6, %v4105_v14 }
 0x510   : > { %v3979_v33 = vpop.f32.mrf.mxu0  ;;  %4434 = vmatmul.mubr.bf16.gmra.mxu1 %v4222_v54  ;;  %4771 = vmatmul.mubr.bf16.gmra.mxu0 %v7828_v50 }
 0x511   : > { %v4107_v45 = vmul.f32 0.2, %v3976_v42  ;;  %4778 = vmatprep.mubr.bf16.mxu0 %v7829_v1  ;;  %v4170_v52 = vmax.f32 %v3974_v35, %v4106_v57  ;;  %v3980_v36 = vadd.f32 %v3979_v33, %v7819_v38 }
 0x512   : > { %v3981_v12 = vpop.f32.mrf.mxu0 }
 0x513   : > { %v4171_v48 = vmax.f32 %v3976_v42, %v4107_v45  ;;  %v3982_v11 = vadd.f32 %v3981_v12, %v7818_v59  ;;  %v4224_v41 = vpack.c.bf16 %v4170_v52, %v4168_v60  ;;  %v4108_v18 = vmul.f32 0.2, %v3980_v36 }
 0x514   : > { %v3983_v26 = vpop.f32.mrf.mxu0 }
 0x515   : > { %v3984_v7 = vadd.f32 %v3983_v26, %v7819_v38  ;;  %v4225_v58 = vpack.c.bf16 %v4171_v48, %v4169_v19  ;;  %v4109_v15 = vmul.f32 0.2, %v3982_v11  ;;  %v4172_v16 = vmax.f32 %v3980_v36, %v4108_v18 }
 0x516   : > { %v3985_v49 = vpop.f32.mrf.mxu0 }
 0x517   : > { %v4110_v17 = vmul.f32 0.2, %v3984_v7  ;;  %v3986_v62 = vadd.f32 %v3985_v49, %v7818_v59  ;;  %4441 = vmatprep.mubr.bf16.mxu1 %v4225_v58  ;;  %v4173_v44 = vmax.f32 %v3982_v11, %v4109_v15 }
 0x518   : > { %v3989_v34 = vpop.f32.mrf.mxu0  ;;  %4442 = vmatmul.mubr.bf16.gmra.mxu1 %v4224_v41  ;;  %4779 = vmatmul.mubr.bf16.gmra.mxu0 %v7830_v56 }
 0x519   : > { %v4111_v63 = vmul.f32 0.2, %v3986_v62  ;;  %4786 = vmatprep.mubr.bf16.mxu0 %v7831_v20  ;;  %v4174_v21 = vmax.f32 %v3984_v7, %v4110_v17  ;;  %v3990_v47 = vadd.f32 %v3989_v34, %v7819_v38 }
 0x51a   : > { %v3991_v25 = vpop.f32.mrf.mxu0 }
 0x51b   : > { %v4175_v61 = vmax.f32 %v3986_v62, %v4111_v63  ;;  %v3992_v10 = vadd.f32 %v3991_v25, %v7818_v59  ;;  %v4226_v23 = vpack.c.bf16 %v4174_v21, %v4172_v16  ;;  %v4112_v24 = vmul.f32 0.2, %v3990_v47 }
 0x51c   : > { %v3993_v30 = vpop.f32.mrf.mxu0 }
 0x51d   : > { %v3994_v28 = vadd.f32 %v3993_v30, %v7819_v38  ;;  %v4227_v39 = vpack.c.bf16 %v4175_v61, %v4173_v44  ;;  %v4113_v51 = vmul.f32 0.2, %v3992_v10  ;;  %v4176_v32 = vmax.f32 %v3990_v47, %v4112_v24 }
 0x51e   : > { %v3995_v2 = vpop.f32.mrf.mxu0 }
 0x51f   : > { %v4114_v29 = vmul.f32 0.2, %v3994_v28  ;;  %v3996_v27 = vadd.f32 %v3995_v2, %v7818_v59  ;;  %4449 = vmatprep.mubr.bf16.mxu1 %v4227_v39  ;;  %v4177_v46 = vmax.f32 %v3992_v10, %v4113_v51 }
 0x520   : > { %v3999_v3 = vpop.f32.mrf.mxu0  ;;  %4450 = vmatmul.mubr.bf16.gmra.mxu1 %v4226_v23  ;;  %4787 = vmatmul.mubr.bf16.gmra.mxu0 %v7832_v37 }
 0x521   : > { %v4115_v9 = vmul.f32 0.2, %v3996_v27  ;;  %v4178_v13 = vmax.f32 %v3994_v28, %v4114_v29  ;;  %v4000_v5 = vadd.f32 %v3999_v3, %v7819_v38 }
 0x522   : > { %v4001_v53 = vpop.f32.mrf.mxu0 }
 0x523   : > { %v4179_v55 = vmax.f32 %v3996_v27, %v4115_v9  ;;  %v4002_v31 = vadd.f32 %v4001_v53, %v7818_v59  ;;  %v4228_v4 = vpack.c.bf16 %v4178_v13, %v4176_v32  ;;  %v4116_v14 = vmul.f32 0.2, %v4000_v5 }
 0x524   : > { %v4003_v6 = vpop.f32.mrf.mxu0 }
 0x525   : > { %v4004_v40 = vadd.f32 %v4003_v6, %v7819_v38  ;;  %v4229_v0 = vpack.c.bf16 %v4179_v55, %v4177_v46  ;;  %v4117_v8 = vmul.f32 0.2, %v4002_v31  ;;  %v4180_v52 = vmax.f32 %v4000_v5, %v4116_v14 }
 0x526   : > { %v4005_v35 = vpop.f32.mrf.mxu0 }
 0x527   : > { %v4118_v54 = vmul.f32 0.2, %v4004_v40  ;;  %v4006_v22 = vadd.f32 %v4005_v35, %v7818_v59  ;;  %4457 = vmatprep.mubr.bf16.mxu1 %v4229_v0  ;;  %v4181_v50 = vmax.f32 %v4002_v31, %v4117_v8 }
 0x528   : > { %v4009_v57 = vpop.f32.mrf.mxu0  ;;  %4458 = vmatmul.mubr.bf16.gmra.mxu1 %v4228_v4 }
 0x529   : > { %v4119_v42 = vmul.f32 0.2, %v4006_v22  ;;  %v4182_v43 = vmax.f32 %v4004_v40, %v4118_v54  ;;  %v4010_v12 = vadd.f32 %v4009_v57, %v7819_v38 }
 0x52a   : > { %v4011_v33 = vpop.f32.mrf.mxu0 }
 0x52b   : > { %v4183_v45 = vmax.f32 %v4006_v22, %v4119_v42  ;;  %v4012_v1 = vadd.f32 %v4011_v33, %v7818_v59  ;;  %v4230_v60 = vpack.c.bf16 %v4182_v43, %v4180_v52  ;;  %v4120_v41 = vmul.f32 0.2, %v4010_v12 }
 0x52c   : > { %v4013_v19 = vpop.f32.mrf.mxu0 }
 0x52d   : > { %v4014_v48 = vadd.f32 %v4013_v19, %v7819_v38  ;;  %v4231_v11 = vpack.c.bf16 %v4183_v45, %v4181_v50  ;;  %v4121_v26 = vmul.f32 0.2, %v4012_v1  ;;  %v4184_v63 = vmax.f32 %v4010_v12, %v4120_v41 }
 0x52e   : > { %v4015_v36 = vpop.f32.mrf.mxu0 }
 0x52f   : > { %v4122_v7 = vmul.f32 0.2, %v4014_v48  ;;  %v4016_v58 = vadd.f32 %v4015_v36, %v7818_v59  ;;  %4465 = vmatprep.mubr.bf16.mxu1 %v4231_v11  ;;  %v4185_v18 = vmax.f32 %v4012_v1, %v4121_v26 }
 0x530   : > { %v4019_v49 = vpop.f32.mrf.mxu0  ;;  %4466 = vmatmul.mubr.bf16.gmra.mxu1 %v4230_v60 }
 0x531   : > { %v4123_v15 = vmul.f32 0.2, %v4016_v58  ;;  %v4186_v17 = vmax.f32 %v4014_v48, %v4122_v7  ;;  %v4020_v20 = vadd.f32 %v4019_v49, %v7819_v38 }
 0x532   : > { %v4021_v62 = vpop.f32.mrf.mxu0 }
 0x533   : > { %v4187_v34 = vmax.f32 %v4016_v58, %v4123_v15  ;;  %v4022_v56 = vadd.f32 %v4021_v62, %v7818_v59  ;;  %v4232_v61 = vpack.c.bf16 %v4186_v17, %v4184_v63  ;;  %v4124_v28 = vmul.f32 0.2, %v4020_v20 }
 0x534   : > { %v4023_v21 = vpop.f32.mrf.mxu0 }
 0x535   : > { %v4024_v25 = vadd.f32 %v4023_v21, %v7819_v38  ;;  %v4233_v44 = vpack.c.bf16 %v4187_v34, %v4185_v18  ;;  %v4125_v16 = vmul.f32 0.2, %v4022_v56  ;;  %v4188_v3 = vmax.f32 %v4020_v20, %v4124_v28 }
 0x536   : > { %v4025_v10 = vpop.f32.mrf.mxu0 }
 0x537   : > { %v4126_v47 = vmul.f32 0.2, %v4024_v25  ;;  %v4026_v30 = vadd.f32 %v4025_v10, %v7818_v59  ;;  %4473 = vmatprep.mubr.bf16.mxu1 %v4233_v44  ;;  %v4189_v29 = vmax.f32 %v4022_v56, %v4125_v16 }
 0x538   : > { %v4029_v39 = vpop.f32.mrf.mxu0  ;;  %4474 = vmatmul.mubr.bf16.gmra.mxu1 %v4232_v61 }
 0x539   : > { %v4127_v23 = vmul.f32 0.2, %v4026_v30  ;;  %v4190_v2 = vmax.f32 %v4024_v25, %v4126_v47  ;;  %v4030_v37 = vadd.f32 %v4029_v39, %v7819_v38 }
 0x53a   : > { %v4031_v51 = vpop.f32.mrf.mxu0 }
 0x53b   : > { %v4191_v27 = vmax.f32 %v4026_v30, %v4127_v23  ;;  %v4032_v24 = vadd.f32 %v4031_v51, %v7818_v59  ;;  %v4234_v46 = vpack.c.bf16 %v4190_v2, %v4188_v3  ;;  %v4128_v6 = vmul.f32 0.2, %v4030_v37 }
 0x53c   : > { %v4033_v9 = vpop.f32.mrf.mxu0 }
 0x53d   : > { %v4034_v13 = vadd.f32 %v4033_v9, %v7819_v38  ;;  %v4235_v53 = vpack.c.bf16 %v4191_v27, %v4189_v29  ;;  %v4129_v31 = vmul.f32 0.2, %v4032_v24  ;;  %v4192_v14 = vmax.f32 %v4030_v37, %v4128_v6 }
 0x53e   : > { %v4035_v55 = vpop.f32.mrf.mxu0 }
 0x53f   : > { %v4130_v32 = vmul.f32 0.2, %v4034_v13  ;;  %v4036_v5 = vadd.f32 %v4035_v55, %v7818_v59  ;;  %4481 = vmatprep.mubr.bf16.mxu1 %v4235_v53  ;;  %v4193_v8 = vmax.f32 %v4032_v24, %v4129_v31 }
 0x540   : > { %v4039_v40 = vpop.f32.mrf.mxu0  ;;  %4482 = vmatmul.mubr.bf16.gmra.mxu1 %v4234_v46 }
 0x541   : > { %v4131_v0 = vmul.f32 0.2, %v4036_v5  ;;  %v4194_v4 = vmax.f32 %v4034_v13, %v4130_v32  ;;  %v4040_v57 = vadd.f32 %v4039_v40, %v7819_v38 }
 0x542   : > { %v4041_v35 = vpop.f32.mrf.mxu0 }
 0x543   : > { %v4195_v54 = vmax.f32 %v4036_v5, %v4131_v0  ;;  %v4042_v22 = vadd.f32 %v4041_v35, %v7818_v59  ;;  %v4236_v50 = vpack.c.bf16 %v4194_v4, %v4192_v14  ;;  %v4132_v19 = vmul.f32 0.2, %v4040_v57 }
 0x544   : > { %v4043_v42 = vpop.f32.mrf.mxu0 }
 0x545   : > { %v4044_v43 = vadd.f32 %v4043_v42, %v7819_v38  ;;  %v4237_v33 = vpack.c.bf16 %v4195_v54, %v4193_v8  ;;  %v4133_v1 = vmul.f32 0.2, %v4042_v22  ;;  %v4196_v41 = vmax.f32 %v4040_v57, %v4132_v19 }
 0x546   : > { %v4045_v45 = vpop.f32.mrf.mxu0 }
 0x547   : > { %v4134_v52 = vmul.f32 0.2, %v4044_v43  ;;  %v4046_v12 = vadd.f32 %v4045_v45, %v7818_v59  ;;  %4489 = vmatprep.mubr.bf16.mxu1 %v4237_v33  ;;  %v4197_v26 = vmax.f32 %v4042_v22, %v4133_v1 }
 0x548   : > { %v4049_v48 = vpop.f32.mrf.mxu0  ;;  %4490 = vmatmul.mubr.bf16.gmra.mxu1 %v4236_v50 }
 0x549   : > { %v4135_v11 = vmul.f32 0.2, %v4046_v12  ;;  %v4198_v60 = vmax.f32 %v4044_v43, %v4134_v52  ;;  %v4050_v49 = vadd.f32 %v4049_v48, %v7819_v38 }
 0x54a   : > { %v4051_v36 = vpop.f32.mrf.mxu0 }
 0x54b   : > { %v4199_v7 = vmax.f32 %v4046_v12, %v4135_v11  ;;  %v4052_v58 = vadd.f32 %v4051_v36, %v7818_v59  ;;  %v4238_v18 = vpack.c.bf16 %v4198_v60, %v4196_v41  ;;  %v4136_v21 = vmul.f32 0.2, %v4050_v49 }
 0x54c   : > { %v4053_v15 = vpop.f32.mrf.mxu0 }
 0x54d   : > { %v4054_v17 = vadd.f32 %v4053_v15, %v7819_v38  ;;  %v4239_v62 = vpack.c.bf16 %v4199_v7, %v4197_v26  ;;  %v4137_v56 = vmul.f32 0.2, %v4052_v58  ;;  %v4200_v28 = vmax.f32 %v4050_v49, %v4136_v21 }
 0x54e   : > { %v4055_v34 = vpop.f32.mrf.mxu0 }
 0x54f   : > { %v4138_v63 = vmul.f32 0.2, %v4054_v17  ;;  %v4056_v20 = vadd.f32 %v4055_v34, %v7818_v59  ;;  %4497 = vmatprep.mubr.bf16.mxu1 %v4239_v62  ;;  %v4201_v16 = vmax.f32 %v4052_v58, %v4137_v56 }
 0x550   : > { %v4059_v25 = vpop.f32.mrf.mxu0  ;;  %4498 = vmatmul.mubr.bf16.gmra.mxu1 %v4238_v18 }
 0x551   : > { %v4139_v44 = vmul.f32 0.2, %v4056_v20  ;;  %v4202_v61 = vmax.f32 %v4054_v17, %v4138_v63  ;;  %v4060_v39 = vadd.f32 %v4059_v25, %v7819_v38 }
 0x552   : > { %v4061_v10 = vpop.f32.mrf.mxu0 }
 0x553   : > { %v4203_v47 = vmax.f32 %v4056_v20, %v4139_v44  ;;  %v4062_v30 = vadd.f32 %v4061_v10, %v7818_v59  ;;  %v4240_v29 = vpack.c.bf16 %v4202_v61, %v4200_v28  ;;  %v4140_v9 = vmul.f32 0.2, %v4060_v39 }
 0x554   : > { %v4063_v23 = vpop.f32.mrf.mxu0 }
 0x555   : > { %v4064_v2 = vadd.f32 %v4063_v23, %v7819_v38  ;;  %v4241_v51 = vpack.c.bf16 %v4203_v47, %v4201_v16  ;;  %v4141_v24 = vmul.f32 0.2, %v4062_v30  ;;  %v4204_v6 = vmax.f32 %v4060_v39, %v4140_v9 }
 0x556   : > { %v4065_v27 = vpop.f32.mrf.mxu0 }
 0x557   : > { %v4142_v3 = vmul.f32 0.2, %v4064_v2  ;;  %v4066_v37 = vadd.f32 %v4065_v27, %v7818_v59  ;;  %4505 = vmatprep.mubr.bf16.mxu1 %v4241_v51  ;;  %v4205_v31 = vmax.f32 %v4062_v30, %v4141_v24 }
 0x558   : > { %v4069_v13 = vpop.f32.mrf.mxu0  ;;  %4506 = vmatmul.mubr.bf16.gmra.mxu1 %v4240_v29 }
 0x559   : > { %v4143_v53 = vmul.f32 0.2, %v4066_v37  ;;  %v4206_v46 = vmax.f32 %v4064_v2, %v4142_v3  ;;  %v4070_v40 = vadd.f32 %v4069_v13, %v7819_v38 }
 0x55a   : > { %v4071_v55 = vpop.f32.mrf.mxu0 }
 0x55b   : > { %v4207_v32 = vmax.f32 %v4066_v37, %v4143_v53  ;;  %v4072_v5 = vadd.f32 %v4071_v55, %v7818_v59  ;;  %v4242_v8 = vpack.c.bf16 %v4206_v46, %v4204_v6  ;;  %v4144_v42 = vmul.f32 0.2, %v4070_v40 }
 0x55c   : > { %v4073_v0 = vpop.f32.mrf.mxu0 }
 0x55d   : > { %v4074_v4 = vadd.f32 %v4073_v0, %v7819_v38  ;;  %v4243_v35 = vpack.c.bf16 %v4207_v32, %v4205_v31  ;;  %v4145_v22 = vmul.f32 0.2, %v4072_v5  ;;  %v4208_v19 = vmax.f32 %v4070_v40, %v4144_v42 }
 0x55e   : > { %v4075_v54 = vpop.f32.mrf.mxu0 }
 0x55f   : > { %v4146_v14 = vmul.f32 0.2, %v4074_v4  ;;  %v4076_v57 = vadd.f32 %v4075_v54, %v7818_v59  ;;  %4513 = vmatprep.mubr.bf16.mxu1 %v4243_v35  ;;  %v4209_v1 = vmax.f32 %v4072_v5, %v4145_v22 }
 0x560   : > { %v4079_v43 = vpop.f32.mrf.mxu0  ;;  %4514 = vmatmul.mubr.bf16.gmra.mxu1 %v4242_v8 }
 0x561   : > { %v4147_v33 = vmul.f32 0.2, %v4076_v57  ;;  %v4210_v50 = vmax.f32 %v4074_v4, %v4146_v14  ;;  %v4080_v48 = vadd.f32 %v4079_v43, %v7819_v38 }
 0x562   : > { %v4081_v45 = vpop.f32.mrf.mxu0 }
 0x563   : > { %v4211_v52 = vmax.f32 %v4076_v57, %v4147_v33  ;;  %v4082_v12 = vadd.f32 %v4081_v45, %v7818_v59  ;;  %v4244_v26 = vpack.c.bf16 %v4210_v50, %v4208_v19  ;;  %v4148_v15 = vmul.f32 0.2, %v4080_v48 }
 0x564   : > { %v4083_v11 = vpop.f32.mrf.mxu0 }
 0x565   : > { %v4084_v60 = vadd.f32 %v4083_v11, %v7819_v38  ;;  %v4245_v36 = vpack.c.bf16 %v4211_v52, %v4209_v1  ;;  %v4149_v58 = vmul.f32 0.2, %v4082_v12  ;;  %v4212_v20 = vmax.f32 %v4080_v48, %v4148_v15  ;;  %v7610_v1 = vld [vmem:[%s7756_s8] ss:$0 sm:$0xff] }
 0x566   : > { %v4085_v7 = vpop.f32.mrf.mxu0 }
 0x567   : > { %v4150_v41 = vmul.f32 0.2, %v4084_v60  ;;  %v4086_v49 = vadd.f32 %v4085_v7, %v7818_v59  ;;  %4521 = vmatprep.mubr.bf16.mxu1 %v4245_v36  ;;  %v4213_v56 = vmax.f32 %v4082_v12, %v4149_v58 }
 0x568   : > { %4522 = vmatmul.mubr.bf16.gmra.mxu1 %v4244_v26  ;;  %v5859_v17 = vpop.f32.mrf.mxu0 }
 0x569   : > { %v4151_v62 = vmul.f32 0.2, %v4086_v49  ;;  %v4214_v18 = vmax.f32 %v4084_v60, %v4150_v41 }
 0x56a   : > { %v5860_v34 = vpop.f32.mrf.mxu0 }
 0x56b   : > { %v4215_v63 = vmax.f32 %v4086_v49, %v4151_v62  ;;  %v4246_v38 = vpack.c.bf16 %v4214_v18, %v4212_v20  ;;  %v5861_v57 = vadd.f32 %v5860_v34, %v5859_v17 }
 0x56c   : > { %v5862_v21 = vpop.f32.mrf.mxu0 }
 0x56d   : > { %v4247_v25 = vpack.c.bf16 %v4215_v63, %v4213_v56 }
 0x56e   : > { %v5863_v44 = vpop.f32.mrf.mxu0 }
 0x56f   : > { %4529 = vmatprep.mubr.bf16.mxu1 %v4247_v25  ;;  %v5864_v33 = vadd.f32 %v5863_v44, %v5862_v21 }
 0x570   : > { %4530 = vmatmul.mubr.bf16.gmra.mxu1 %v4246_v38  ;;  %v5865_v61 = vpop.f32.mrf.mxu0 }
 0x572   : > { %v5866_v10 = vpop.f32.mrf.mxu0 }
 0x573   : > { %v5867_v41 = vadd.f32 %v5866_v10, %v5865_v61 }
 0x574   : > { %v5868_v16 = vpop.f32.mrf.mxu0 }
 0x576   : > { %v5869_v59 = vpop.f32.mrf.mxu0 }
 0x577   : > { %v5870_v15 = vadd.f32 %v5869_v59, %v5868_v16 }
 0x578   : > { %v7557_v47 = vpop.f32.mrf.mxu0 }
 0x57a   : > { %v5872_v30 = vpop.f32.mrf.mxu0 }
 0x57b   : > { %v5873_v61 = vadd.f32 %v5872_v30, %v7557_v47 }
 0x57c   : > { %v7559_v28 = vpop.f32.mrf.mxu0 }
 0x57e   : > { %v7561_v39 = vpop.f32.mrf.mxu0 }
 0x57f   : > { %v5876_v59 = vadd.f32 %v7561_v39, %v7559_v28 }
 0x580   : > { %v7563_v23 = vpop.f32.mrf.mxu0 }
 0x582   : > { %v7565_v2 = vpop.f32.mrf.mxu0 }
 0x583   : > { %v5879_v28 = vadd.f32 %v7565_v2, %v7563_v23 }
 0x584   : > { %v7567_v51 = vpop.f32.mrf.mxu0 }
 0x586   : > { %v7569_v29 = vpop.f32.mrf.mxu0 }
 0x588   : > { %v7571_v27 = vpop.f32.mrf.mxu0 }
 0x58a   : > { %v7573_v24 = vpop.f32.mrf.mxu0 }
 0x58c   : > { %v7575_v3 = vpop.f32.mrf.mxu0 }
 0x58e   : > { %v7577_v37 = vpop.f32.mrf.mxu0 }
 0x590   : > { %v7579_v9 = vpop.f32.mrf.mxu0 }
 0x592   : > { %v7581_v13 = vpop.f32.mrf.mxu0 }
 0x594   : > { %v7583_v53 = vpop.f32.mrf.mxu0 }
 0x596   : > { %v7585_v46 = vpop.f32.mrf.mxu0 }
 0x598   : > { %v7587_v55 = vpop.f32.mrf.mxu0 }
 0x59a   : > { %v7589_v31 = vpop.f32.mrf.mxu0 }
 0x59c   : > { %v7591_v32 = vpop.f32.mrf.mxu0 }
 0x59e   : > { %v7593_v5 = vpop.f32.mrf.mxu0 }
 0x5a0   : > { %v7595_v6 = vpop.f32.mrf.mxu0 }
 0x5a2   : > { %v7597_v40 = vpop.f32.mrf.mxu0 }
 0x5a4   : > { %v7599_v0 = vpop.f32.mrf.mxu0 }
 0x5a6   : > { %v7601_v4 = vpop.f32.mrf.mxu0 }
 0x5a8   : > { %v7603_v8 = vpop.f32.mrf.mxu0 }
 0x5aa   : > { %v7605_v42 = vpop.f32.mrf.mxu0 }
 0x5ac   : > { %v7612_v52 = vpop.f32.mrf.mxu0 }
 0x5ae   : > { %v7622_v26 = vpop.f32.mrf.mxu0 }
 0x5b0   : > { %v7625_v18 = vpop.f32.mrf.mxu0 }
 0x5b2   : > { %v7629_v38 = vpop.f32.mrf.mxu0 }
 0x5b8   : > { %v5747_v35 = vpop.f32.mrf.mxu1 }
 0x5ba   : > { %v5748_v54 = vpop.f32.mrf.mxu1 }
 0x5bb   : > { %v5749_v22 = vadd.f32 %v5748_v54, %v5747_v35 }
 0x5bc   : > { %v5750_v14 = vpop.f32.mrf.mxu1 }
 0x5bd   : > { %v4669_v50 = vadd.f32 %v5861_v57, %v5749_v22  ;;  %v7635_v22 = vpop.f32.mrf.mxu0 }
 0x5be   : > { %v5751_v43 = vpop.f32.mrf.mxu1 }
 0x5bf   : > { %v5752_v45 = vadd.f32 %v5751_v43, %v5750_v14  ;;  %v4800_v48 = vadd.f32 %v7610_v1, %v4669_v50  ;;  %v7639_v47 = vpop.f32.mrf.mxu0 }
 0x5c0   : > { %v5753_v19 = vpop.f32.mrf.mxu1 }
 0x5c1   : > { %v4672_v12 = vadd.f32 %v5864_v33, %v5752_v45 }
 0x5c2   : > { %v5754_v60 = vpop.f32.mrf.mxu1 }
 0x5c3   : > { %v4801_v11 = vadd.f32 %v7610_v1, %v4672_v12  ;;  %v5755_v36 = vadd.f32 %v5754_v60, %v5753_v19  ;;  %v5882_v19 = vadd.f32 %v7569_v29, %v7567_v51  ;;  %v7646_v60 = vpop.f32.mrf.mxu0  ;;  %v5885_v51 = vadd.f32 %v7573_v24, %v7571_v27 }
 0x5c4   : > { %v5756_v58 = vpop.f32.mrf.mxu1 }
 0x5c5   : > { %v5639_v7 = vpack.c.bf16 %v4801_v11, %v4800_v48  ;;  %v4677_v17 = vadd.f32 %v5867_v41, %v5755_v36  ;;  %v7650_v23 = vpop.f32.mrf.mxu0 }
 0x5c6   : > { %v5757_v49 = vpop.f32.mrf.mxu1 }
 0x5c7   : > { %5640 = vst [vmem:[%s7620_s27] sm:$0xff] %v5639_v7   ;;  %v5758_v62 = vadd.f32 %v5757_v49, %v5756_v58  ;;  %v4802_v20 = vadd.f32 %v7610_v1, %v4677_v17 }
 0x5c8   : > { %v5759_v34 = vpop.f32.mrf.mxu1 }
 0x5c9   : > { %v4680_v56 = vadd.f32 %v5870_v15, %v5758_v62  ;;  %v5888_v62 = vadd.f32 %v7577_v37, %v7575_v3  ;;  %v5891_v3 = vadd.f32 %v7581_v13, %v7579_v9 }
 0x5ca   : > { %v5760_v63 = vpop.f32.mrf.mxu1 }
 0x5cb   : > { %v4803_v21 = vadd.f32 %v7610_v1, %v4680_v56  ;;  %v5761_v25 = vadd.f32 %v5760_v63, %v5759_v34  ;;  %v7657_v63 = vpop.f32.mrf.mxu0 }
 0x5cc   : > { %v5762_v44 = vpop.f32.mrf.mxu1 }
 0x5cd   : > { %v5644_v10 = vpack.c.bf16 %v4803_v21, %v4802_v20  ;;  %v4685_v35 = vadd.f32 %v5873_v61, %v5761_v25  ;;  %v7661_v27 = vpop.f32.mrf.mxu0 }
 0x5ce   : > { %v5763_v16 = vpop.f32.mrf.mxu1 }
 0x5cf   : > { %5716 = vst [vmem:[%s7620_s27 + $0x8] sm:$0xff] %v5644_v10   ;;  %v5764_v54 = vadd.f32 %v5763_v16, %v5762_v44  ;;  %v4804_v33 = vadd.f32 %v7610_v1, %v4685_v35 }
 0x5d0   : > { %v5765_v14 = vpop.f32.mrf.mxu1 }
 0x5d1   : > { %v4688_v57 = vadd.f32 %v5876_v59, %v5764_v54  ;;  %v5894_v59 = vadd.f32 %v7585_v46, %v7583_v53  ;;  %v5897_v53 = vadd.f32 %v7589_v31, %v7587_v55 }
 0x5d2   : > { %v5766_v43 = vpop.f32.mrf.mxu1 }
 0x5d3   : > { %v4805_v50 = vadd.f32 %v7610_v1, %v4688_v57  ;;  %v5767_v45 = vadd.f32 %v5766_v43, %v5765_v14  ;;  %v7668_v14 = vpop.f32.mrf.mxu0 }
 0x5d4   : > { %v5768_v30 = vpop.f32.mrf.mxu1 }
 0x5d5   : > { %v5649_v39 = vpack.c.bf16 %v4805_v50, %v4804_v33  ;;  %v4693_v48 = vadd.f32 %v5879_v28, %v5767_v45  ;;  %v7672_v9 = vpop.f32.mrf.mxu0 }
 0x5d6   : > { %v5769_v12 = vpop.f32.mrf.mxu1 }
 0x5d7   : > { %5717 = vst [vmem:[%s7620_s27 + $0x10] sm:$0xff] %v5649_v39   ;;  %v5770_v11 = vadd.f32 %v5769_v12, %v5768_v30  ;;  %v4806_v41 = vadd.f32 %v7610_v1, %v4693_v48  ;;  %v5900_v39 = vadd.f32 %v7593_v5, %v7591_v32  ;;  %v7679_v48 = vpop.f32.mrf.mxu0  ;;  %v5903_v32 = vadd.f32 %v7597_v40, %v7595_v6 }
 0x5d8   : > { %v5771_v36 = vpop.f32.mrf.mxu1 }
 0x5d9   : > { %v4696_v7 = vadd.f32 %v5882_v19, %v5770_v11  ;;  %v7683_v55 = vpop.f32.mrf.mxu0 }
 0x5da   : > { %v5772_v58 = vpop.f32.mrf.mxu1 }
 0x5db   : > { %v4807_v49 = vadd.f32 %v7610_v1, %v4696_v7  ;;  %v5773_v15 = vadd.f32 %v5772_v58, %v5771_v36 }
 0x5dc   : > { %v5774_v2 = vpop.f32.mrf.mxu1 }
 0x5dd   : > { %v5654_v29 = vpack.c.bf16 %v4807_v49, %v4806_v41  ;;  %v4701_v34 = vadd.f32 %v5885_v51, %v5773_v15 }
 0x5de   : > { %v5775_v17 = vpop.f32.mrf.mxu1 }
 0x5df   : > { %5718 = vst [vmem:[%s7620_s27 + $0x18] sm:$0xff] %v5654_v29   ;;  %v5776_v56 = vadd.f32 %v5775_v17, %v5774_v2  ;;  %v4808_v44 = vadd.f32 %v7610_v1, %v4701_v34  ;;  %v5906_v2 = vadd.f32 %v7601_v4, %v7599_v0  ;;  %v7690_v17 = vpop.f32.mrf.mxu0  ;;  %v5909_v0 = vadd.f32 %v7605_v42, %v7603_v8 }
 0x5e0   : > { %v5777_v20 = vpop.f32.mrf.mxu1  ;;  %v5915_v42 = vadd.f32 %v7629_v38, %v7625_v18  ;;  %v5921_v38 = vadd.f32 %v7650_v23, %v7646_v60  ;;  %v5927_v23 = vadd.f32 %v7672_v9, %v7668_v14 }
 0x5e1   : > { %v4704_v21 = vadd.f32 %v5888_v62, %v5776_v56  ;;  %v7694_v6 = vpop.f32.mrf.mxu0 }
 0x5e2   : > { %v5778_v25 = vpop.f32.mrf.mxu1  ;;  %v5933_v9 = vadd.f32 %v7694_v6, %v7690_v17 }
 0x5e3   : > { %v4809_v61 = vadd.f32 %v7610_v1, %v4704_v21  ;;  %v5779_v10 = vadd.f32 %v5778_v25, %v5777_v20 }
 0x5e4   : > { %v5780_v24 = vpop.f32.mrf.mxu1 }
 0x5e5   : > { %v5659_v37 = vpack.c.bf16 %v4809_v61, %v4808_v44  ;;  %v4709_v35 = vadd.f32 %v5891_v3, %v5779_v10  ;;  %v5912_v61 = vadd.f32 %v7622_v26, %v7612_v52  ;;  %v5934_v3 = vpop.f32.mrf.mxu0  ;;  %v5918_v26 = vadd.f32 %v7639_v47, %v7635_v22 }
 0x5e6   : > { %v5781_v16 = vpop.f32.mrf.mxu1  ;;  %v5924_v47 = vadd.f32 %v7661_v27, %v7657_v63  ;;  %v5930_v27 = vadd.f32 %v7683_v55, %v7679_v48 }
 0x5e7   : > { %5719 = vst [vmem:[%s7620_s27 + $0x20] sm:$0xff] %v5659_v37   ;;  %v5782_v54 = vadd.f32 %v5781_v16, %v5780_v24  ;;  %v4810_v50 = vadd.f32 %v7610_v1, %v4709_v35 }
 0x5e8   : > { %v5783_v57 = vpop.f32.mrf.mxu1 }
 0x5e9   : > { %v4712_v43 = vadd.f32 %v5894_v59, %v5782_v54 }
 0x5ea   : > { %v5784_v33 = vpop.f32.mrf.mxu1 }
 0x5eb   : > { %v4811_v45 = vadd.f32 %v7610_v1, %v4712_v43  ;;  %v5785_v30 = vadd.f32 %v5784_v33, %v5783_v57  ;;  %v5935_v43 = vpop.f32.mrf.mxu0 }
 0x5ec   : > { %v5786_v13 = vpop.f32.mrf.mxu1  ;;  %v5936_v55 = vadd.f32 %v5935_v43, %v5934_v3 }
 0x5ed   : > { %v5664_v46 = vpack.c.bf16 %v4811_v45, %v4810_v50  ;;  %v4717_v12 = vadd.f32 %v5897_v53, %v5785_v30  ;;  %v5937_v30 = vpop.f32.mrf.mxu0 }
 0x5ee   : > { %v5787_v28 = vpop.f32.mrf.mxu1 }
 0x5ef   : > { %5720 = vst [vmem:[%s7620_s27 + $0x28] sm:$0xff] %v5664_v46   ;;  %v5788_v19 = vadd.f32 %v5787_v28, %v5786_v13  ;;  %v4812_v58 = vadd.f32 %v7610_v1, %v4717_v12 }
 0x5f0   : > { %v5789_v11 = vpop.f32.mrf.mxu1 }
 0x5f1   : > { %v4720_v36 = vadd.f32 %v5900_v39, %v5788_v19  ;;  %v5938_v19 = vpop.f32.mrf.mxu0 }
 0x5f2   : > { %v5790_v7 = vpop.f32.mrf.mxu1 }
 0x5f3   : > { %v4813_v41 = vadd.f32 %v7610_v1, %v4720_v36  ;;  %v5791_v49 = vadd.f32 %v5790_v7, %v5789_v11 }
 0x5f4   : > { %v5792_v31 = vpop.f32.mrf.mxu1 }
 0x5f5   : > { %v5669_v5 = vpack.c.bf16 %v4813_v41, %v4812_v58  ;;  %v4725_v51 = vadd.f32 %v5903_v32, %v5791_v49  ;;  %v5940_v58 = vpop.f32.mrf.mxu0 }
 0x5f6   : > { %v5793_v15 = vpop.f32.mrf.mxu1 }
 0x5f7   : > { %5721 = vst [vmem:[%s7620_s27 + $0x30] sm:$0xff] %v5669_v5   ;;  %v5794_v29 = vadd.f32 %v5793_v15, %v5792_v31  ;;  %v4814_v20 = vadd.f32 %v7610_v1, %v4725_v51 }
 0x5f8   : > { %v5795_v62 = vpop.f32.mrf.mxu1 }
 0x5f9   : > { %v4728_v34 = vadd.f32 %v5906_v2, %v5794_v29  ;;  %v5941_v2 = vpop.f32.mrf.mxu0 }
 0x5fa   : > { %v5796_v56 = vpop.f32.mrf.mxu1 }
 0x5fb   : > { %v4815_v21 = vadd.f32 %v7610_v1, %v4728_v34  ;;  %v5797_v25 = vadd.f32 %v5796_v56, %v5795_v62  ;;  %v5943_v34 = vpop.f32.mrf.mxu0 }
 0x5fc   : > { %v5798_v40 = vpop.f32.mrf.mxu1 }
 0x5fd   : > { %v5674_v4 = vpack.c.bf16 %v4815_v21, %v4814_v20  ;;  %v4733_v10 = vadd.f32 %v5909_v0, %v5797_v25 }
 0x5fe   : > { %v5799_v44 = vpop.f32.mrf.mxu1 }
 0x5ff   : > { %5722 = vst [vmem:[%s7620_s27 + $0x38] sm:$0xff] %v5674_v4   ;;  %v5800_v24 = vadd.f32 %v5799_v44, %v5798_v40  ;;  %v4816_v35 = vadd.f32 %v7610_v1, %v4733_v10  ;;  %v5944_v4 = vpop.f32.mrf.mxu0 }
 0x600   : > { %v5801_v37 = vpop.f32.mrf.mxu1 }
 0x601   : > { %v4736_v16 = vadd.f32 %v5912_v61, %v5800_v24  ;;  %v5946_v24 = vpop.f32.mrf.mxu0 }
 0x602   : > { %v5802_v59 = vpop.f32.mrf.mxu1 }
 0x603   : > { %v4817_v54 = vadd.f32 %v7610_v1, %v4736_v16  ;;  %v5803_v57 = vadd.f32 %v5802_v59, %v5801_v37 }
 0x604   : > { %v5804_v8 = vpop.f32.mrf.mxu1 }
 0x605   : > { %v5679_v33 = vpack.c.bf16 %v4817_v54, %v4816_v35  ;;  %v4741_v50 = vadd.f32 %v5915_v42, %v5803_v57 }
 0x606   : > { %v5805_v52 = vpop.f32.mrf.mxu1 }
 0x607   : > { %5723 = vst [vmem:[%s7620_s27 + $0x40] sm:$0xff] %v5679_v33   ;;  %v5806_v45 = vadd.f32 %v5805_v52, %v5804_v8  ;;  %v4818_v28 = vadd.f32 %v7610_v1, %v4741_v50  ;;  %v5947_v8 = vpop.f32.mrf.mxu0  ;;  %v5939_v33 = vadd.f32 %v5938_v19, %v5937_v30  ;;  %v5942_v52 = vadd.f32 %v5941_v2, %v5940_v58 }
 0x608   : > { %v5807_v13 = vpop.f32.mrf.mxu1 }
 0x609   : > { %v4744_v53 = vadd.f32 %v5918_v26, %v5806_v45  ;;  %v5949_v26 = vpop.f32.mrf.mxu0 }
 0x60a   : > { %v5808_v46 = vpop.f32.mrf.mxu1 }
 0x60b   : > { %v4819_v39 = vadd.f32 %v7610_v1, %v4744_v53  ;;  %v5809_v12 = vadd.f32 %v5808_v46, %v5807_v13 }
 0x60c   : > { %v5810_v18 = vpop.f32.mrf.mxu1 }
 0x60d   : > { %v5684_v11 = vpack.c.bf16 %v4819_v39, %v4818_v28  ;;  %v4749_v36 = vadd.f32 %v5921_v38, %v5809_v12  ;;  %v5950_v39 = vpop.f32.mrf.mxu0  ;;  %v5948_v38 = vadd.f32 %v5947_v8, %v5946_v24 }
 0x60e   : > { %v5811_v22 = vpop.f32.mrf.mxu1 }
 0x60f   : > { %5724 = vst [vmem:[%s7620_s27 + $0x48] sm:$0xff] %v5684_v11   ;;  %v5812_v7 = vadd.f32 %v5811_v22, %v5810_v18  ;;  %v4820_v32 = vadd.f32 %v7610_v1, %v4749_v36  ;;  %v5945_v18 = vadd.f32 %v5944_v4, %v5943_v34 }
 0x610   : > { %v5813_v41 = vpop.f32.mrf.mxu1 }
 0x611   : > { %v4752_v49 = vadd.f32 %v5924_v47, %v5812_v7  ;;  %v5952_v47 = vpop.f32.mrf.mxu0 }
 0x612   : > { %v5814_v31 = vpop.f32.mrf.mxu1 }
 0x613   : > { %v4821_v5 = vadd.f32 %v7610_v1, %v4752_v49  ;;  %v5815_v15 = vadd.f32 %v5814_v31, %v5813_v41 }
 0x614   : > { %v5816_v60 = vpop.f32.mrf.mxu1 }
 0x615   : > { %v5689_v51 = vpack.c.bf16 %v4821_v5, %v4820_v32  ;;  %v4757_v29 = vadd.f32 %v5927_v23, %v5815_v15  ;;  %v5953_v32 = vpop.f32.mrf.mxu0  ;;  %v5951_v15 = vadd.f32 %v5950_v39, %v5949_v26 }
 0x616   : > { %v5817_v63 = vpop.f32.mrf.mxu1  ;;  %v5954_v23 = vadd.f32 %v5953_v32, %v5952_v47 }
 0x617   : > { %5725 = vst [vmem:[%s7620_s27 + $0x50] sm:$0xff] %v5689_v51   ;;  %v5818_v62 = vadd.f32 %v5817_v63, %v5816_v60  ;;  %v4822_v25 = vadd.f32 %v7610_v1, %v4757_v29 }
 0x618   : > { %v5819_v56 = vpop.f32.mrf.mxu1 }
 0x619   : > { %v4760_v20 = vadd.f32 %v5930_v27, %v5818_v62 }
 0x61a   : > { %v5820_v21 = vpop.f32.mrf.mxu1 }
 0x61b   : > { %v4823_v40 = vadd.f32 %v7610_v1, %v4760_v20  ;;  %v5821_v0 = vadd.f32 %v5820_v21, %v5819_v56 }
 0x61c   : > { %v5822_v14 = vpop.f32.mrf.mxu1 }
 0x61d   : > { %v5694_v44 = vpack.c.bf16 %v4823_v40, %v4822_v25  ;;  %v4765_v61 = vadd.f32 %v5933_v9, %v5821_v0 }
 0x61e   : > { %v5823_v48 = vpop.f32.mrf.mxu1 }
 0x61f   : > { %5726 = vst [vmem:[%s7620_s27 + $0x58] sm:$0xff] %v5694_v44   ;;  %v5824_v10 = vadd.f32 %v5823_v48, %v5822_v14  ;;  %v4824_v35 = vadd.f32 %v7610_v1, %v4765_v61 }
 0x620   : > { %v5825_v37 = vpop.f32.mrf.mxu1 }
 0x621   : > { %v4768_v16 = vadd.f32 %v5936_v55, %v5824_v10 }
 0x622   : > { %v5826_v59 = vpop.f32.mrf.mxu1 }
 0x623   : > { %v4825_v54 = vadd.f32 %v7610_v1, %v4768_v16  ;;  %v5827_v57 = vadd.f32 %v5826_v59, %v5825_v37 }
 0x624   : > { %v5828_v42 = vpop.f32.mrf.mxu1 }
 0x625   : > { %v5699_v17 = vpack.c.bf16 %v4825_v54, %v4824_v35  ;;  %v4773_v3 = vadd.f32 %v5939_v33, %v5827_v57 }
 0x626   : > { %v5829_v6 = vpop.f32.mrf.mxu1 }
 0x627   : > { %5727 = vst [vmem:[%s7620_s27 + $0x60] sm:$0xff] %v5699_v17   ;;  %v5830_v43 = vadd.f32 %v5829_v6, %v5828_v42  ;;  %v4826_v53 = vadd.f32 %v7610_v1, %v4773_v3 }
 0x628   : > { %v5831_v50 = vpop.f32.mrf.mxu1 }
 0x629   : > { %v4776_v45 = vadd.f32 %v5942_v52, %v5830_v43 }
 0x62a   : > { %v5832_v13 = vpop.f32.mrf.mxu1 }
 0x62b   : > { %v4827_v46 = vadd.f32 %v7610_v1, %v4776_v45  ;;  %v5833_v28 = vadd.f32 %v5832_v13, %v5831_v50 }
 0x62c   : > { %v5834_v12 = vpop.f32.mrf.mxu1 }
 0x62d   : > { %v5704_v30 = vpack.c.bf16 %v4827_v46, %v4826_v53  ;;  %v4781_v11 = vadd.f32 %v5945_v18, %v5833_v28 }
 0x62e   : > { %v5835_v19 = vpop.f32.mrf.mxu1 }
 0x62f   : > { %5728 = vst [vmem:[%s7620_s27 + $0x68] sm:$0xff] %v5704_v30   ;;  %v5836_v22 = vadd.f32 %v5835_v19, %v5834_v12  ;;  %v4828_v41 = vadd.f32 %v7610_v1, %v4781_v11 }
 0x630   : > { %v5837_v36 = vpop.f32.mrf.mxu1 }
 0x631   : > { %v4784_v7 = vadd.f32 %v5948_v38, %v5836_v22 }
 0x632   : > { %v5838_v58 = vpop.f32.mrf.mxu1 }
 0x633   : > { %v4829_v49 = vadd.f32 %v7610_v1, %v4784_v7  ;;  %v5839_v31 = vadd.f32 %v5838_v58, %v5837_v36 }
 0x634   : > { %v5840_v5 = vpop.f32.mrf.mxu1 }
 0x635   : > { %v5709_v2 = vpack.c.bf16 %v4829_v49, %v4828_v41  ;;  %v4789_v51 = vadd.f32 %v5951_v15, %v5839_v31 }
 0x636   : > { %v5841_v60 = vpop.f32.mrf.mxu1 }
 0x637   : > { %5729 = vst [vmem:[%s7620_s27 + $0x70] sm:$0xff] %v5709_v2   ;;  %v5842_v63 = vadd.f32 %v5841_v60, %v5840_v5  ;;  %v4830_v29 = vadd.f32 %v7610_v1, %v4789_v51 }
 0x639   : > { %v4792_v27 = vadd.f32 %v5954_v23, %v5842_v63 }
 0x63b   : > { %v4831_v62 = vadd.f32 %v7610_v1, %v4792_v27 }
 0x63d   : > { %v5714_v34 = vpack.c.bf16 %v4831_v62, %v4830_v29 }
 0x63f   : > { %5730 = vst [vmem:[%s7620_s27 + $0x78] sm:$0xff] %v5714_v34  }
 0x640 PF: > { %s19_s11 = sadd.s32 1, %s6289_s11   ;;  %s7833_s30 = smov %s6285_s10 }
 0x641   : > { %p16_p5 = scmp.ge.s32.totalorder %s19_s11, 4   ;;  %s7834_s10 = smov %s7836_s12 }
 0x643   :  { %18 = sbr.rel (!%p16_p5) target bundleno = 2 (0x2), region = 106 }

</bundles_post_ra>
